<compile_context>
chip_gen: v7x
topology: tpu7x:2x2x1
jax: 0.10.0
libtpu: 0.0.40
codegen_flags: <defaults>
</compile_context>

<pallas_src>
import numpy as np
import jax
import jax.numpy as jnp
from jax import lax
from jax.experimental import pallas as pl
from jax.experimental.pallas import tpu as pltpu


# Sub-tile indices inside the packed per-level weight blob (see _pack_weights).
_SUB_LATERAL = 0      # (Cout, Cin)  1x1 conv weight at lanes [0:Cin]
_SUB_TAP0 = 1         # 3x3 taps: sub-tile 1 + kh*3 + kw, (Cout, Cout) at lanes [0:Cout]
_SUB_BIAS_LAT = 10    # lateral bias at lane 0
_SUB_BIAS_OUT = 11    # output  bias at lane 0
_NUM_SUBTILES = 12


# ----------------------------------------------------------------------------
# Parameter packing: one DMA for all conv weights/biases.
# ----------------------------------------------------------------------------
def _pack_weights(params, levels, out_channels):
    """Pack per-level FPN weights/biases into one (n, 12, Cout, 128) f32 blob."""
    n = len(levels)
    Cout = out_channels
    blob = jnp.zeros((n, _NUM_SUBTILES, Cout, 128), jnp.float32)
    for j, lvl in enumerate(levels):
        wl, bl, wo, bo = params[lvl]
        wlT = jnp.asarray(wl, jnp.float32).T                    # (Cout, Cin)
        assert wlT.shape[1] <= 128, "Cin > 128 needs a wider packing (not this config)"
        blob = blob.at[j, _SUB_LATERAL, :, : wlT.shape[1]].set(wlT)
        wo = jnp.asarray(wo, jnp.float32)                       # (3, 3, ci, co)
        for kh in range(3):
            for kw in range(3):
                blob = blob.at[j, _SUB_TAP0 + kh * 3 + kw, :, :Cout].set(wo[kh, kw].T)
        blob = blob.at[j, _SUB_BIAS_LAT, :, 0].set(
            jnp.asarray(bl, jnp.float32).reshape(Cout))
        blob = blob.at[j, _SUB_BIAS_OUT, :, 0].set(
            jnp.asarray(bo, jnp.float32).reshape(Cout))
    return blob


# ----------------------------------------------------------------------------
# Nearest-neighbor upsample as an exact 0/1 matrix (applied on the MXU).
# Matches F.interpolate(mode='nearest'): src = (dst_idx * src_size) // dst_size.
# ----------------------------------------------------------------------------
def _nearest_upsample_matrix(hs, ws, hd, wd):
    ri = (np.arange(hd) * hs) // hd
    ci = (np.arange(wd) * ws) // wd
    src = (ri[:, None] * ws + ci[None, :]).reshape(-1)
    U = np.zeros((hs * ws, hd * wd), np.float32)
    U[src, np.arange(hd * wd)] = 1.0
    return U


# ----------------------------------------------------------------------------
# Fused kernel body (closure over static per-level config).
# Lane index p = b*HW + y*W + x  (batch folded onto lanes).
# ----------------------------------------------------------------------------
def _make_kernel(n, B, Cout, cins, hw_shapes, hws, Ns, u_per_image):
    def kernel(*refs):
        x_refs = refs[:n]
        wb_ref = refs[n]
        u_refs = refs[n + 1:2 * n]
        o_refs = refs[2 * n:]

        td = None
        for j in range(n):                      # coarsest -> finest, fully fused on-chip
            W = hw_shapes[j][1]
            HW, N, cin = hws[j], Ns[j], cins[j]

            # ---- lateral 1x1 conv + bias (+ top-down): one MXU matmul ----
            wlT = wb_ref[j, _SUB_LATERAL, :, :cin]               # (Cout, Cin)
            bl = wb_ref[j, _SUB_BIAS_LAT, :, 0:1]                # (Cout, 1)
            bo = wb_ref[j, _SUB_BIAS_OUT, :, 0:1]                # (Cout, 1)
            lat = jnp.dot(wlT, x_refs[j][...],
                          preferred_element_type=jnp.float32) + bl
            if td is not None:
                lat = lat + td

            # ---- 3x3 "same" conv: 9 accumulating K=Cout matmuls (no im2col) ----
            lane = lax.broadcasted_iota(jnp.int32, (1, N), 1)
            xw = lane % W                                        # x within a row
            r = lane % HW                                        # flat pos within image

            # centre tap (kh=kw=1): no shift, no mask; fold the output bias in.
            acc = jnp.dot(wb_ref[j, _SUB_TAP0 + 4, :, :Cout], lat,
                          preferred_element_type=jnp.float32) + bo
            for kh in range(3):
                for kw in range(3):
                    if kh == 1 and kw == 1:
                        continue
                    # output position p needs lat[p + off]; pltpu.roll follows the
                    # np.roll convention out[i] = in[(i - shift) % n] -> shift = (-off) % N.
                    off = (kh - 1) * W + (kw - 1)
                    shifted = pltpu.roll(lat, (-off) % N, 1)
                    contrib = jnp.dot(
                        wb_ref[j, _SUB_TAP0 + kh * 3 + kw, :, :Cout], shifted,
                        preferred_element_type=jnp.float32)
                    conds = []
                    if kw == 0:
                        conds.append(xw >= 1)
                    elif kw == 2:
                        conds.append(xw <= W - 2)
                    if kh == 0:
                        conds.append(r >= W)
                    elif kh == 2:
                        conds.append(r < HW - W)
                    cond = conds[0]
                    for c in conds[1:]:
                        cond = jnp.logical_and(cond, c)
                    acc = acc + jnp.where(cond, contrib, 0.0)

            p_out = jnp.maximum(acc, 0.0)        # activation='relu', norm_type='none'
            o_refs[j][...] = p_out

            # ---- nearest-neighbour upsample to the next (finer) level ----
            if j < n - 1:
                u = u_refs[j][...].astype(jnp.float32)           # exact: entries are 0/1
                if u_per_image[j]:
                    hw_c = hws[j]
                    parts = [jnp.dot(p_out[:, b * hw_c:(b + 1) * hw_c], u,
                                     preferred_element_type=jnp.float32)
                             for b in range(B)]
                    td = parts[0] if B == 1 else jnp.concatenate(parts, axis=1)
                else:
                    td = jnp.dot(p_out, u, preferred_element_type=jnp.float32)

    return kernel


# ----------------------------------------------------------------------------
# Fused FPN forward (NCHW in, NCHW out) -- a single pallas_call for all levels.
# ----------------------------------------------------------------------------
def fpn_forward_pallas(features_nchw, params, num_levels, out_channels):
    feats, names, levels = [], [], []
    for i in range(num_levels):
        ln = f"C{i + 2}"
        if ln in features_nchw:
            feats.append(features_nchw[ln])
            names.append(f"P{i + 2}")
            levels.append(i)
    # top-down order: coarsest -> finest
    feats, names, levels = feats[::-1], names[::-1], levels[::-1]

    n = len(feats)
    B = feats[0].shape[0]
    Cout = out_channels
    hw_shapes = [(f.shape[2], f.shape[3]) for f in feats]
    cins = [f.shape[1] for f in feats]
    hws = [h * w for h, w in hw_shapes]
    Ns = [B * hw for hw in hws]

    # Fold batch onto the lane axis: (B, Cin, H, W) -> (Cin, B*H*W). Layout plumbing
    # (tiny host-side transpose) that makes every kernel matmul/store lane-dense.
    xs = [jnp.transpose(f.reshape(B, cins[j], hws[j]), (1, 0, 2)).reshape(cins[j], Ns[j])
          for j, f in enumerate(feats)]

    wblob = _pack_weights(params, levels, Cout)

    # Upsample operators coarse j -> fine j+1, bf16 (exact 0/1), f32-converted on-chip.
    u_mats, u_per_image = [], []
    for j in range(n - 1):
        U = _nearest_upsample_matrix(*hw_shapes[j], *hw_shapes[j + 1])
        per_img = (B == 1) or (hws[j] % 128 == 0 and hws[j + 1] % 128 == 0)
        if not per_img:
            U = np.kron(np.eye(B, dtype=np.float32), U)   # block-diagonal over batch
        u_mats.append(jnp.asarray(U, jnp.bfloat16))
        u_per_image.append(per_img)

    kernel = _make_kernel(n, B, Cout, cins, hw_shapes, hws, Ns, u_per_image)

    vmem = pl.BlockSpec(memory_space=pltpu.MemorySpace.VMEM)
    outs = pl.pallas_call(
        kernel,
        out_shape=tuple(jax.ShapeDtypeStruct((Cout, Ns[j]), jnp.float32)
                        for j in range(n)),
        in_specs=[vmem] * (2 * n),                 # n feats + 1 weight blob + (n-1) U
        out_specs=tuple(vmem for _ in range(n)),
    )(*xs, wblob, *u_mats)

    result = {}
    for j in range(n):
        h, w = hw_shapes[j]
        result[names[j]] = outs[j].reshape(Cout, B, h, w).transpose(1, 0, 2, 3)
    return result


# ----------------------------------------------------------------------------
# Deterministic parameter init (kaiming-normal fan_out, zero bias)
# ----------------------------------------------------------------------------
def init_fpn_params(key, in_channels, out_channels):
    params = []
    for cin in in_channels:
        key, k1, k2 = jax.random.split(key, 3)
        wl = jax.random.normal(k1, (cin, out_channels), jnp.float32) * \
            jnp.sqrt(2.0 / out_channels)                 # 1x1 conv, fan_out=Cout
        bl = jnp.zeros((1, out_channels), jnp.float32)
        wo = jax.random.normal(k2, (3, 3, out_channels, out_channels),
                               jnp.float32) * jnp.sqrt(2.0 / (9 * out_channels))
        bo = jnp.zeros((1, out_channels), jnp.float32)
        params.append((wl, bl, wo, bo))
    return params


# ----------------------------------------------------------------------------
# Pure-JAX (XLA) reference for validation
# ----------------------------------------------------------------------------
def _conv_nchw(x, w_oihw, b, padding):
    out = lax.conv_general_dilated(
        x, w_oihw, window_strides=(1, 1),
        padding=[(padding, padding), (padding, padding)],
        dimension_numbers=("NCHW", "OIHW", "NCHW"),
        precision=lax.Precision.HIGHEST)
    return out + b.reshape(1, -1, 1, 1)


def _nearest_resize_nchw(x, H, W):
    h, w = x.shape[2], x.shape[3]
    ri = (jnp.arange(H) * h) // H
    ci = (jnp.arange(W) * w) // W
    return x[:, :, ri][:, :, :, ci]


def fpn_forward_reference(features_nchw, params, num_levels, out_channels):
    input_feats, names, levels = [], [], []
    for i in range(num_levels):
        lvl = f"C{i + 2}"
        if lvl in features_nchw:
            input_feats.append(features_nchw[lvl])
            names.append(f"P{i + 2}")
            levels.append(i)
    input_feats, names, levels = input_feats[::-1], names[::-1], levels[::-1]

    out, top_down = {}, None
    for feat, name, level in zip(input_feats, names, levels):
        wl, bl, wo, bo = params[level]
        wl_oihw = wl.T[:, :, None, None]                # (Cout, Cin, 1, 1)
        wo_oihw = jnp.transpose(wo, (3, 2, 0, 1))       # (kh,kw,ci,co) -> OIHW
        lateral = _conv_nchw(feat, wl_oihw, bl, padding=0)
        if top_down is not None:
            if top_down.shape[-2:] != lateral.shape[-2:]:
                top_down = _nearest_resize_nchw(top_down, lateral.shape[-2],
                                                lateral.shape[-1])
            lateral = lateral + top_down
        o = jnp.maximum(_conv_nchw(lateral, wo_oihw, bo, padding=1), 0.0)
        out[name] = o
        top_down = o
    return out


# ----------------------------------------------------------------------------
if __name__ == "__main__":
    # Config: in_channels=[4, 8, 16], out_channels=8, num_levels=3
    in_channels = [4, 8, 16]
    out_channels = 8
    num_levels = 3

    key = jax.random.PRNGKey(0)
    key, kp, k2, k3, k4 = jax.random.split(key, 5)
    params = init_fpn_params(kp, in_channels, out_channels)

    # Backbone features (NCHW), strides 4/8/16 of a 128-ish image -> 32/16/8.
    features = {
        "C2": jax.random.normal(k2, (2, 4, 32, 32), jnp.float32),
        "C3": jax.random.normal(k3, (2, 8, 16, 16), jnp.float32),
        "C4": jax.random.normal(k4, (2, 16, 8, 8), jnp.float32),
    }

    out = fpn_forward_pallas(features, params, num_levels, out_channels)
    for name in sorted(out):
        jax.block_until_ready(out[name])

    ref = fpn_forward_reference(features, params, num_levels, out_channels)
    for name in sorted(out):
        np.testing.assert_allclose(np.asarray(out[name]), np.asarray(ref[name]),
                                   rtol=1e-4, atol=1e-4)

    print("KERNEL_OK")
</pallas_src>

<mosaic_0001>
module attributes {stable_mosaic.version = 11 : i64} {
  func.func @kernel(%arg0: memref<16x128xf32, #tpu.memory_space<vmem>>, %arg1: memref<8x512xf32, #tpu.memory_space<vmem>>, %arg2: memref<4x2048xf32, #tpu.memory_space<vmem>>, %arg3: memref<3x12x8x128xf32, #tpu.memory_space<vmem>>, %arg4: memref<128x512xbf16, #tpu.memory_space<vmem>>, %arg5: memref<256x1024xbf16, #tpu.memory_space<vmem>>, %arg6: memref<8x128xf32, #tpu.memory_space<vmem>>, %arg7: memref<8x512xf32, #tpu.memory_space<vmem>>, %arg8: memref<8x2048xf32, #tpu.memory_space<vmem>>) attributes {dimension_semantics = [], scalar_prefetch = 0 : i64, scratch_operands = 0 : i64, tpu.core_type = #tpu.core_type<tc>} {
    %c0 = arith.constant 0 : index
    %c0_0 = arith.constant 0 : index
    %c0_1 = arith.constant 0 : index
    %c0_2 = arith.constant 0 : index
    %0 = vector.load %arg3[%c0, %c0_0, %c0_1, %c0_2] : memref<3x12x8x128xf32, #tpu.memory_space<vmem>>, vector<1x1x8x16xf32>
    %1 = vector.shape_cast %0 : vector<1x1x8x16xf32> to vector<8x16xf32>
    %c0_3 = arith.constant 0 : index
    %c10 = arith.constant 10 : index
    %c0_4 = arith.constant 0 : index
    %c0_5 = arith.constant 0 : index
    %2 = vector.load %arg3[%c0_3, %c10, %c0_4, %c0_5] : memref<3x12x8x128xf32, #tpu.memory_space<vmem>>, vector<1x1x8x1xf32>
    %3 = vector.shape_cast %2 : vector<1x1x8x1xf32> to vector<8x1xf32>
    %c0_6 = arith.constant 0 : index
    %c11 = arith.constant 11 : index
    %c0_7 = arith.constant 0 : index
    %c0_8 = arith.constant 0 : index
    %4 = vector.load %arg3[%c0_6, %c11, %c0_7, %c0_8] : memref<3x12x8x128xf32, #tpu.memory_space<vmem>>, vector<1x1x8x1xf32>
    %5 = vector.shape_cast %4 : vector<1x1x8x1xf32> to vector<8x1xf32>
    %c0_9 = arith.constant 0 : index
    %c0_10 = arith.constant 0 : index
    %6 = vector.load %arg0[%c0_9, %c0_10] : memref<16x128xf32, #tpu.memory_space<vmem>>, vector<16x128xf32>
    %cst = arith.constant dense<0.000000e+00> : vector<8x128xf32>
    %7 = tpu.matmul %1, %6, %cst {dimension_numbers = #tpu.dot_dimension_numbers<[1], [0], [0], [1], [0, 0, 1, 1], [], []>} : vector<8x16xf32>, vector<16x128xf32>, vector<8x128xf32> -> vector<8x128xf32>
    %8 = vector.broadcast %3 : vector<8x1xf32> to vector<8x128xf32>
    %9 = arith.addf %7, %8 : vector<8x128xf32>
    %10 = tpu.iota {dimensions = array<i32: 1>} : vector<1x128xi32>
    %c8_i32 = arith.constant 8 : i32
    %c0_i32 = arith.constant 0 : i32
    %11 = arith.cmpi eq, %c8_i32, %c0_i32 : i32
    %c1_i32 = arith.constant 1 : i32
    %12 = arith.select %11, %c1_i32, %c8_i32 : i32
    %13 = vector.broadcast %12 : i32 to vector<1x128xi32>
    %14 = arith.remsi %10, %13 : vector<1x128xi32>
    %c0_i32_11 = arith.constant 0 : i32
    %15 = vector.broadcast %c0_i32_11 : i32 to vector<1x128xi32>
    %16 = arith.cmpi ne, %14, %15 : vector<1x128xi32>
    %c0_i32_12 = arith.constant 0 : i32
    %17 = vector.broadcast %c0_i32_12 : i32 to vector<1x128xi32>
    %18 = arith.cmpi slt, %14, %17 : vector<1x128xi32>
    %c0_i32_13 = arith.constant 0 : i32
    %19 = arith.cmpi slt, %12, %c0_i32_13 : i32
    %20 = vector.broadcast %19 : i1 to vector<1x128xi1>
    %21 = vector.broadcast %20 : vector<1x128xi1> to vector<1x128xi1>
    %22 = arith.xori %18, %21 : vector<1x128xi1>
    %23 = arith.andi %22, %16 : vector<1x128xi1>
    %24 = vector.broadcast %12 : i32 to vector<1x128xi32>
    %25 = arith.addi %14, %24 : vector<1x128xi32>
    %26 = arith.select %23, %25, %14 : vector<1x128xi1>, vector<1x128xi32>
    %c64_i32 = arith.constant 64 : i32
    %c0_i32_14 = arith.constant 0 : i32
    %27 = arith.cmpi eq, %c64_i32, %c0_i32_14 : i32
    %c1_i32_15 = arith.constant 1 : i32
    %28 = arith.select %27, %c1_i32_15, %c64_i32 : i32
    %29 = vector.broadcast %28 : i32 to vector<1x128xi32>
    %30 = arith.remsi %10, %29 : vector<1x128xi32>
    %c0_i32_16 = arith.constant 0 : i32
    %31 = vector.broadcast %c0_i32_16 : i32 to vector<1x128xi32>
    %32 = arith.cmpi ne, %30, %31 : vector<1x128xi32>
    %c0_i32_17 = arith.constant 0 : i32
    %33 = vector.broadcast %c0_i32_17 : i32 to vector<1x128xi32>
    %34 = arith.cmpi slt, %30, %33 : vector<1x128xi32>
    %c0_i32_18 = arith.constant 0 : i32
    %35 = arith.cmpi slt, %28, %c0_i32_18 : i32
    %36 = vector.broadcast %35 : i1 to vector<1x128xi1>
    %37 = vector.broadcast %36 : vector<1x128xi1> to vector<1x128xi1>
    %38 = arith.xori %34, %37 : vector<1x128xi1>
    %39 = arith.andi %38, %32 : vector<1x128xi1>
    %40 = vector.broadcast %28 : i32 to vector<1x128xi32>
    %41 = arith.addi %30, %40 : vector<1x128xi32>
    %42 = arith.select %39, %41, %30 : vector<1x128xi1>, vector<1x128xi32>
    %c0_19 = arith.constant 0 : index
    %c5 = arith.constant 5 : index
    %c0_20 = arith.constant 0 : index
    %c0_21 = arith.constant 0 : index
    %43 = vector.load %arg3[%c0_19, %c5, %c0_20, %c0_21] : memref<3x12x8x128xf32, #tpu.memory_space<vmem>>, vector<1x1x8x8xf32>
    %44 = vector.shape_cast %43 : vector<1x1x8x8xf32> to vector<8x8xf32>
    %cst_22 = arith.constant dense<0.000000e+00> : vector<8x128xf32>
    %45 = tpu.matmul %44, %9, %cst_22 {dimension_numbers = #tpu.dot_dimension_numbers<[1], [0], [0], [1], [0, 0, 1, 1], [], []>} : vector<8x8xf32>, vector<8x128xf32>, vector<8x128xf32> -> vector<8x128xf32>
    %46 = vector.broadcast %5 : vector<8x1xf32> to vector<8x128xf32>
    %47 = arith.addf %45, %46 : vector<8x128xf32>
    %c9_i32 = arith.constant 9 : i32
    %48 = tpu.dynamic_rotate %9 by %c9_i32 dim 1 : vector<8x128xf32>, i32 -> vector<8x128xf32>
    %c0_23 = arith.constant 0 : index
    %c1 = arith.constant 1 : index
    %c0_24 = arith.constant 0 : index
    %c0_25 = arith.constant 0 : index
    %49 = vector.load %arg3[%c0_23, %c1, %c0_24, %c0_25] : memref<3x12x8x128xf32, #tpu.memory_space<vmem>>, vector<1x1x8x8xf32>
    %50 = vector.shape_cast %49 : vector<1x1x8x8xf32> to vector<8x8xf32>
    %cst_26 = arith.constant dense<0.000000e+00> : vector<8x128xf32>
    %51 = tpu.matmul %50, %48, %cst_26 {dimension_numbers = #tpu.dot_dimension_numbers<[1], [0], [0], [1], [0, 0, 1, 1], [], []>} : vector<8x8xf32>, vector<8x128xf32>, vector<8x128xf32> -> vector<8x128xf32>
    %c1_i32_27 = arith.constant 1 : i32
    %52 = vector.broadcast %c1_i32_27 : i32 to vector<1x128xi32>
    %53 = arith.cmpi sge, %26, %52 : vector<1x128xi32>
    %c8_i32_28 = arith.constant 8 : i32
    %54 = vector.broadcast %c8_i32_28 : i32 to vector<1x128xi32>
    %55 = arith.cmpi sge, %42, %54 : vector<1x128xi32>
    %56 = arith.andi %53, %55 : vector<1x128xi1>
    %cst_29 = arith.constant 0.000000e+00 : f32
    %57 = vector.shape_cast %56 : vector<1x128xi1> to vector<1x128xi1>
    %58 = vector.broadcast %57 : vector<1x128xi1> to vector<8x128xi1>
    %59 = vector.broadcast %cst_29 : f32 to vector<8x128xf32>
    %60 = arith.select %58, %51, %59 : vector<8x128xi1>, vector<8x128xf32>
    %61 = arith.addf %47, %60 : vector<8x128xf32>
    %c8_i32_30 = arith.constant 8 : i32
    %62 = tpu.dynamic_rotate %9 by %c8_i32_30 dim 1 : vector<8x128xf32>, i32 -> vector<8x128xf32>
    %c0_31 = arith.constant 0 : index
    %c2 = arith.constant 2 : index
    %c0_32 = arith.constant 0 : index
    %c0_33 = arith.constant 0 : index
    %63 = vector.load %arg3[%c0_31, %c2, %c0_32, %c0_33] : memref<3x12x8x128xf32, #tpu.memory_space<vmem>>, vector<1x1x8x8xf32>
    %64 = vector.shape_cast %63 : vector<1x1x8x8xf32> to vector<8x8xf32>
    %cst_34 = arith.constant dense<0.000000e+00> : vector<8x128xf32>
    %65 = tpu.matmul %64, %62, %cst_34 {dimension_numbers = #tpu.dot_dimension_numbers<[1], [0], [0], [1], [0, 0, 1, 1], [], []>} : vector<8x8xf32>, vector<8x128xf32>, vector<8x128xf32> -> vector<8x128xf32>
    %c8_i32_35 = arith.constant 8 : i32
    %66 = vector.broadcast %c8_i32_35 : i32 to vector<1x128xi32>
    %67 = arith.cmpi sge, %42, %66 : vector<1x128xi32>
    %cst_36 = arith.constant 0.000000e+00 : f32
    %68 = vector.shape_cast %67 : vector<1x128xi1> to vector<1x128xi1>
    %69 = vector.broadcast %68 : vector<1x128xi1> to vector<8x128xi1>
    %70 = vector.broadcast %cst_36 : f32 to vector<8x128xf32>
    %71 = arith.select %69, %65, %70 : vector<8x128xi1>, vector<8x128xf32>
    %72 = arith.addf %61, %71 : vector<8x128xf32>
    %c7_i32 = arith.constant 7 : i32
    %73 = tpu.dynamic_rotate %9 by %c7_i32 dim 1 : vector<8x128xf32>, i32 -> vector<8x128xf32>
    %c0_37 = arith.constant 0 : index
    %c3 = arith.constant 3 : index
    %c0_38 = arith.constant 0 : index
    %c0_39 = arith.constant 0 : index
    %74 = vector.load %arg3[%c0_37, %c3, %c0_38, %c0_39] : memref<3x12x8x128xf32, #tpu.memory_space<vmem>>, vector<1x1x8x8xf32>
    %75 = vector.shape_cast %74 : vector<1x1x8x8xf32> to vector<8x8xf32>
    %cst_40 = arith.constant dense<0.000000e+00> : vector<8x128xf32>
    %76 = tpu.matmul %75, %73, %cst_40 {dimension_numbers = #tpu.dot_dimension_numbers<[1], [0], [0], [1], [0, 0, 1, 1], [], []>} : vector<8x8xf32>, vector<8x128xf32>, vector<8x128xf32> -> vector<8x128xf32>
    %c6_i32 = arith.constant 6 : i32
    %77 = vector.broadcast %c6_i32 : i32 to vector<1x128xi32>
    %78 = arith.cmpi sle, %26, %77 : vector<1x128xi32>
    %c8_i32_41 = arith.constant 8 : i32
    %79 = vector.broadcast %c8_i32_41 : i32 to vector<1x128xi32>
    %80 = arith.cmpi sge, %42, %79 : vector<1x128xi32>
    %81 = arith.andi %78, %80 : vector<1x128xi1>
    %cst_42 = arith.constant 0.000000e+00 : f32
    %82 = vector.shape_cast %81 : vector<1x128xi1> to vector<1x128xi1>
    %83 = vector.broadcast %82 : vector<1x128xi1> to vector<8x128xi1>
    %84 = vector.broadcast %cst_42 : f32 to vector<8x128xf32>
    %85 = arith.select %83, %76, %84 : vector<8x128xi1>, vector<8x128xf32>
    %86 = arith.addf %72, %85 : vector<8x128xf32>
    %c1_i32_43 = arith.constant 1 : i32
    %87 = tpu.dynamic_rotate %9 by %c1_i32_43 dim 1 : vector<8x128xf32>, i32 -> vector<8x128xf32>
    %c0_44 = arith.constant 0 : index
    %c4 = arith.constant 4 : index
    %c0_45 = arith.constant 0 : index
    %c0_46 = arith.constant 0 : index
    %88 = vector.load %arg3[%c0_44, %c4, %c0_45, %c0_46] : memref<3x12x8x128xf32, #tpu.memory_space<vmem>>, vector<1x1x8x8xf32>
    %89 = vector.shape_cast %88 : vector<1x1x8x8xf32> to vector<8x8xf32>
    %cst_47 = arith.constant dense<0.000000e+00> : vector<8x128xf32>
    %90 = tpu.matmul %89, %87, %cst_47 {dimension_numbers = #tpu.dot_dimension_numbers<[1], [0], [0], [1], [0, 0, 1, 1], [], []>} : vector<8x8xf32>, vector<8x128xf32>, vector<8x128xf32> -> vector<8x128xf32>
    %c1_i32_48 = arith.constant 1 : i32
    %91 = vector.broadcast %c1_i32_48 : i32 to vector<1x128xi32>
    %92 = arith.cmpi sge, %26, %91 : vector<1x128xi32>
    %cst_49 = arith.constant 0.000000e+00 : f32
    %93 = vector.shape_cast %92 : vector<1x128xi1> to vector<1x128xi1>
    %94 = vector.broadcast %93 : vector<1x128xi1> to vector<8x128xi1>
    %95 = vector.broadcast %cst_49 : f32 to vector<8x128xf32>
    %96 = arith.select %94, %90, %95 : vector<8x128xi1>, vector<8x128xf32>
    %97 = arith.addf %86, %96 : vector<8x128xf32>
    %c127_i32 = arith.constant 127 : i32
    %98 = tpu.dynamic_rotate %9 by %c127_i32 dim 1 : vector<8x128xf32>, i32 -> vector<8x128xf32>
    %c0_50 = arith.constant 0 : index
    %c6 = arith.constant 6 : index
    %c0_51 = arith.constant 0 : index
    %c0_52 = arith.constant 0 : index
    %99 = vector.load %arg3[%c0_50, %c6, %c0_51, %c0_52] : memref<3x12x8x128xf32, #tpu.memory_space<vmem>>, vector<1x1x8x8xf32>
    %100 = vector.shape_cast %99 : vector<1x1x8x8xf32> to vector<8x8xf32>
    %cst_53 = arith.constant dense<0.000000e+00> : vector<8x128xf32>
    %101 = tpu.matmul %100, %98, %cst_53 {dimension_numbers = #tpu.dot_dimension_numbers<[1], [0], [0], [1], [0, 0, 1, 1], [], []>} : vector<8x8xf32>, vector<8x128xf32>, vector<8x128xf32> -> vector<8x128xf32>
    %c6_i32_54 = arith.constant 6 : i32
    %102 = vector.broadcast %c6_i32_54 : i32 to vector<1x128xi32>
    %103 = arith.cmpi sle, %26, %102 : vector<1x128xi32>
    %cst_55 = arith.constant 0.000000e+00 : f32
    %104 = vector.shape_cast %103 : vector<1x128xi1> to vector<1x128xi1>
    %105 = vector.broadcast %104 : vector<1x128xi1> to vector<8x128xi1>
    %106 = vector.broadcast %cst_55 : f32 to vector<8x128xf32>
    %107 = arith.select %105, %101, %106 : vector<8x128xi1>, vector<8x128xf32>
    %108 = arith.addf %97, %107 : vector<8x128xf32>
    %c121_i32 = arith.constant 121 : i32
    %109 = tpu.dynamic_rotate %9 by %c121_i32 dim 1 : vector<8x128xf32>, i32 -> vector<8x128xf32>
    %c0_56 = arith.constant 0 : index
    %c7 = arith.constant 7 : index
    %c0_57 = arith.constant 0 : index
    %c0_58 = arith.constant 0 : index
    %110 = vector.load %arg3[%c0_56, %c7, %c0_57, %c0_58] : memref<3x12x8x128xf32, #tpu.memory_space<vmem>>, vector<1x1x8x8xf32>
    %111 = vector.shape_cast %110 : vector<1x1x8x8xf32> to vector<8x8xf32>
    %cst_59 = arith.constant dense<0.000000e+00> : vector<8x128xf32>
    %112 = tpu.matmul %111, %109, %cst_59 {dimension_numbers = #tpu.dot_dimension_numbers<[1], [0], [0], [1], [0, 0, 1, 1], [], []>} : vector<8x8xf32>, vector<8x128xf32>, vector<8x128xf32> -> vector<8x128xf32>
    %c1_i32_60 = arith.constant 1 : i32
    %113 = vector.broadcast %c1_i32_60 : i32 to vector<1x128xi32>
    %114 = arith.cmpi sge, %26, %113 : vector<1x128xi32>
    %c56_i32 = arith.constant 56 : i32
    %115 = vector.broadcast %c56_i32 : i32 to vector<1x128xi32>
    %116 = arith.cmpi slt, %42, %115 : vector<1x128xi32>
    %117 = arith.andi %114, %116 : vector<1x128xi1>
    %cst_61 = arith.constant 0.000000e+00 : f32
    %118 = vector.shape_cast %117 : vector<1x128xi1> to vector<1x128xi1>
    %119 = vector.broadcast %118 : vector<1x128xi1> to vector<8x128xi1>
    %120 = vector.broadcast %cst_61 : f32 to vector<8x128xf32>
    %121 = arith.select %119, %112, %120 : vector<8x128xi1>, vector<8x128xf32>
    %122 = arith.addf %108, %121 : vector<8x128xf32>
    %c120_i32 = arith.constant 120 : i32
    %123 = tpu.dynamic_rotate %9 by %c120_i32 dim 1 : vector<8x128xf32>, i32 -> vector<8x128xf32>
    %c0_62 = arith.constant 0 : index
    %c8 = arith.constant 8 : index
    %c0_63 = arith.constant 0 : index
    %c0_64 = arith.constant 0 : index
    %124 = vector.load %arg3[%c0_62, %c8, %c0_63, %c0_64] : memref<3x12x8x128xf32, #tpu.memory_space<vmem>>, vector<1x1x8x8xf32>
    %125 = vector.shape_cast %124 : vector<1x1x8x8xf32> to vector<8x8xf32>
    %cst_65 = arith.constant dense<0.000000e+00> : vector<8x128xf32>
    %126 = tpu.matmul %125, %123, %cst_65 {dimension_numbers = #tpu.dot_dimension_numbers<[1], [0], [0], [1], [0, 0, 1, 1], [], []>} : vector<8x8xf32>, vector<8x128xf32>, vector<8x128xf32> -> vector<8x128xf32>
    %c56_i32_66 = arith.constant 56 : i32
    %127 = vector.broadcast %c56_i32_66 : i32 to vector<1x128xi32>
    %128 = arith.cmpi slt, %42, %127 : vector<1x128xi32>
    %cst_67 = arith.constant 0.000000e+00 : f32
    %129 = vector.shape_cast %128 : vector<1x128xi1> to vector<1x128xi1>
    %130 = vector.broadcast %129 : vector<1x128xi1> to vector<8x128xi1>
    %131 = vector.broadcast %cst_67 : f32 to vector<8x128xf32>
    %132 = arith.select %130, %126, %131 : vector<8x128xi1>, vector<8x128xf32>
    %133 = arith.addf %122, %132 : vector<8x128xf32>
    %c119_i32 = arith.constant 119 : i32
    %134 = tpu.dynamic_rotate %9 by %c119_i32 dim 1 : vector<8x128xf32>, i32 -> vector<8x128xf32>
    %c0_68 = arith.constant 0 : index
    %c9 = arith.constant 9 : index
    %c0_69 = arith.constant 0 : index
    %c0_70 = arith.constant 0 : index
    %135 = vector.load %arg3[%c0_68, %c9, %c0_69, %c0_70] : memref<3x12x8x128xf32, #tpu.memory_space<vmem>>, vector<1x1x8x8xf32>
    %136 = vector.shape_cast %135 : vector<1x1x8x8xf32> to vector<8x8xf32>
    %cst_71 = arith.constant dense<0.000000e+00> : vector<8x128xf32>
    %137 = tpu.matmul %136, %134, %cst_71 {dimension_numbers = #tpu.dot_dimension_numbers<[1], [0], [0], [1], [0, 0, 1, 1], [], []>} : vector<8x8xf32>, vector<8x128xf32>, vector<8x128xf32> -> vector<8x128xf32>
    %c6_i32_72 = arith.constant 6 : i32
    %138 = vector.broadcast %c6_i32_72 : i32 to vector<1x128xi32>
    %139 = arith.cmpi sle, %26, %138 : vector<1x128xi32>
    %c56_i32_73 = arith.constant 56 : i32
    %140 = vector.broadcast %c56_i32_73 : i32 to vector<1x128xi32>
    %141 = arith.cmpi slt, %42, %140 : vector<1x128xi32>
    %142 = arith.andi %139, %141 : vector<1x128xi1>
    %cst_74 = arith.constant 0.000000e+00 : f32
    %143 = vector.shape_cast %142 : vector<1x128xi1> to vector<1x128xi1>
    %144 = vector.broadcast %143 : vector<1x128xi1> to vector<8x128xi1>
    %145 = vector.broadcast %cst_74 : f32 to vector<8x128xf32>
    %146 = arith.select %144, %137, %145 : vector<8x128xi1>, vector<8x128xf32>
    %147 = arith.addf %133, %146 : vector<8x128xf32>
    %cst_75 = arith.constant 0.000000e+00 : f32
    %148 = vector.broadcast %cst_75 : f32 to vector<8x128xf32>
    %149 = arith.maximumf %147, %148 : vector<8x128xf32>
    %c0_76 = arith.constant 0 : index
    %c0_77 = arith.constant 0 : index
    %150 = vector.load %arg6[%c0_76, %c0_77] : memref<8x128xf32, #tpu.memory_space<vmem>>, vector<8x128xf32>
    tpu.vector_store %arg6[%c0_76, %c0_77], %149 {strides = array<i32>} : memref<8x128xf32, #tpu.memory_space<vmem>>, vector<8x128xf32>,
    %c0_78 = arith.constant 0 : index
    %c0_79 = arith.constant 0 : index
    %151 = vector.load %arg4[%c0_78, %c0_79] : memref<128x512xbf16, #tpu.memory_space<vmem>>, vector<128x512xbf16>
    %152 = arith.extf %151 : vector<128x512xbf16> to vector<128x512xf32>
    %cst_80 = arith.constant dense<0.000000e+00> : vector<8x512xf32>
    %153 = tpu.matmul %149, %152, %cst_80 {dimension_numbers = #tpu.dot_dimension_numbers<[1], [0], [0], [1], [0, 0, 1, 1], [], []>} : vector<8x128xf32>, vector<128x512xf32>, vector<8x512xf32> -> vector<8x512xf32>
    %c1_81 = arith.constant 1 : index
    %c0_82 = arith.constant 0 : index
    %c0_83 = arith.constant 0 : index
    %c0_84 = arith.constant 0 : index
    %154 = vector.load %arg3[%c1_81, %c0_82, %c0_83, %c0_84] : memref<3x12x8x128xf32, #tpu.memory_space<vmem>>, vector<1x1x8x8xf32>
    %155 = vector.shape_cast %154 : vector<1x1x8x8xf32> to vector<8x8xf32>
    %c1_85 = arith.constant 1 : index
    %c10_86 = arith.constant 10 : index
    %c0_87 = arith.constant 0 : index
    %c0_88 = arith.constant 0 : index
    %156 = vector.load %arg3[%c1_85, %c10_86, %c0_87, %c0_88] : memref<3x12x8x128xf32, #tpu.memory_space<vmem>>, vector<1x1x8x1xf32>
    %157 = vector.shape_cast %156 : vector<1x1x8x1xf32> to vector<8x1xf32>
    %c1_89 = arith.constant 1 : index
    %c11_90 = arith.constant 11 : index
    %c0_91 = arith.constant 0 : index
    %c0_92 = arith.constant 0 : index
    %158 = vector.load %arg3[%c1_89, %c11_90, %c0_91, %c0_92] : memref<3x12x8x128xf32, #tpu.memory_space<vmem>>, vector<1x1x8x1xf32>
    %159 = vector.shape_cast %158 : vector<1x1x8x1xf32> to vector<8x1xf32>
    %c0_93 = arith.constant 0 : index
    %c0_94 = arith.constant 0 : index
    %160 = vector.load %arg1[%c0_93, %c0_94] : memref<8x512xf32, #tpu.memory_space<vmem>>, vector<8x512xf32>
    %cst_95 = arith.constant dense<0.000000e+00> : vector<8x512xf32>
    %161 = tpu.matmul %155, %160, %cst_95 {dimension_numbers = #tpu.dot_dimension_numbers<[1], [0], [0], [1], [0, 0, 1, 1], [], []>} : vector<8x8xf32>, vector<8x512xf32>, vector<8x512xf32> -> vector<8x512xf32>
    %162 = vector.broadcast %157 : vector<8x1xf32> to vector<8x512xf32>
    %163 = arith.addf %161, %162 : vector<8x512xf32>
    %164 = arith.addf %163, %153 : vector<8x512xf32>
    %165 = tpu.iota {dimensions = array<i32: 1>} : vector<1x512xi32>
    %c16_i32 = arith.constant 16 : i32
    %c0_i32_96 = arith.constant 0 : i32
    %166 = arith.cmpi eq, %c16_i32, %c0_i32_96 : i32
    %c1_i32_97 = arith.constant 1 : i32
    %167 = arith.select %166, %c1_i32_97, %c16_i32 : i32
    %168 = vector.broadcast %167 : i32 to vector<1x512xi32>
    %169 = arith.remsi %165, %168 : vector<1x512xi32>
    %c0_i32_98 = arith.constant 0 : i32
    %170 = vector.broadcast %c0_i32_98 : i32 to vector<1x512xi32>
    %171 = arith.cmpi ne, %169, %170 : vector<1x512xi32>
    %c0_i32_99 = arith.constant 0 : i32
    %172 = vector.broadcast %c0_i32_99 : i32 to vector<1x512xi32>
    %173 = arith.cmpi slt, %169, %172 : vector<1x512xi32>
    %c0_i32_100 = arith.constant 0 : i32
    %174 = arith.cmpi slt, %167, %c0_i32_100 : i32
    %175 = vector.broadcast %174 : i1 to vector<1x512xi1>
    %176 = vector.broadcast %175 : vector<1x512xi1> to vector<1x512xi1>
    %177 = arith.xori %173, %176 : vector<1x512xi1>
    %178 = arith.andi %177, %171 : vector<1x512xi1>
    %179 = vector.broadcast %167 : i32 to vector<1x512xi32>
    %180 = arith.addi %169, %179 : vector<1x512xi32>
    %181 = arith.select %178, %180, %169 : vector<1x512xi1>, vector<1x512xi32>
    %c256_i32 = arith.constant 256 : i32
    %c0_i32_101 = arith.constant 0 : i32
    %182 = arith.cmpi eq, %c256_i32, %c0_i32_101 : i32
    %c1_i32_102 = arith.constant 1 : i32
    %183 = arith.select %182, %c1_i32_102, %c256_i32 : i32
    %184 = vector.broadcast %183 : i32 to vector<1x512xi32>
    %185 = arith.remsi %165, %184 : vector<1x512xi32>
    %c0_i32_103 = arith.constant 0 : i32
    %186 = vector.broadcast %c0_i32_103 : i32 to vector<1x512xi32>
    %187 = arith.cmpi ne, %185, %186 : vector<1x512xi32>
    %c0_i32_104 = arith.constant 0 : i32
    %188 = vector.broadcast %c0_i32_104 : i32 to vector<1x512xi32>
    %189 = arith.cmpi slt, %185, %188 : vector<1x512xi32>
    %c0_i32_105 = arith.constant 0 : i32
    %190 = arith.cmpi slt, %183, %c0_i32_105 : i32
    %191 = vector.broadcast %190 : i1 to vector<1x512xi1>
    %192 = vector.broadcast %191 : vector<1x512xi1> to vector<1x512xi1>
    %193 = arith.xori %189, %192 : vector<1x512xi1>
    %194 = arith.andi %193, %187 : vector<1x512xi1>
    %195 = vector.broadcast %183 : i32 to vector<1x512xi32>
    %196 = arith.addi %185, %195 : vector<1x512xi32>
    %197 = arith.select %194, %196, %185 : vector<1x512xi1>, vector<1x512xi32>
    %c1_106 = arith.constant 1 : index
    %c5_107 = arith.constant 5 : index
    %c0_108 = arith.constant 0 : index
    %c0_109 = arith.constant 0 : index
    %198 = vector.load %arg3[%c1_106, %c5_107, %c0_108, %c0_109] : memref<3x12x8x128xf32, #tpu.memory_space<vmem>>, vector<1x1x8x8xf32>
    %199 = vector.shape_cast %198 : vector<1x1x8x8xf32> to vector<8x8xf32>
    %cst_110 = arith.constant dense<0.000000e+00> : vector<8x512xf32>
    %200 = tpu.matmul %199, %164, %cst_110 {dimension_numbers = #tpu.dot_dimension_numbers<[1], [0], [0], [1], [0, 0, 1, 1], [], []>} : vector<8x8xf32>, vector<8x512xf32>, vector<8x512xf32> -> vector<8x512xf32>
    %201 = vector.broadcast %159 : vector<8x1xf32> to vector<8x512xf32>
    %202 = arith.addf %200, %201 : vector<8x512xf32>
    %c17_i32 = arith.constant 17 : i32
    %203 = tpu.dynamic_rotate %164 by %c17_i32 dim 1 : vector<8x512xf32>, i32 -> vector<8x512xf32>
    %c1_111 = arith.constant 1 : index
    %c1_112 = arith.constant 1 : index
    %c0_113 = arith.constant 0 : index
    %c0_114 = arith.constant 0 : index
    %204 = vector.load %arg3[%c1_111, %c1_112, %c0_113, %c0_114] : memref<3x12x8x128xf32, #tpu.memory_space<vmem>>, vector<1x1x8x8xf32>
    %205 = vector.shape_cast %204 : vector<1x1x8x8xf32> to vector<8x8xf32>
    %cst_115 = arith.constant dense<0.000000e+00> : vector<8x512xf32>
    %206 = tpu.matmul %205, %203, %cst_115 {dimension_numbers = #tpu.dot_dimension_numbers<[1], [0], [0], [1], [0, 0, 1, 1], [], []>} : vector<8x8xf32>, vector<8x512xf32>, vector<8x512xf32> -> vector<8x512xf32>
    %c1_i32_116 = arith.constant 1 : i32
    %207 = vector.broadcast %c1_i32_116 : i32 to vector<1x512xi32>
    %208 = arith.cmpi sge, %181, %207 : vector<1x512xi32>
    %c16_i32_117 = arith.constant 16 : i32
    %209 = vector.broadcast %c16_i32_117 : i32 to vector<1x512xi32>
    %210 = arith.cmpi sge, %197, %209 : vector<1x512xi32>
    %211 = arith.andi %208, %210 : vector<1x512xi1>
    %cst_118 = arith.constant 0.000000e+00 : f32
    %212 = vector.shape_cast %211 : vector<1x512xi1> to vector<1x512xi1>
    %213 = vector.broadcast %212 : vector<1x512xi1> to vector<8x512xi1>
    %214 = vector.broadcast %cst_118 : f32 to vector<8x512xf32>
    %215 = arith.select %213, %206, %214 : vector<8x512xi1>, vector<8x512xf32>
    %216 = arith.addf %202, %215 : vector<8x512xf32>
    %c16_i32_119 = arith.constant 16 : i32
    %217 = tpu.dynamic_rotate %164 by %c16_i32_119 dim 1 : vector<8x512xf32>, i32 -> vector<8x512xf32>
    %c1_120 = arith.constant 1 : index
    %c2_121 = arith.constant 2 : index
    %c0_122 = arith.constant 0 : index
    %c0_123 = arith.constant 0 : index
    %218 = vector.load %arg3[%c1_120, %c2_121, %c0_122, %c0_123] : memref<3x12x8x128xf32, #tpu.memory_space<vmem>>, vector<1x1x8x8xf32>
    %219 = vector.shape_cast %218 : vector<1x1x8x8xf32> to vector<8x8xf32>
    %cst_124 = arith.constant dense<0.000000e+00> : vector<8x512xf32>
    %220 = tpu.matmul %219, %217, %cst_124 {dimension_numbers = #tpu.dot_dimension_numbers<[1], [0], [0], [1], [0, 0, 1, 1], [], []>} : vector<8x8xf32>, vector<8x512xf32>, vector<8x512xf32> -> vector<8x512xf32>
    %c16_i32_125 = arith.constant 16 : i32
    %221 = vector.broadcast %c16_i32_125 : i32 to vector<1x512xi32>
    %222 = arith.cmpi sge, %197, %221 : vector<1x512xi32>
    %cst_126 = arith.constant 0.000000e+00 : f32
    %223 = vector.shape_cast %222 : vector<1x512xi1> to vector<1x512xi1>
    %224 = vector.broadcast %223 : vector<1x512xi1> to vector<8x512xi1>
    %225 = vector.broadcast %cst_126 : f32 to vector<8x512xf32>
    %226 = arith.select %224, %220, %225 : vector<8x512xi1>, vector<8x512xf32>
    %227 = arith.addf %216, %226 : vector<8x512xf32>
    %c15_i32 = arith.constant 15 : i32
    %228 = tpu.dynamic_rotate %164 by %c15_i32 dim 1 : vector<8x512xf32>, i32 -> vector<8x512xf32>
    %c1_127 = arith.constant 1 : index
    %c3_128 = arith.constant 3 : index
    %c0_129 = arith.constant 0 : index
    %c0_130 = arith.constant 0 : index
    %229 = vector.load %arg3[%c1_127, %c3_128, %c0_129, %c0_130] : memref<3x12x8x128xf32, #tpu.memory_space<vmem>>, vector<1x1x8x8xf32>
    %230 = vector.shape_cast %229 : vector<1x1x8x8xf32> to vector<8x8xf32>
    %cst_131 = arith.constant dense<0.000000e+00> : vector<8x512xf32>
    %231 = tpu.matmul %230, %228, %cst_131 {dimension_numbers = #tpu.dot_dimension_numbers<[1], [0], [0], [1], [0, 0, 1, 1], [], []>} : vector<8x8xf32>, vector<8x512xf32>, vector<8x512xf32> -> vector<8x512xf32>
    %c14_i32 = arith.constant 14 : i32
    %232 = vector.broadcast %c14_i32 : i32 to vector<1x512xi32>
    %233 = arith.cmpi sle, %181, %232 : vector<1x512xi32>
    %c16_i32_132 = arith.constant 16 : i32
    %234 = vector.broadcast %c16_i32_132 : i32 to vector<1x512xi32>
    %235 = arith.cmpi sge, %197, %234 : vector<1x512xi32>
    %236 = arith.andi %233, %235 : vector<1x512xi1>
    %cst_133 = arith.constant 0.000000e+00 : f32
    %237 = vector.shape_cast %236 : vector<1x512xi1> to vector<1x512xi1>
    %238 = vector.broadcast %237 : vector<1x512xi1> to vector<8x512xi1>
    %239 = vector.broadcast %cst_133 : f32 to vector<8x512xf32>
    %240 = arith.select %238, %231, %239 : vector<8x512xi1>, vector<8x512xf32>
    %241 = arith.addf %227, %240 : vector<8x512xf32>
    %c1_i32_134 = arith.constant 1 : i32
    %242 = tpu.dynamic_rotate %164 by %c1_i32_134 dim 1 : vector<8x512xf32>, i32 -> vector<8x512xf32>
    %c1_135 = arith.constant 1 : index
    %c4_136 = arith.constant 4 : index
    %c0_137 = arith.constant 0 : index
    %c0_138 = arith.constant 0 : index
    %243 = vector.load %arg3[%c1_135, %c4_136, %c0_137, %c0_138] : memref<3x12x8x128xf32, #tpu.memory_space<vmem>>, vector<1x1x8x8xf32>
    %244 = vector.shape_cast %243 : vector<1x1x8x8xf32> to vector<8x8xf32>
    %cst_139 = arith.constant dense<0.000000e+00> : vector<8x512xf32>
    %245 = tpu.matmul %244, %242, %cst_139 {dimension_numbers = #tpu.dot_dimension_numbers<[1], [0], [0], [1], [0, 0, 1, 1], [], []>} : vector<8x8xf32>, vector<8x512xf32>, vector<8x512xf32> -> vector<8x512xf32>
    %c1_i32_140 = arith.constant 1 : i32
    %246 = vector.broadcast %c1_i32_140 : i32 to vector<1x512xi32>
    %247 = arith.cmpi sge, %181, %246 : vector<1x512xi32>
    %cst_141 = arith.constant 0.000000e+00 : f32
    %248 = vector.shape_cast %247 : vector<1x512xi1> to vector<1x512xi1>
    %249 = vector.broadcast %248 : vector<1x512xi1> to vector<8x512xi1>
    %250 = vector.broadcast %cst_141 : f32 to vector<8x512xf32>
    %251 = arith.select %249, %245, %250 : vector<8x512xi1>, vector<8x512xf32>
    %252 = arith.addf %241, %251 : vector<8x512xf32>
    %c511_i32 = arith.constant 511 : i32
    %253 = tpu.dynamic_rotate %164 by %c511_i32 dim 1 : vector<8x512xf32>, i32 -> vector<8x512xf32>
    %c1_142 = arith.constant 1 : index
    %c6_143 = arith.constant 6 : index
    %c0_144 = arith.constant 0 : index
    %c0_145 = arith.constant 0 : index
    %254 = vector.load %arg3[%c1_142, %c6_143, %c0_144, %c0_145] : memref<3x12x8x128xf32, #tpu.memory_space<vmem>>, vector<1x1x8x8xf32>
    %255 = vector.shape_cast %254 : vector<1x1x8x8xf32> to vector<8x8xf32>
    %cst_146 = arith.constant dense<0.000000e+00> : vector<8x512xf32>
    %256 = tpu.matmul %255, %253, %cst_146 {dimension_numbers = #tpu.dot_dimension_numbers<[1], [0], [0], [1], [0, 0, 1, 1], [], []>} : vector<8x8xf32>, vector<8x512xf32>, vector<8x512xf32> -> vector<8x512xf32>
    %c14_i32_147 = arith.constant 14 : i32
    %257 = vector.broadcast %c14_i32_147 : i32 to vector<1x512xi32>
    %258 = arith.cmpi sle, %181, %257 : vector<1x512xi32>
    %cst_148 = arith.constant 0.000000e+00 : f32
    %259 = vector.shape_cast %258 : vector<1x512xi1> to vector<1x512xi1>
    %260 = vector.broadcast %259 : vector<1x512xi1> to vector<8x512xi1>
    %261 = vector.broadcast %cst_148 : f32 to vector<8x512xf32>
    %262 = arith.select %260, %256, %261 : vector<8x512xi1>, vector<8x512xf32>
    %263 = arith.addf %252, %262 : vector<8x512xf32>
    %c497_i32 = arith.constant 497 : i32
    %264 = tpu.dynamic_rotate %164 by %c497_i32 dim 1 : vector<8x512xf32>, i32 -> vector<8x512xf32>
    %c1_149 = arith.constant 1 : index
    %c7_150 = arith.constant 7 : index
    %c0_151 = arith.constant 0 : index
    %c0_152 = arith.constant 0 : index
    %265 = vector.load %arg3[%c1_149, %c7_150, %c0_151, %c0_152] : memref<3x12x8x128xf32, #tpu.memory_space<vmem>>, vector<1x1x8x8xf32>
    %266 = vector.shape_cast %265 : vector<1x1x8x8xf32> to vector<8x8xf32>
    %cst_153 = arith.constant dense<0.000000e+00> : vector<8x512xf32>
    %267 = tpu.matmul %266, %264, %cst_153 {dimension_numbers = #tpu.dot_dimension_numbers<[1], [0], [0], [1], [0, 0, 1, 1], [], []>} : vector<8x8xf32>, vector<8x512xf32>, vector<8x512xf32> -> vector<8x512xf32>
    %c1_i32_154 = arith.constant 1 : i32
    %268 = vector.broadcast %c1_i32_154 : i32 to vector<1x512xi32>
    %269 = arith.cmpi sge, %181, %268 : vector<1x512xi32>
    %c240_i32 = arith.constant 240 : i32
    %270 = vector.broadcast %c240_i32 : i32 to vector<1x512xi32>
    %271 = arith.cmpi slt, %197, %270 : vector<1x512xi32>
    %272 = arith.andi %269, %271 : vector<1x512xi1>
    %cst_155 = arith.constant 0.000000e+00 : f32
    %273 = vector.shape_cast %272 : vector<1x512xi1> to vector<1x512xi1>
    %274 = vector.broadcast %273 : vector<1x512xi1> to vector<8x512xi1>
    %275 = vector.broadcast %cst_155 : f32 to vector<8x512xf32>
    %276 = arith.select %274, %267, %275 : vector<8x512xi1>, vector<8x512xf32>
    %277 = arith.addf %263, %276 : vector<8x512xf32>
    %c496_i32 = arith.constant 496 : i32
    %278 = tpu.dynamic_rotate %164 by %c496_i32 dim 1 : vector<8x512xf32>, i32 -> vector<8x512xf32>
    %c1_156 = arith.constant 1 : index
    %c8_157 = arith.constant 8 : index
    %c0_158 = arith.constant 0 : index
    %c0_159 = arith.constant 0 : index
    %279 = vector.load %arg3[%c1_156, %c8_157, %c0_158, %c0_159] : memref<3x12x8x128xf32, #tpu.memory_space<vmem>>, vector<1x1x8x8xf32>
    %280 = vector.shape_cast %279 : vector<1x1x8x8xf32> to vector<8x8xf32>
    %cst_160 = arith.constant dense<0.000000e+00> : vector<8x512xf32>
    %281 = tpu.matmul %280, %278, %cst_160 {dimension_numbers = #tpu.dot_dimension_numbers<[1], [0], [0], [1], [0, 0, 1, 1], [], []>} : vector<8x8xf32>, vector<8x512xf32>, vector<8x512xf32> -> vector<8x512xf32>
    %c240_i32_161 = arith.constant 240 : i32
    %282 = vector.broadcast %c240_i32_161 : i32 to vector<1x512xi32>
    %283 = arith.cmpi slt, %197, %282 : vector<1x512xi32>
    %cst_162 = arith.constant 0.000000e+00 : f32
    %284 = vector.shape_cast %283 : vector<1x512xi1> to vector<1x512xi1>
    %285 = vector.broadcast %284 : vector<1x512xi1> to vector<8x512xi1>
    %286 = vector.broadcast %cst_162 : f32 to vector<8x512xf32>
    %287 = arith.select %285, %281, %286 : vector<8x512xi1>, vector<8x512xf32>
    %288 = arith.addf %277, %287 : vector<8x512xf32>
    %c495_i32 = arith.constant 495 : i32
    %289 = tpu.dynamic_rotate %164 by %c495_i32 dim 1 : vector<8x512xf32>, i32 -> vector<8x512xf32>
    %c1_163 = arith.constant 1 : index
    %c9_164 = arith.constant 9 : index
    %c0_165 = arith.constant 0 : index
    %c0_166 = arith.constant 0 : index
    %290 = vector.load %arg3[%c1_163, %c9_164, %c0_165, %c0_166] : memref<3x12x8x128xf32, #tpu.memory_space<vmem>>, vector<1x1x8x8xf32>
    %291 = vector.shape_cast %290 : vector<1x1x8x8xf32> to vector<8x8xf32>
    %cst_167 = arith.constant dense<0.000000e+00> : vector<8x512xf32>
    %292 = tpu.matmul %291, %289, %cst_167 {dimension_numbers = #tpu.dot_dimension_numbers<[1], [0], [0], [1], [0, 0, 1, 1], [], []>} : vector<8x8xf32>, vector<8x512xf32>, vector<8x512xf32> -> vector<8x512xf32>
    %c14_i32_168 = arith.constant 14 : i32
    %293 = vector.broadcast %c14_i32_168 : i32 to vector<1x512xi32>
    %294 = arith.cmpi sle, %181, %293 : vector<1x512xi32>
    %c240_i32_169 = arith.constant 240 : i32
    %295 = vector.broadcast %c240_i32_169 : i32 to vector<1x512xi32>
    %296 = arith.cmpi slt, %197, %295 : vector<1x512xi32>
    %297 = arith.andi %294, %296 : vector<1x512xi1>
    %cst_170 = arith.constant 0.000000e+00 : f32
    %298 = vector.shape_cast %297 : vector<1x512xi1> to vector<1x512xi1>
    %299 = vector.broadcast %298 : vector<1x512xi1> to vector<8x512xi1>
    %300 = vector.broadcast %cst_170 : f32 to vector<8x512xf32>
    %301 = arith.select %299, %292, %300 : vector<8x512xi1>, vector<8x512xf32>
    %302 = arith.addf %288, %301 : vector<8x512xf32>
    %cst_171 = arith.constant 0.000000e+00 : f32
    %303 = vector.broadcast %cst_171 : f32 to vector<8x512xf32>
    %304 = arith.maximumf %302, %303 : vector<8x512xf32>
    %c0_172 = arith.constant 0 : index
    %c0_173 = arith.constant 0 : index
    %305 = vector.load %arg7[%c0_172, %c0_173] : memref<8x512xf32, #tpu.memory_space<vmem>>, vector<8x512xf32>
    tpu.vector_store %arg7[%c0_172, %c0_173], %304 {strides = array<i32>} : memref<8x512xf32, #tpu.memory_space<vmem>>, vector<8x512xf32>,
    %c0_174 = arith.constant 0 : index
    %c0_175 = arith.constant 0 : index
    %306 = vector.load %arg5[%c0_174, %c0_175] : memref<256x1024xbf16, #tpu.memory_space<vmem>>, vector<256x1024xbf16>
    %307 = arith.extf %306 : vector<256x1024xbf16> to vector<256x1024xf32>
    %308 = vector.extract_strided_slice %304 {offsets = [0, 0], sizes = [8, 256], strides = [1, 1]} : vector<8x512xf32> to vector<8x256xf32>
    %cst_176 = arith.constant dense<0.000000e+00> : vector<8x1024xf32>
    %309 = tpu.matmul %308, %307, %cst_176 {dimension_numbers = #tpu.dot_dimension_numbers<[1], [0], [0], [1], [0, 0, 1, 1], [], []>} : vector<8x256xf32>, vector<256x1024xf32>, vector<8x1024xf32> -> vector<8x1024xf32>
    %310 = vector.extract_strided_slice %304 {offsets = [0, 256], sizes = [8, 256], strides = [1, 1]} : vector<8x512xf32> to vector<8x256xf32>
    %cst_177 = arith.constant dense<0.000000e+00> : vector<8x1024xf32>
    %311 = tpu.matmul %310, %307, %cst_177 {dimension_numbers = #tpu.dot_dimension_numbers<[1], [0], [0], [1], [0, 0, 1, 1], [], []>} : vector<8x256xf32>, vector<256x1024xf32>, vector<8x1024xf32> -> vector<8x1024xf32>
    %312 = tpu.concatenate %309, %311 in 1 : vector<8x1024xf32>, vector<8x1024xf32> -> vector<8x2048xf32>
    %c2_178 = arith.constant 2 : index
    %c0_179 = arith.constant 0 : index
    %c0_180 = arith.constant 0 : index
    %c0_181 = arith.constant 0 : index
    %313 = vector.load %arg3[%c2_178, %c0_179, %c0_180, %c0_181] : memref<3x12x8x128xf32, #tpu.memory_space<vmem>>, vector<1x1x8x4xf32>
    %314 = vector.shape_cast %313 : vector<1x1x8x4xf32> to vector<8x4xf32>
    %c2_182 = arith.constant 2 : index
    %c10_183 = arith.constant 10 : index
    %c0_184 = arith.constant 0 : index
    %c0_185 = arith.constant 0 : index
    %315 = vector.load %arg3[%c2_182, %c10_183, %c0_184, %c0_185] : memref<3x12x8x128xf32, #tpu.memory_space<vmem>>, vector<1x1x8x1xf32>
    %316 = vector.shape_cast %315 : vector<1x1x8x1xf32> to vector<8x1xf32>
    %c2_186 = arith.constant 2 : index
    %c11_187 = arith.constant 11 : index
    %c0_188 = arith.constant 0 : index
    %c0_189 = arith.constant 0 : index
    %317 = vector.load %arg3[%c2_186, %c11_187, %c0_188, %c0_189] : memref<3x12x8x128xf32, #tpu.memory_space<vmem>>, vector<1x1x8x1xf32>
    %318 = vector.shape_cast %317 : vector<1x1x8x1xf32> to vector<8x1xf32>
    %c0_190 = arith.constant 0 : index
    %c0_191 = arith.constant 0 : index
    %319 = vector.load %arg2[%c0_190, %c0_191] : memref<4x2048xf32, #tpu.memory_space<vmem>>, vector<4x2048xf32>
    %cst_192 = arith.constant dense<0.000000e+00> : vector<8x2048xf32>
    %320 = tpu.matmul %314, %319, %cst_192 {dimension_numbers = #tpu.dot_dimension_numbers<[1], [0], [0], [1], [0, 0, 1, 1], [], []>} : vector<8x4xf32>, vector<4x2048xf32>, vector<8x2048xf32> -> vector<8x2048xf32>
    %321 = vector.broadcast %316 : vector<8x1xf32> to vector<8x2048xf32>
    %322 = arith.addf %320, %321 : vector<8x2048xf32>
    %323 = arith.addf %322, %312 : vector<8x2048xf32>
    %324 = tpu.iota {dimensions = array<i32: 1>} : vector<1x2048xi32>
    %c32_i32 = arith.constant 32 : i32
    %c0_i32_193 = arith.constant 0 : i32
    %325 = arith.cmpi eq, %c32_i32, %c0_i32_193 : i32
    %c1_i32_194 = arith.constant 1 : i32
    %326 = arith.select %325, %c1_i32_194, %c32_i32 : i32
    %327 = vector.broadcast %326 : i32 to vector<1x2048xi32>
    %328 = arith.remsi %324, %327 : vector<1x2048xi32>
    %c0_i32_195 = arith.constant 0 : i32
    %329 = vector.broadcast %c0_i32_195 : i32 to vector<1x2048xi32>
    %330 = arith.cmpi ne, %328, %329 : vector<1x2048xi32>
    %c0_i32_196 = arith.constant 0 : i32
    %331 = vector.broadcast %c0_i32_196 : i32 to vector<1x2048xi32>
    %332 = arith.cmpi slt, %328, %331 : vector<1x2048xi32>
    %c0_i32_197 = arith.constant 0 : i32
    %333 = arith.cmpi slt, %326, %c0_i32_197 : i32
    %334 = vector.broadcast %333 : i1 to vector<1x2048xi1>
    %335 = vector.broadcast %334 : vector<1x2048xi1> to vector<1x2048xi1>
    %336 = arith.xori %332, %335 : vector<1x2048xi1>
    %337 = arith.andi %336, %330 : vector<1x2048xi1>
    %338 = vector.broadcast %326 : i32 to vector<1x2048xi32>
    %339 = arith.addi %328, %338 : vector<1x2048xi32>
    %340 = arith.select %337, %339, %328 : vector<1x2048xi1>, vector<1x2048xi32>
    %c1024_i32 = arith.constant 1024 : i32
    %c0_i32_198 = arith.constant 0 : i32
    %341 = arith.cmpi eq, %c1024_i32, %c0_i32_198 : i32
    %c1_i32_199 = arith.constant 1 : i32
    %342 = arith.select %341, %c1_i32_199, %c1024_i32 : i32
    %343 = vector.broadcast %342 : i32 to vector<1x2048xi32>
    %344 = arith.remsi %324, %343 : vector<1x2048xi32>
    %c0_i32_200 = arith.constant 0 : i32
    %345 = vector.broadcast %c0_i32_200 : i32 to vector<1x2048xi32>
    %346 = arith.cmpi ne, %344, %345 : vector<1x2048xi32>
    %c0_i32_201 = arith.constant 0 : i32
    %347 = vector.broadcast %c0_i32_201 : i32 to vector<1x2048xi32>
    %348 = arith.cmpi slt, %344, %347 : vector<1x2048xi32>
    %c0_i32_202 = arith.constant 0 : i32
    %349 = arith.cmpi slt, %342, %c0_i32_202 : i32
    %350 = vector.broadcast %349 : i1 to vector<1x2048xi1>
    %351 = vector.broadcast %350 : vector<1x2048xi1> to vector<1x2048xi1>
    %352 = arith.xori %348, %351 : vector<1x2048xi1>
    %353 = arith.andi %352, %346 : vector<1x2048xi1>
    %354 = vector.broadcast %342 : i32 to vector<1x2048xi32>
    %355 = arith.addi %344, %354 : vector<1x2048xi32>
    %356 = arith.select %353, %355, %344 : vector<1x2048xi1>, vector<1x2048xi32>
    %c2_203 = arith.constant 2 : index
    %c5_204 = arith.constant 5 : index
    %c0_205 = arith.constant 0 : index
    %c0_206 = arith.constant 0 : index
    %357 = vector.load %arg3[%c2_203, %c5_204, %c0_205, %c0_206] : memref<3x12x8x128xf32, #tpu.memory_space<vmem>>, vector<1x1x8x8xf32>
    %358 = vector.shape_cast %357 : vector<1x1x8x8xf32> to vector<8x8xf32>
    %cst_207 = arith.constant dense<0.000000e+00> : vector<8x2048xf32>
    %359 = tpu.matmul %358, %323, %cst_207 {dimension_numbers = #tpu.dot_dimension_numbers<[1], [0], [0], [1], [0, 0, 1, 1], [], []>} : vector<8x8xf32>, vector<8x2048xf32>, vector<8x2048xf32> -> vector<8x2048xf32>
    %360 = vector.broadcast %318 : vector<8x1xf32> to vector<8x2048xf32>
    %361 = arith.addf %359, %360 : vector<8x2048xf32>
    %c33_i32 = arith.constant 33 : i32
    %362 = tpu.dynamic_rotate %323 by %c33_i32 dim 1 : vector<8x2048xf32>, i32 -> vector<8x2048xf32>
    %c2_208 = arith.constant 2 : index
    %c1_209 = arith.constant 1 : index
    %c0_210 = arith.constant 0 : index
    %c0_211 = arith.constant 0 : index
    %363 = vector.load %arg3[%c2_208, %c1_209, %c0_210, %c0_211] : memref<3x12x8x128xf32, #tpu.memory_space<vmem>>, vector<1x1x8x8xf32>
    %364 = vector.shape_cast %363 : vector<1x1x8x8xf32> to vector<8x8xf32>
    %cst_212 = arith.constant dense<0.000000e+00> : vector<8x2048xf32>
    %365 = tpu.matmul %364, %362, %cst_212 {dimension_numbers = #tpu.dot_dimension_numbers<[1], [0], [0], [1], [0, 0, 1, 1], [], []>} : vector<8x8xf32>, vector<8x2048xf32>, vector<8x2048xf32> -> vector<8x2048xf32>
    %c1_i32_213 = arith.constant 1 : i32
    %366 = vector.broadcast %c1_i32_213 : i32 to vector<1x2048xi32>
    %367 = arith.cmpi sge, %340, %366 : vector<1x2048xi32>
    %c32_i32_214 = arith.constant 32 : i32
    %368 = vector.broadcast %c32_i32_214 : i32 to vector<1x2048xi32>
    %369 = arith.cmpi sge, %356, %368 : vector<1x2048xi32>
    %370 = arith.andi %367, %369 : vector<1x2048xi1>
    %cst_215 = arith.constant 0.000000e+00 : f32
    %371 = vector.shape_cast %370 : vector<1x2048xi1> to vector<1x2048xi1>
    %372 = vector.broadcast %371 : vector<1x2048xi1> to vector<8x2048xi1>
    %373 = vector.broadcast %cst_215 : f32 to vector<8x2048xf32>
    %374 = arith.select %372, %365, %373 : vector<8x2048xi1>, vector<8x2048xf32>
    %375 = arith.addf %361, %374 : vector<8x2048xf32>
    %c32_i32_216 = arith.constant 32 : i32
    %376 = tpu.dynamic_rotate %323 by %c32_i32_216 dim 1 : vector<8x2048xf32>, i32 -> vector<8x2048xf32>
    %c2_217 = arith.constant 2 : index
    %c2_218 = arith.constant 2 : index
    %c0_219 = arith.constant 0 : index
    %c0_220 = arith.constant 0 : index
    %377 = vector.load %arg3[%c2_217, %c2_218, %c0_219, %c0_220] : memref<3x12x8x128xf32, #tpu.memory_space<vmem>>, vector<1x1x8x8xf32>
    %378 = vector.shape_cast %377 : vector<1x1x8x8xf32> to vector<8x8xf32>
    %cst_221 = arith.constant dense<0.000000e+00> : vector<8x2048xf32>
    %379 = tpu.matmul %378, %376, %cst_221 {dimension_numbers = #tpu.dot_dimension_numbers<[1], [0], [0], [1], [0, 0, 1, 1], [], []>} : vector<8x8xf32>, vector<8x2048xf32>, vector<8x2048xf32> -> vector<8x2048xf32>
    %c32_i32_222 = arith.constant 32 : i32
    %380 = vector.broadcast %c32_i32_222 : i32 to vector<1x2048xi32>
    %381 = arith.cmpi sge, %356, %380 : vector<1x2048xi32>
    %cst_223 = arith.constant 0.000000e+00 : f32
    %382 = vector.shape_cast %381 : vector<1x2048xi1> to vector<1x2048xi1>
    %383 = vector.broadcast %382 : vector<1x2048xi1> to vector<8x2048xi1>
    %384 = vector.broadcast %cst_223 : f32 to vector<8x2048xf32>
    %385 = arith.select %383, %379, %384 : vector<8x2048xi1>, vector<8x2048xf32>
    %386 = arith.addf %375, %385 : vector<8x2048xf32>
    %c31_i32 = arith.constant 31 : i32
    %387 = tpu.dynamic_rotate %323 by %c31_i32 dim 1 : vector<8x2048xf32>, i32 -> vector<8x2048xf32>
    %c2_224 = arith.constant 2 : index
    %c3_225 = arith.constant 3 : index
    %c0_226 = arith.constant 0 : index
    %c0_227 = arith.constant 0 : index
    %388 = vector.load %arg3[%c2_224, %c3_225, %c0_226, %c0_227] : memref<3x12x8x128xf32, #tpu.memory_space<vmem>>, vector<1x1x8x8xf32>
    %389 = vector.shape_cast %388 : vector<1x1x8x8xf32> to vector<8x8xf32>
    %cst_228 = arith.constant dense<0.000000e+00> : vector<8x2048xf32>
    %390 = tpu.matmul %389, %387, %cst_228 {dimension_numbers = #tpu.dot_dimension_numbers<[1], [0], [0], [1], [0, 0, 1, 1], [], []>} : vector<8x8xf32>, vector<8x2048xf32>, vector<8x2048xf32> -> vector<8x2048xf32>
    %c30_i32 = arith.constant 30 : i32
    %391 = vector.broadcast %c30_i32 : i32 to vector<1x2048xi32>
    %392 = arith.cmpi sle, %340, %391 : vector<1x2048xi32>
    %c32_i32_229 = arith.constant 32 : i32
    %393 = vector.broadcast %c32_i32_229 : i32 to vector<1x2048xi32>
    %394 = arith.cmpi sge, %356, %393 : vector<1x2048xi32>
    %395 = arith.andi %392, %394 : vector<1x2048xi1>
    %cst_230 = arith.constant 0.000000e+00 : f32
    %396 = vector.shape_cast %395 : vector<1x2048xi1> to vector<1x2048xi1>
    %397 = vector.broadcast %396 : vector<1x2048xi1> to vector<8x2048xi1>
    %398 = vector.broadcast %cst_230 : f32 to vector<8x2048xf32>
    %399 = arith.select %397, %390, %398 : vector<8x2048xi1>, vector<8x2048xf32>
    %400 = arith.addf %386, %399 : vector<8x2048xf32>
    %c1_i32_231 = arith.constant 1 : i32
    %401 = tpu.dynamic_rotate %323 by %c1_i32_231 dim 1 : vector<8x2048xf32>, i32 -> vector<8x2048xf32>
    %c2_232 = arith.constant 2 : index
    %c4_233 = arith.constant 4 : index
    %c0_234 = arith.constant 0 : index
    %c0_235 = arith.constant 0 : index
    %402 = vector.load %arg3[%c2_232, %c4_233, %c0_234, %c0_235] : memref<3x12x8x128xf32, #tpu.memory_space<vmem>>, vector<1x1x8x8xf32>
    %403 = vector.shape_cast %402 : vector<1x1x8x8xf32> to vector<8x8xf32>
    %cst_236 = arith.constant dense<0.000000e+00> : vector<8x2048xf32>
    %404 = tpu.matmul %403, %401, %cst_236 {dimension_numbers = #tpu.dot_dimension_numbers<[1], [0], [0], [1], [0, 0, 1, 1], [], []>} : vector<8x8xf32>, vector<8x2048xf32>, vector<8x2048xf32> -> vector<8x2048xf32>
    %c1_i32_237 = arith.constant 1 : i32
    %405 = vector.broadcast %c1_i32_237 : i32 to vector<1x2048xi32>
    %406 = arith.cmpi sge, %340, %405 : vector<1x2048xi32>
    %cst_238 = arith.constant 0.000000e+00 : f32
    %407 = vector.shape_cast %406 : vector<1x2048xi1> to vector<1x2048xi1>
    %408 = vector.broadcast %407 : vector<1x2048xi1> to vector<8x2048xi1>
    %409 = vector.broadcast %cst_238 : f32 to vector<8x2048xf32>
    %410 = arith.select %408, %404, %409 : vector<8x2048xi1>, vector<8x2048xf32>
    %411 = arith.addf %400, %410 : vector<8x2048xf32>
    %c2047_i32 = arith.constant 2047 : i32
    %412 = tpu.dynamic_rotate %323 by %c2047_i32 dim 1 : vector<8x2048xf32>, i32 -> vector<8x2048xf32>
    %c2_239 = arith.constant 2 : index
    %c6_240 = arith.constant 6 : index
    %c0_241 = arith.constant 0 : index
    %c0_242 = arith.constant 0 : index
    %413 = vector.load %arg3[%c2_239, %c6_240, %c0_241, %c0_242] : memref<3x12x8x128xf32, #tpu.memory_space<vmem>>, vector<1x1x8x8xf32>
    %414 = vector.shape_cast %413 : vector<1x1x8x8xf32> to vector<8x8xf32>
    %cst_243 = arith.constant dense<0.000000e+00> : vector<8x2048xf32>
    %415 = tpu.matmul %414, %412, %cst_243 {dimension_numbers = #tpu.dot_dimension_numbers<[1], [0], [0], [1], [0, 0, 1, 1], [], []>} : vector<8x8xf32>, vector<8x2048xf32>, vector<8x2048xf32> -> vector<8x2048xf32>
    %c30_i32_244 = arith.constant 30 : i32
    %416 = vector.broadcast %c30_i32_244 : i32 to vector<1x2048xi32>
    %417 = arith.cmpi sle, %340, %416 : vector<1x2048xi32>
    %cst_245 = arith.constant 0.000000e+00 : f32
    %418 = vector.shape_cast %417 : vector<1x2048xi1> to vector<1x2048xi1>
    %419 = vector.broadcast %418 : vector<1x2048xi1> to vector<8x2048xi1>
    %420 = vector.broadcast %cst_245 : f32 to vector<8x2048xf32>
    %421 = arith.select %419, %415, %420 : vector<8x2048xi1>, vector<8x2048xf32>
    %422 = arith.addf %411, %421 : vector<8x2048xf32>
    %c2017_i32 = arith.constant 2017 : i32
    %423 = tpu.dynamic_rotate %323 by %c2017_i32 dim 1 : vector<8x2048xf32>, i32 -> vector<8x2048xf32>
    %c2_246 = arith.constant 2 : index
    %c7_247 = arith.constant 7 : index
    %c0_248 = arith.constant 0 : index
    %c0_249 = arith.constant 0 : index
    %424 = vector.load %arg3[%c2_246, %c7_247, %c0_248, %c0_249] : memref<3x12x8x128xf32, #tpu.memory_space<vmem>>, vector<1x1x8x8xf32>
    %425 = vector.shape_cast %424 : vector<1x1x8x8xf32> to vector<8x8xf32>
    %cst_250 = arith.constant dense<0.000000e+00> : vector<8x2048xf32>
    %426 = tpu.matmul %425, %423, %cst_250 {dimension_numbers = #tpu.dot_dimension_numbers<[1], [0], [0], [1], [0, 0, 1, 1], [], []>} : vector<8x8xf32>, vector<8x2048xf32>, vector<8x2048xf32> -> vector<8x2048xf32>
    %c1_i32_251 = arith.constant 1 : i32
    %427 = vector.broadcast %c1_i32_251 : i32 to vector<1x2048xi32>
    %428 = arith.cmpi sge, %340, %427 : vector<1x2048xi32>
    %c992_i32 = arith.constant 992 : i32
    %429 = vector.broadcast %c992_i32 : i32 to vector<1x2048xi32>
    %430 = arith.cmpi slt, %356, %429 : vector<1x2048xi32>
    %431 = arith.andi %428, %430 : vector<1x2048xi1>
    %cst_252 = arith.constant 0.000000e+00 : f32
    %432 = vector.shape_cast %431 : vector<1x2048xi1> to vector<1x2048xi1>
    %433 = vector.broadcast %432 : vector<1x2048xi1> to vector<8x2048xi1>
    %434 = vector.broadcast %cst_252 : f32 to vector<8x2048xf32>
    %435 = arith.select %433, %426, %434 : vector<8x2048xi1>, vector<8x2048xf32>
    %436 = arith.addf %422, %435 : vector<8x2048xf32>
    %c2016_i32 = arith.constant 2016 : i32
    %437 = tpu.dynamic_rotate %323 by %c2016_i32 dim 1 : vector<8x2048xf32>, i32 -> vector<8x2048xf32>
    %c2_253 = arith.constant 2 : index
    %c8_254 = arith.constant 8 : index
    %c0_255 = arith.constant 0 : index
    %c0_256 = arith.constant 0 : index
    %438 = vector.load %arg3[%c2_253, %c8_254, %c0_255, %c0_256] : memref<3x12x8x128xf32, #tpu.memory_space<vmem>>, vector<1x1x8x8xf32>
    %439 = vector.shape_cast %438 : vector<1x1x8x8xf32> to vector<8x8xf32>
    %cst_257 = arith.constant dense<0.000000e+00> : vector<8x2048xf32>
    %440 = tpu.matmul %439, %437, %cst_257 {dimension_numbers = #tpu.dot_dimension_numbers<[1], [0], [0], [1], [0, 0, 1, 1], [], []>} : vector<8x8xf32>, vector<8x2048xf32>, vector<8x2048xf32> -> vector<8x2048xf32>
    %c992_i32_258 = arith.constant 992 : i32
    %441 = vector.broadcast %c992_i32_258 : i32 to vector<1x2048xi32>
    %442 = arith.cmpi slt, %356, %441 : vector<1x2048xi32>
    %cst_259 = arith.constant 0.000000e+00 : f32
    %443 = vector.shape_cast %442 : vector<1x2048xi1> to vector<1x2048xi1>
    %444 = vector.broadcast %443 : vector<1x2048xi1> to vector<8x2048xi1>
    %445 = vector.broadcast %cst_259 : f32 to vector<8x2048xf32>
    %446 = arith.select %444, %440, %445 : vector<8x2048xi1>, vector<8x2048xf32>
    %447 = arith.addf %436, %446 : vector<8x2048xf32>
    %c2015_i32 = arith.constant 2015 : i32
    %448 = tpu.dynamic_rotate %323 by %c2015_i32 dim 1 : vector<8x2048xf32>, i32 -> vector<8x2048xf32>
    %c2_260 = arith.constant 2 : index
    %c9_261 = arith.constant 9 : index
    %c0_262 = arith.constant 0 : index
    %c0_263 = arith.constant 0 : index
    %449 = vector.load %arg3[%c2_260, %c9_261, %c0_262, %c0_263] : memref<3x12x8x128xf32, #tpu.memory_space<vmem>>, vector<1x1x8x8xf32>
    %450 = vector.shape_cast %449 : vector<1x1x8x8xf32> to vector<8x8xf32>
    %cst_264 = arith.constant dense<0.000000e+00> : vector<8x2048xf32>
    %451 = tpu.matmul %450, %448, %cst_264 {dimension_numbers = #tpu.dot_dimension_numbers<[1], [0], [0], [1], [0, 0, 1, 1], [], []>} : vector<8x8xf32>, vector<8x2048xf32>, vector<8x2048xf32> -> vector<8x2048xf32>
    %c30_i32_265 = arith.constant 30 : i32
    %452 = vector.broadcast %c30_i32_265 : i32 to vector<1x2048xi32>
    %453 = arith.cmpi sle, %340, %452 : vector<1x2048xi32>
    %c992_i32_266 = arith.constant 992 : i32
    %454 = vector.broadcast %c992_i32_266 : i32 to vector<1x2048xi32>
    %455 = arith.cmpi slt, %356, %454 : vector<1x2048xi32>
    %456 = arith.andi %453, %455 : vector<1x2048xi1>
    %cst_267 = arith.constant 0.000000e+00 : f32
    %457 = vector.shape_cast %456 : vector<1x2048xi1> to vector<1x2048xi1>
    %458 = vector.broadcast %457 : vector<1x2048xi1> to vector<8x2048xi1>
    %459 = vector.broadcast %cst_267 : f32 to vector<8x2048xf32>
    %460 = arith.select %458, %451, %459 : vector<8x2048xi1>, vector<8x2048xf32>
    %461 = arith.addf %447, %460 : vector<8x2048xf32>
    %cst_268 = arith.constant 0.000000e+00 : f32
    %462 = vector.broadcast %cst_268 : f32 to vector<8x2048xf32>
    %463 = arith.maximumf %461, %462 : vector<8x2048xf32>
    %c0_269 = arith.constant 0 : index
    %c0_270 = arith.constant 0 : index
    %464 = vector.load %arg8[%c0_269, %c0_270] : memref<8x2048xf32, #tpu.memory_space<vmem>>, vector<8x2048xf32>
    tpu.vector_store %arg8[%c0_269, %c0_270], %463 {strides = array<i32>} : memref<8x2048xf32, #tpu.memory_space<vmem>>, vector<8x2048xf32>,
    return
  }
}

</mosaic_0001>

<bundles_post_ra>
// kernel: tpu_custom_call.1
= control target key start
LH: loop header
LB: loop body
LE: loop exit
PB: predicated region body
PF: predicated region fallthrough
CT: control target
= control target key end

     0   :  { %14 = vsyncpa [#allocation3], 0  ;;  %s15773_s0 = inlined_call_operand.hbm [shape: f32[16,128], index: 0, kind: input, shape index: {}]   ;;  %s15774_s1 = inlined_call_operand.hbm [shape: f32[8,512], index: 1, kind: input, shape index: {}]   ;;  %s15775_s2 = inlined_call_operand.hbm [shape: f32[4,2048], index: 2, kind: input, shape index: {}]   ;;  %s15776_s3 = inlined_call_operand.hbm [shape: f32[3,12,8,128], index: 3, kind: input, shape index: {}]   ;;  %s15777_s4 = inlined_call_operand.hbm [shape: bf16[128,512], index: 4, kind: input, shape index: {}]   ;;  %s15778_s5 = inlined_call_operand.hbm [shape: bf16[256,1024], index: 5, kind: input, shape index: {}]   ;;  %s15779_s6 = inlined_call_operand.hbm [shape: f32[8,128], index: 6, kind: output, shape index: {0}]   ;;  %s15780_s7 = inlined_call_operand.hbm [shape: f32[8,512], index: 7, kind: output, shape index: {1}]   ;;  %s15781_s8 = inlined_call_operand.hbm [shape: f32[8,2048], index: 8, kind: output, shape index: {2}]  }
   0x1   :  { %15 = vsyncpa [#allocation6], 0 }
   0x2   :  { %16 = vsyncpa [#allocation9], 0 }
   0x3   :  { %17 = vsyncpa [#allocation12], 0 }
   0x4   :  { %18 = vsyncpa [#allocation4], 0 }
   0x5   :  { %19 = vsyncpa [#allocation15], 0  ;;  %s12817_s27 = smov [#allocation5]   ;;  %s12607_s9 = scalar_lea.hbm %s15774_s1, 512 }
   0x6   :  { %s38_s28 = sshll.u32 %s12817_s27, 4  ;;  %p12608_p0 = scmp.ne.s32.totalorder %s15774_s1, %s12607_s9  ;;  %s39_s28 = int_to_ptr.vmem [resolvable:$true] %s38_s28 }
   0x7   :  { %p12611_p1 = scmp.lt.u32.totalorder %s12607_s9, %s15774_s1 }
   0x9   :  { %p12613_p2 = pnand %p12611_p1, %p12608_p0 }
   0xb   :  { %12616 = shalt.err (!%p12613_p2)
}
   0xc   :  { %s12617_s14 = scalar_lea.vmem %s39_s28, 512  ;;  %p12622_p4 = scmp.lt.s32.totalorder %s39_s28, %s39_s28 }
   0xd   :  { %p12618_p3 = scmp.ne.s32.totalorder %s39_s28, %s12617_s14  ;;  %p12623_p5 = scmp.lt.s32.totalorder %s12617_s14, %s12617_s14 }
   0xf   :  { %p12624_p6 = por %p12623_p5, %p12622_p4 }
  0x11   :  { %p12625_p7 = pnand %p12624_p6, %p12618_p3 }
  0x13   :  { %12628 = shalt.err (!%p12625_p7)
}
  0x14   :  { %41 = dma.hbm_to_vmem [thread:$0]  %s15774_s1, 512, %s39_s28, [#allocation6]  }
  0x15   :  { %s12818_s17 = smov [#allocation8]   ;;  %s12819_s19 = smov [#allocation2]  }
  0x16   :  { %s57_s18 = sshll.u32 %s12818_s17, 4  ;;  %s25_s20 = sshll.u32 %s12819_s19, 4  ;;  %s58_s18 = int_to_ptr.vmem [resolvable:$true] %s57_s18  ;;  %s26_s20 = int_to_ptr.vmem [resolvable:$true] %s25_s20 }
  0x17   :  { %s12629_s23 = scalar_lea.hbm %s15776_s3, 4608 }
  0x18   :  { %p12630_p8 = scmp.ne.s32.totalorder %s15776_s3, %s12629_s23  ;;  %p12633_p9 = scmp.lt.u32.totalorder %s12629_s23, %s15776_s3 }
  0x1a   :  { %p12635_p10 = pnand %p12633_p9, %p12630_p8 }
  0x1c   :  { %12638 = shalt.err (!%p12635_p10)
}
  0x1d   :  { %s12639_s1 = scalar_lea.vmem %s58_s18, 4608  ;;  %p12644_p12 = scmp.lt.s32.totalorder %s58_s18, %s58_s18 }
  0x1e   :  { %p12640_p11 = scmp.ne.s32.totalorder %s58_s18, %s12639_s1  ;;  %p12645_p13 = scmp.lt.s32.totalorder %s12639_s1, %s12639_s1 }
  0x20   :  { %p12646_p0 = por %p12645_p13, %p12644_p12 }
  0x22   :  { %p12647_p1 = pnand %p12646_p0, %p12640_p11 }
  0x24   :  { %12650 = shalt.err (!%p12647_p1)
}
  0x25   :  { %s12820_s28 = smov 128   ;;  %s12821_s29 = smov 8  }
  0x26   :  { %63 = dma.hbm_to_vmem [thread:$0]  %s15776_s3, 4608, %s58_s18, [#allocation9], %s12820_s28, %s12820_s28, %s12821_s29  }
  0x27   :  { %s12651_s12 = scalar_lea.hbm %s15773_s0, 256 }
  0x28   :  { %p12652_p2 = scmp.ne.s32.totalorder %s15773_s0, %s12651_s12  ;;  %p12655_p3 = scmp.lt.u32.totalorder %s12651_s12, %s15773_s0 }
  0x2a   :  { %p12657_p4 = pnand %p12655_p3, %p12652_p2 }
  0x2c   :  { %12660 = shalt.err (!%p12657_p4)
}
  0x2d   :  { %s12661_s17 = scalar_lea.vmem %s26_s20, 256  ;;  %p12666_p6 = scmp.lt.s32.totalorder %s26_s20, %s26_s20 }
  0x2e   :  { %p12662_p5 = scmp.ne.s32.totalorder %s26_s20, %s12661_s17  ;;  %p12667_p7 = scmp.lt.s32.totalorder %s12661_s17, %s12661_s17 }
  0x30   :  { %p12668_p8 = por %p12667_p7, %p12666_p6 }
  0x32   :  { %p12669_p9 = pnand %p12668_p8, %p12662_p5 }
  0x34   :  { %12672 = shalt.err (!%p12669_p9)
}
  0x35   :  { %31 = dma.hbm_to_vmem [thread:$0]  %s15773_s0, 256, %s26_s20, [#allocation3], %s12820_s28, %s12820_s28, %s12821_s29  }
  0x36   :  { %s12822_s19 = smov [#allocation7]   ;;  %s12823_s22 = smov [#allocation10]  }
  0x37   :  { %s48_s21 = sshll.u32 %s12822_s19, 4  ;;  %s69_s23 = sshll.u32 %s12823_s22, 4  ;;  %s49_s21 = int_to_ptr.vmem [resolvable:$true] %s48_s21  ;;  %s70_s23 = int_to_ptr.vmem [resolvable:$true] %s69_s23 }
  0x38   :  { %s12673_s26 = scalar_lea.hbm %s15775_s2, 1024 }
  0x39   :  { %p12674_p10 = scmp.ne.s32.totalorder %s15775_s2, %s12673_s26  ;;  %p12677_p11 = scmp.lt.u32.totalorder %s12673_s26, %s15775_s2 }
  0x3b   :  { %p12679_p12 = pnand %p12677_p11, %p12674_p10 }
  0x3d   :  { %12682 = shalt.err (!%p12679_p12)
}
  0x3e   :  { %s12683_s0 = scalar_lea.vmem %s49_s21, 1024  ;;  %p12688_p0 = scmp.lt.s32.totalorder %s49_s21, %s49_s21 }
  0x3f   :  { %p12684_p13 = scmp.ne.s32.totalorder %s49_s21, %s12683_s0  ;;  %p12689_p1 = scmp.lt.s32.totalorder %s12683_s0, %s12683_s0 }
  0x41   :  { %p12690_p2 = por %p12689_p1, %p12688_p0 }
  0x43   :  { %p12691_p3 = pnand %p12690_p2, %p12684_p13 }
  0x45   :  { %12694 = shalt.err (!%p12691_p3)
}
  0x46   :  { %51 = dma.hbm_to_vmem [thread:$0]  %s15775_s2, 1024, %s49_s21, [#allocation6]  }
  0x47   :  { %s12695_s12 = scalar_lea.hbm %s15777_s4, 4096 }
  0x48   :  { %p12696_p4 = scmp.ne.s32.totalorder %s15777_s4, %s12695_s12  ;;  %p12699_p5 = scmp.lt.u32.totalorder %s12695_s12, %s15777_s4 }
  0x4a   :  { %p12701_p6 = pnand %p12699_p5, %p12696_p4 }
  0x4c   :  { %12704 = shalt.err (!%p12701_p6)
}
  0x4d   :  { %s12705_s17 = scalar_lea.vmem %s70_s23, 4096  ;;  %p12710_p8 = scmp.lt.s32.totalorder %s70_s23, %s70_s23 }
  0x4e   :  { %p12706_p7 = scmp.ne.s32.totalorder %s70_s23, %s12705_s17  ;;  %p12711_p9 = scmp.lt.s32.totalorder %s12705_s17, %s12705_s17 }
  0x50   :  { %p12712_p10 = por %p12711_p9, %p12710_p8 }
  0x52   :  { %p12713_p11 = pnand %p12712_p10, %p12706_p7 }
  0x54   :  { %12716 = shalt.err (!%p12713_p11)
}
  0x55   :  { %s12824_s2 = smov 256   ;;  %s12825_s3 = smov 16  }
  0x56   :  { %75 = dma.hbm_to_vmem [thread:$0]  %s15777_s4, 4096, %s70_s23, [#allocation9], %s12824_s2, %s12824_s2, %s12825_s3  }
  0x57   :  { %s12826_s21 = smov [#allocation11]   ;;  %s12717_s26 = scalar_lea.hbm %s15778_s5, 16384 }
  0x58   :  { %s81_s22 = sshll.u32 %s12826_s21, 4  ;;  %p12718_p12 = scmp.ne.s32.totalorder %s15778_s5, %s12717_s26  ;;  %s82_s22 = int_to_ptr.vmem [resolvable:$true] %s81_s22 }
  0x59   :  { %p12721_p13 = scmp.lt.u32.totalorder %s12717_s26, %s15778_s5 }
  0x5b   :  { %p12723_p0 = pnand %p12721_p13, %p12718_p12 }
  0x5d   :  { %12726 = shalt.err (!%p12723_p0)
}
  0x5e   :  { %s12727_s0 = scalar_lea.vmem %s82_s22, 16384  ;;  %p12732_p2 = scmp.lt.s32.totalorder %s82_s22, %s82_s22 }
  0x5f   :  { %p12728_p1 = scmp.ne.s32.totalorder %s82_s22, %s12727_s0  ;;  %p12733_p3 = scmp.lt.s32.totalorder %s12727_s0, %s12727_s0 }
  0x61   :  { %p12734_p4 = por %p12733_p3, %p12732_p2 }
  0x63   :  { %p12735_p5 = pnand %p12734_p4, %p12728_p1 }
  0x65   :  { %12738 = shalt.err (!%p12735_p5)
}
  0x66   :  { %s12827_s4 = smov 512   ;;  %s12828_s23 = smov 32  }
  0x67   :  { %87 = dma.hbm_to_vmem [thread:$0]  %s15778_s5, 16384, %s82_s22, [#allocation12], %s12827_s4, %s12827_s4, %s12828_s23  }
  0x68   :  { %12805 = dma.done.wait [#allocation3], 256  }
  0x69   :  { %12806 = vsyncadd [#allocation3], 4294967040 }
  0x6a   :  { %12807 = dma.done.wait [#allocation6], 1536  }
  0x6b   :  { %12808 = vsyncadd [#allocation6], 4294965760 }
  0x6c   :  { %12809 = dma.done.wait [#allocation9], 8704  }
  0x6d   :  { %12810 = vsyncadd [#allocation9], 4294958592 }
  0x6e   :  { %12811 = dma.done.wait [#allocation12], 16384  }
  0x6f   :  { %12812 = vsyncadd [#allocation12], 4294950912  ;;  %v12829_v0 = vmov 0.0|0.0   ;;  %vm12830_vm0 = vmmov 0   ;;  %v15782_v1 = vmov 0.0   ;;  %v12832_v2 = vmov 0  }
  0x70   :  { %11530 = vmatprep.subr.bf16.mxu0 %v12829_v0  ;;  %11482 = vmatprep.mubr.msk.f32.mxu0 %vm12830_vm0, %v15782_v1  ;;  %v111_v3 = vld [vmem:[#allocation2] sm:$0xff]  ;;  %v112_v4 = vld [vmem:[#allocation2 + $0x8] sm:$0xff]  ;;  %v106_v6 = vld [vmem:[#allocation8] sm:$0xff]  ;;  %vm118_vm1 = vcmask 130048   ;;  %vm225_vm2 = vcmask 64512   ;;  %s12833_s5 = smov 9  }
  0x71   :  { %12549 = vset.pattern.permute.xlu0 %v12832_v2  ;;  %11485 = vmatprep.subr.mxu1 %v15782_v1  ;;  %v11531_v5 = vpack.c.bf16 %v112_v4, %v111_v3  ;;  %v108_v7 = vld [vmem:[#allocation8 + $0x50] sm:$0xff]  ;;  %v219_v12 = vld [vmem:[#allocation8 + $0x28] sm:$0xff]  ;;  %s12834_s10 = smov 7   ;;  %s12835_s11 = smov 1   ;;  %v110_v14 = vld [vmem:[#allocation8 + $0x58] sm:$0xff]  ;;  %v192_v4 = vlaneseq }
  0x72   :  { %11487 = vmatprep.mubr.msk.f32.mxu1 %vm12830_vm0, %v15782_v1  ;;  %12550 = vset.pattern.permute.xlu1 %v12832_v2  ;;  %s12836_s12 = smov 127   ;;  %s12837_s13 = smov 121   ;;  %v1198_v13 = vld [vmem:[#allocation8 + $0xb0] sm:$0xff]  ;;  %v302_v15 = vld [vmem:[#allocation8 + $0x8] sm:$0xff]  ;;  %v467_v19 = vld [vmem:[#allocation8 + $0x18] sm:$0xff] }
  0x73   :  { %115 = vperm.xlu0 %12549, %v108_v7   ;;  %11532 = vmatpush3.bf16.msra.mxu0 %v11531_v5  ;;  %s12839_s14 = smov 119   ;;  %v386_v16 = vld [vmem:[#allocation8 + $0x10] sm:$0xff]  ;;  %v550_v20 = vld [vmem:[#allocation8 + $0x20] sm:$0xff]  ;;  %v712_v24 = vld [vmem:[#allocation8 + $0x38] sm:$0xff]  ;;  %v13017_v5 = vand.u32 127, %v192_v4  ;;  %s12840_s15 = smov 17  }
  0x74   :  { %11495 = vmatprep.subr.mxu0 %v15782_v1  ;;  %v631_v23 = vld [vmem:[#allocation8 + $0x30] sm:$0xff]  ;;  %v795_v27 = vld [vmem:[#allocation8 + $0x40] sm:$0xff]  ;;  %v876_v28 = vld [vmem:[#allocation8 + $0x48] sm:$0xff]  ;;  %s12841_s16 = smov 15   ;;  %s12842_s17 = smov 113  }
  0x75   :  { %v12551_v29 = vld [vmem:[#allocation10 + $0x4] ss:$16 sps:$4 sm:$0xff]   ;;  %v12554_v30 = vld [vmem:[#allocation10 + $0xc] ss:$16 sps:$4 sm:$0xff]   ;;  %v12553_v33 = vld [vmem:[#allocation10] ss:$16 sps:$4 sm:$0xff]  }
  0x76   :  { %11483 = vmatmul.mubr.msk.f32.vlgmr.msra.gmra.mrb[0].mxu0 %vm118_vm1, %v106_v6  ;;  %v12556_v34 = vld [vmem:[#allocation10 + $0x8] ss:$16 sps:$4 sm:$0xff]   ;;  %v12557_v35 = vld [vmem:[#allocation10 + $0x24] ss:$16 sps:$4 sm:$0xff]   ;;  %v12560_v36 = vld [vmem:[#allocation10 + $0x2c] ss:$16 sps:$4 sm:$0xff]  }
  0x77   :  { %11497 = vmatprep.mubr.msk.f32.mxu0 %vm12830_vm0, %v15782_v1  ;;  %v12559_v37 = vld [vmem:[#allocation10 + $0x20] ss:$16 sps:$4 sm:$0xff]   ;;  %v12562_v38 = vld [vmem:[#allocation10 + $0x28] ss:$16 sps:$4 sm:$0xff]   ;;  %v12563_v39 = vld [vmem:[#allocation10 + $0x44] ss:$16 sps:$4 sm:$0xff]  }
  0x78   :  { %v12566_v40 = vld [vmem:[#allocation10 + $0x4c] ss:$16 sps:$4 sm:$0xff]   ;;  %v12565_v41 = vld [vmem:[#allocation10 + $0x40] ss:$16 sps:$4 sm:$0xff]   ;;  %v12568_v42 = vld [vmem:[#allocation10 + $0x48] ss:$16 sps:$4 sm:$0xff]  }
  0x79   :  { %v12569_v43 = vld [vmem:[#allocation10 + $0x64] ss:$16 sps:$4 sm:$0xff]   ;;  %v12572_v44 = vld [vmem:[#allocation10 + $0x6c] ss:$16 sps:$4 sm:$0xff]   ;;  %v12571_v45 = vld [vmem:[#allocation10 + $0x60] ss:$16 sps:$4 sm:$0xff]  }
  0x7a   :  { %v12574_v46 = vld [vmem:[#allocation10 + $0x68] ss:$16 sps:$4 sm:$0xff]   ;;  %v12575_v47 = vld [vmem:[#allocation10 + $0x84] ss:$16 sps:$4 sm:$0xff]   ;;  %v12578_v48 = vld [vmem:[#allocation10 + $0x8c] ss:$16 sps:$4 sm:$0xff]  }
  0x7b   :  { %v12577_v49 = vld [vmem:[#allocation10 + $0x80] ss:$16 sps:$4 sm:$0xff]   ;;  %v12580_v50 = vld [vmem:[#allocation10 + $0x88] ss:$16 sps:$4 sm:$0xff]   ;;  %v12581_v51 = vld [vmem:[#allocation10 + $0xa4] ss:$16 sps:$4 sm:$0xff]  }
  0x7c   :  { %v12584_v52 = vld [vmem:[#allocation10 + $0xac] ss:$16 sps:$4 sm:$0xff]   ;;  %v12583_v53 = vld [vmem:[#allocation10 + $0xa0] ss:$16 sps:$4 sm:$0xff]   ;;  %v12586_v54 = vld [vmem:[#allocation10 + $0xa8] ss:$16 sps:$4 sm:$0xff]  }
  0x7d   :  { %v12587_v55 = vld [vmem:[#allocation10 + $0xc4] ss:$16 sps:$4 sm:$0xff]   ;;  %v12590_v56 = vld [vmem:[#allocation10 + $0xcc] ss:$16 sps:$4 sm:$0xff]   ;;  %v12589_v57 = vld [vmem:[#allocation10 + $0xc0] ss:$16 sps:$4 sm:$0xff]  }
  0x7e   :  { %v12592_v58 = vld [vmem:[#allocation10 + $0xc8] ss:$16 sps:$4 sm:$0xff]   ;;  %v12593_v61 = vld [vmem:[#allocation10 + $0xe4] ss:$16 sps:$4 sm:$0xff]   ;;  %v12596_v62 = vld [vmem:[#allocation10 + $0xec] ss:$16 sps:$4 sm:$0xff]  }
  0x7f   :  { %v12595_v63 = vld [vmem:[#allocation10 + $0xe0] ss:$16 sps:$4 sm:$0xff]   ;;  %v12598_v0 = vld [vmem:[#allocation10 + $0xe8] ss:$16 sps:$4 sm:$0xff]   ;;  %15925 = vst [vmem:[#allocation23_spill] sm:$0xff] %v13017_v5  ;;  %v198_v6 = vand.u32 7, %v13017_v5 }
  0x80   :  { %v1202_v2 = vld [vmem:[#allocation5 + $0x8] sm:$0xff]  ;;  %v1204_v3 = vld [vmem:[#allocation5 + $0x18] sm:$0xff]  ;;  %v210_v7 = vand.u32 63, %v13017_v5  ;;  %s12843_s2 = smov 112   ;;  %s12844_s18 = smov 111   ;;  %vm1618_vm11 = vcmp.lt.s32.totalorder %v13017_v5, 17 }
  0x81   :  { %vm13021_vm3 = vcmp.ge.s32.totalorder %v198_v6, 1  ;;  %vm13033_vm6 = vcmp.le.s32.totalorder %v198_v6, 6  ;;  %vm1806_vm12 = vcmp.lt.s32.totalorder %v13017_v5, 16  ;;  %vm1982_vm13 = vcmp.lt.s32.totalorder %v13017_v5, 15  ;;  %s12846_s19 = smov 31   ;;  %s12847_s21 = smov 97  }
  0x82   :  { %vm13025_vm4 = vcmp.ge.s32.totalorder %v210_v7, 8  ;;  %vm13043_vm8 = vcmp.lt.s32.totalorder %v210_v7, 56  ;;  %vm2166_vm14 = vcmp.lt.s32.totalorder %v13017_v5, 1  ;;  %vm2342_vm15 = vcmp.lt.s32.totalorder %v13017_v5, 127  ;;  %s12848_s22 = smov 96   ;;  %s12849_s24 = smov 95  }
  0x83   :  { %vm378_vm5 = vmand %vm13021_vm3, %vm13025_vm4  ;;  %vm2702_vm1 = vcmp.lt.s32.totalorder %v13017_v5, 112  ;;  %s12850_s25 = smov [#allocation14]   ;;  %s12851_s27 = smov [#allocation13]  }
  0x84   :  { %vm542_vm7 = vmand %vm13033_vm6, %vm13025_vm4  ;;  %s11302_s26 = sshll.u32 %s12850_s25, 4  ;;  %s11292_s1 = sshll.u32 %s12851_s27, 4  ;;  %s11303_s26 = int_to_ptr.vmem [resolvable:$true] %s11302_s26  ;;  %s11293_s1 = int_to_ptr.vmem [resolvable:$true] %s11292_s1 }
  0x85   :  { %vm787_vm9 = vmand %vm13021_vm3, %vm13043_vm8  ;;  %s12739_s30 = scalar_lea.vmem %s11303_s26, 512  ;;  %p12744_p7 = scmp.lt.s32.totalorder %s11303_s26, %s11303_s26 }
  0x86   :  { %vm950_vm10 = vmand %vm13033_vm6, %vm13043_vm8  ;;  %p12740_p6 = scmp.ne.s32.totalorder %s11303_s26, %s12739_s30  ;;  %p12745_p8 = scmp.lt.s32.totalorder %s12739_s30, %s12739_s30 }
  0x88   :  { %p12746_p9 = por %p12745_p8, %p12744_p7 }
  0x8a   :  { %p12747_p10 = pnand %p12746_p9, %p12740_p6 }
  0xf2   :  { %v116_v8 = vpop.permute.xlu0 %115 }
 0x149   :  { %v188_v9 = vpop.f32.mrb[0].mxu0 }
 0x14a   :  { %v189_v10 = vadd.f32 %v188_v9, %v116_v8  ;;  %v11484_v11 = vpop.f32.mrb[1].mxu0 }
 0x14b   :  { %v13103_v11 = vld [vmem:[#allocation8 + $0x68] sm:$0xff] }
 0x14c   :  { %383 = vrot.lane.b32.xlu1 %v189_v10, %s12821_s29  ;;  %299 = vrot.lane.b32.xlu0 %v189_v10, %s12833_s5  ;;  %s12838_s29 = smov 120  }
 0x14d   :  { %11486 = vmatpush3.msra.mxu1 %v189_v10 }
 0x14e   :  { %11488 = vmatmul.mubr.msk.f32.vlgmr.msra.gmra.mrb[0].mxu1 %vm225_vm2, %v219_v12  ;;  %11490 = vmatprep.subr.mxu1 %v15782_v1 }
 0x14f   :  { %11492 = vmatprep.mubr.msk.f32.mxu1 %vm12830_vm0, %v15782_v1 }
 0x150   :  { %464 = vrot.lane.b32.xlu1 %v189_v10, %s12834_s10  ;;  %547 = vrot.lane.b32.xlu0 %v189_v10, %s12835_s11 }
 0x154   :  { %628 = vrot.lane.b32.xlu1 %v189_v10, %s12836_s12  ;;  %709 = vrot.lane.b32.xlu0 %v189_v10, %s12837_s13 }
 0x158   :  { %792 = vrot.lane.b32.xlu1 %v189_v10, %s12838_s29  ;;  %873 = vrot.lane.b32.xlu0 %v189_v10, %s12839_s14 }
 0x15c   :  { %1207 = vperm.xlu0 %12549, %v1198_v13   ;;  %222 = vperm.xlu1 %12550, %v110_v14  }
 0x1be   :  { %v384_v17 = vpop.permute.xlu1 %383  ;;  %v300_v18 = vpop.permute.xlu0 %299 }
 0x1bf   :  { %11491 = vmatpush3.msra.mxu1 %v300_v18  ;;  %11496 = vmatpush3.msra.mxu0 %v384_v17 }
 0x1c0   :  { %11493 = vmatmul.mubr.msk.f32.vlgmr.msra.gmra.mrb[2].mxu1 %vm225_vm2, %v302_v15  ;;  %11498 = vmatmul.mubr.msk.f32.vlgmr.msra.gmra.mrb[2].mxu0 %vm225_vm2, %v386_v16 }
 0x1c1   :  { %11505 = vmatprep.subr.mxu0 %v15782_v1  ;;  %11500 = vmatprep.subr.mxu1 %v15782_v1 }
 0x1c2   :  { %v465_v21 = vpop.permute.xlu1 %464  ;;  %v548_v22 = vpop.permute.xlu0 %547  ;;  %11502 = vmatprep.mubr.msk.f32.mxu1 %vm12830_vm0, %v15782_v1  ;;  %11507 = vmatprep.mubr.msk.f32.mxu0 %vm12830_vm0, %v15782_v1 }
 0x1c3   :  { %11501 = vmatpush3.msra.mxu1 %v465_v21  ;;  %11506 = vmatpush3.msra.mxu0 %v548_v22 }
 0x1c4   :  { %11503 = vmatmul.mubr.msk.f32.vlgmr.msra.gmra.mrb[4].mxu1 %vm225_vm2, %v467_v19  ;;  %11508 = vmatmul.mubr.msk.f32.vlgmr.msra.gmra.mrb[4].mxu0 %vm225_vm2, %v550_v20 }
 0x1c5   :  { %11515 = vmatprep.subr.mxu0 %v15782_v1  ;;  %11510 = vmatprep.subr.mxu1 %v15782_v1 }
 0x1c6   :  { %v629_v25 = vpop.permute.xlu1 %628  ;;  %v710_v26 = vpop.permute.xlu0 %709  ;;  %11512 = vmatprep.mubr.msk.f32.mxu1 %vm12830_vm0, %v15782_v1  ;;  %11517 = vmatprep.mubr.msk.f32.mxu0 %vm12830_vm0, %v15782_v1 }
 0x1c7   :  { %11511 = vmatpush3.msra.mxu1 %v629_v25  ;;  %11516 = vmatpush3.msra.mxu0 %v710_v26 }
 0x1c8   :  { %11513 = vmatmul.mubr.msk.f32.vlgmr.msra.gmra.mrb[6].mxu1 %vm225_vm2, %v631_v23  ;;  %11518 = vmatmul.mubr.msk.f32.vlgmr.msra.gmra.mrb[6].mxu0 %vm225_vm2, %v712_v24 }
 0x1c9   :  { %11525 = vmatprep.subr.mxu0 %v15782_v1  ;;  %11520 = vmatprep.subr.mxu1 %v15782_v1 }
 0x1ca   :  { %v793_v31 = vpop.permute.xlu1 %792  ;;  %v874_v32 = vpop.permute.xlu0 %873  ;;  %11522 = vmatprep.mubr.msk.f32.mxu1 %vm12830_vm0, %v15782_v1  ;;  %11527 = vmatprep.mubr.msk.f32.mxu0 %vm12830_vm0, %v15782_v1  ;;  %vm2518_vm0 = vcmp.lt.s32.totalorder %v13017_v5, 113 }
 0x1cb   :  { %11521 = vmatpush3.msra.mxu1 %v793_v31  ;;  %11526 = vmatpush3.msra.mxu0 %v874_v32 }
 0x1cc   :  { %11523 = vmatmul.mubr.msk.f32.vlgmr.msra.gmra.mrb[8].mxu1 %vm225_vm2, %v795_v27  ;;  %11528 = vmatmul.mubr.msk.f32.vlgmr.msra.gmra.mrb[8].mxu0 %vm225_vm2, %v876_v28 }
 0x1cd   :  { %11534 = vmatprep.subr.bf16.mxu1 %v12551_v29  ;;  %11566 = vmatprep.subr.bf16.mxu0 %v12554_v30 }
 0x1ce   :  { %11536 = vmatpush1.bf16.msra.mxu1 %v12553_v33  ;;  %11568 = vmatpush1.bf16.msra.mxu0 %v12556_v34 }
 0x1cf   :  { %11538 = vmatprep.subr.bf16.mxu1 %v12557_v35  ;;  %11570 = vmatprep.subr.bf16.mxu0 %v12560_v36 }
 0x1d0   :  { %1117 = vmatprep.mubr.f32.mxu1 %v15782_v1  ;;  %1188 = vmatprep.mubr.f32.mxu0 %v15782_v1 }
 0x1d2   :  { %11540 = vmatpush1.bf16.msra.mxu1 %v12559_v37  ;;  %11572 = vmatpush1.bf16.msra.mxu0 %v12562_v38 }
 0x1d3   :  { %11542 = vmatprep.subr.bf16.mxu1 %v12563_v39  ;;  %11574 = vmatprep.subr.bf16.mxu0 %v12566_v40 }
 0x1d6   :  { %11544 = vmatpush1.bf16.msra.mxu1 %v12565_v41  ;;  %11576 = vmatpush1.bf16.msra.mxu0 %v12568_v42 }
 0x1d7   :  { %11546 = vmatprep.subr.bf16.mxu1 %v12569_v43  ;;  %11578 = vmatprep.subr.bf16.mxu0 %v12572_v44 }
 0x1da   :  { %11548 = vmatpush1.bf16.msra.mxu1 %v12571_v45  ;;  %11580 = vmatpush1.bf16.msra.mxu0 %v12574_v46 }
 0x1db   :  { %11550 = vmatprep.subr.bf16.mxu1 %v12575_v47  ;;  %11582 = vmatprep.subr.bf16.mxu0 %v12578_v48  ;;  %v223_v10 = vpop.permute.xlu1 %222  ;;  %v1201_v47 = vld [vmem:[#allocation5] sm:$0xff]  ;;  %v1203_v48 = vld [vmem:[#allocation5 + $0x10] sm:$0xff] }
 0x1de   :  { %11552 = vmatpush1.bf16.msra.mxu1 %v12577_v49  ;;  %11584 = vmatpush1.bf16.msra.mxu0 %v12580_v50  ;;  %v1196_v49 = vld [vmem:[#allocation8 + $0x60] sm:$0xff]  ;;  %v1208_v50 = vpop.permute.xlu0 %1207 }
 0x1df   :  { %11554 = vmatprep.subr.bf16.mxu1 %v12581_v51  ;;  %11586 = vmatprep.subr.bf16.mxu0 %v12584_v52 }
 0x1e2   :  { %11556 = vmatpush1.bf16.msra.mxu1 %v12583_v53  ;;  %11588 = vmatpush1.bf16.msra.mxu0 %v12586_v54 }
 0x1e3   :  { %11558 = vmatprep.subr.bf16.mxu1 %v12587_v55  ;;  %11590 = vmatprep.subr.bf16.mxu0 %v12590_v56 }
 0x1e6   :  { %11560 = vmatpush1.bf16.msra.mxu1 %v12589_v57  ;;  %11592 = vmatpush1.bf16.msra.mxu0 %v12592_v58 }
 0x1e7   :  { %11562 = vmatprep.subr.bf16.mxu1 %v12593_v61  ;;  %11594 = vmatprep.subr.bf16.mxu0 %v12596_v62  ;;  %v4013_v61 = vld [vmem:[#allocation8 + $0x110] sm:$0xff] }
 0x1ea   :  { %11564 = vmatpush1.bf16.msra.mxu1 %v12595_v63  ;;  %11596 = vmatpush1.bf16.msra.mxu0 %v12598_v0 }
 0x1eb   :  { %1213 = vmatprep.subr.mxu1 %v1202_v2  ;;  %1284 = vmatprep.subr.mxu0 %v1204_v3 }
 0x221   :  { %v295_v59 = vpop.f32.mrb[0].mxu1 }
 0x222   :  { %v11489_v60 = vpop.f32.mrb[1].mxu1  ;;  %v296_v12 = vadd.f32 %v295_v59, %v223_v10  ;;  %v1459_v59 = vld [vmem:[#allocation8 + $0x88] sm:$0xff] }
 0x223   :  { %v1200_v60 = vld [vmem:[#allocation8 + $0xb8] sm:$0xff] }
 0x293   :  { %v372_v13 = vpop.f32.mrb[2].mxu1  ;;  %v456_v14 = vpop.f32.mrb[2].mxu0 }
 0x294   :  { %v381_v15 = vsel %vm378_vm5, %v372_v13, 0.0  ;;  %v11494_v16 = vpop.f32.mrb[3].mxu1  ;;  %v462_v17 = vsel %vm13025_vm4, %v456_v14, 0.0  ;;  %v11499_v18 = vpop.f32.mrb[3].mxu0 }
 0x295   :  { %v382_v19 = vadd.f32 %v381_v15, %v296_v12  ;;  %v13120_v16 = vld [vmem:[#allocation8 + $0x70] sm:$0xff] }
 0x297   :  { %v463_v21 = vadd.f32 %v462_v17, %v382_v19  ;;  %v537_v22 = vpop.f32.mrb[4].mxu1  ;;  %v620_v23 = vpop.f32.mrb[4].mxu0 }
 0x298   :  { %v545_v24 = vsel %vm542_vm7, %v537_v22, 0.0  ;;  %v11504_v25 = vpop.f32.mrb[5].mxu1  ;;  %v626_v26 = vsel %vm13021_vm3, %v620_v23, 0.0  ;;  %v11509_v27 = vpop.f32.mrb[5].mxu0  ;;  %v13138_v22 = vld [vmem:[#allocation8 + $0x78] sm:$0xff]  ;;  %vm2878_vm3 = vcmp.lt.s32.totalorder %v13017_v5, 111 }
 0x299   :  { %v546_v28 = vadd.f32 %v545_v24, %v463_v21  ;;  %v13154_v27 = vld [vmem:[#allocation8 + $0x80] sm:$0xff] }
 0x29b   :  { %v627_v29 = vadd.f32 %v626_v26, %v546_v28  ;;  %v701_v30 = vpop.f32.mrb[6].mxu1  ;;  %v782_v31 = vpop.f32.mrb[6].mxu0 }
 0x29c   :  { %v707_v32 = vsel %vm13033_vm6, %v701_v30, 0.0  ;;  %v11514_v33 = vpop.f32.mrb[7].mxu1  ;;  %v790_v34 = vsel %vm787_vm9, %v782_v31, 0.0  ;;  %v11519_v35 = vpop.f32.mrb[7].mxu0 }
 0x29d   :  { %v708_v36 = vadd.f32 %v707_v32, %v627_v29  ;;  %v13167_v32 = vld [vmem:[#allocation8 + $0x90] sm:$0xff] }
 0x29f   :  { %v791_v37 = vadd.f32 %v790_v34, %v708_v36  ;;  %v865_v38 = vpop.f32.mrb[8].mxu1  ;;  %v946_v39 = vpop.f32.mrb[8].mxu0 }
 0x2a0   :  { %v871_v40 = vsel %vm13043_vm8, %v865_v38, 0.0  ;;  %v11524_v41 = vpop.f32.mrb[9].mxu1  ;;  %v953_v42 = vsel %vm950_vm10, %v946_v39, 0.0  ;;  %v11529_v43 = vpop.f32.mrb[9].mxu0 }
 0x2a1   :  { %v872_v44 = vadd.f32 %v871_v40, %v791_v37  ;;  %v13182_v37 = vld [vmem:[#allocation8 + $0x98] sm:$0xff]  ;;  %v3058_v43 = vld [vmem:[#allocation11] sm:$0xff] }
 0x2a3   :  { %v954_v45 = vadd.f32 %v953_v42, %v872_v44  ;;  %v13194_v42 = vld [vmem:[#allocation8 + $0xa0] sm:$0xff] }
 0x2a4   :  { %v3062_v44 = vld [vmem:[#allocation11 + $0x20] sm:$0xff] }
 0x2a5   :  { %v955_v46 = vmax.f32 %v954_v45, 0.0  ;;  %v3066_v45 = vld [vmem:[#allocation11 + $0x40] sm:$0xff] }
 0x2a7   :  { %956 = vst [vmem:[#allocation13] sm:$0xff] %v955_v46  ;;  %1118 = vmatmul.mubr.f32.vlgmr.msra.gmra.mrb[10].mxu1 %v955_v46  ;;  %1189 = vmatmul.mubr.f32.vlgmr.msra.gmra.mrb[10].mxu0 %v955_v46  ;;  %v3070_v46 = vld [vmem:[#allocation11 + $0x60] sm:$0xff] }
 0x2a8   :  { %1214 = vmatpush1.msra.mxu1 %v1201_v47  ;;  %1277 = vmatprep.mubr.f32.mxu1 %v15782_v1 }
 0x2a9   :  { %1285 = vmatpush1.msra.mxu0 %v1203_v48  ;;  %1348 = vmatprep.mubr.f32.mxu0 %v15782_v1 }
 0x2af   :  { %11341 = vmatmul.mubr.msk.f32.vlgmr.msra.gmra.mrb[10].mxu1 %vm225_vm2, %v1196_v49  ;;  %11342 = vmatmul.mubr.msk.f32.vlgmr.msra.gmra.mrb[10].mxu0 %vm225_vm2, %v1196_v49  ;;  %v13203_v49 = vcombine.high %v3058_v43, %v3062_v44 }
 0x2b0   :  { %1532 = vmatprep.mubr.f32.mxu1 %v15782_v1  ;;  %1603 = vmatprep.mubr.f32.mxu0 %v15782_v1 }
 0x382   :  { %v1279_v51 = vpop.f32.mrb[10].mxu1  ;;  %v1350_v52 = vpop.f32.mrb[10].mxu0 }
 0x383   :  { %v1280_v53 = vadd.f32 %v1279_v51, %v1208_v50  ;;  %v1281_v54 = vpop.f32.mrb[11].mxu1  ;;  %v1352_v55 = vpop.f32.mrb[11].mxu0  ;;  %v1351_v58 = vadd.f32 %v1350_v52, %v1208_v50  ;;  %v13212_v52 = vld [vmem:[#allocation8 + $0xa8] sm:$0xff] }
 0x384   :  { %v1282_v56 = vadd.f32 %v1281_v54, %v1208_v50  ;;  %v1353_v57 = vadd.f32 %v1352_v55, %v1208_v50  ;;  %v13216_v54 = vcombine.high %v3066_v45, %v3070_v46 }
 0x385   :  { %1798 = vrot.lane.b32.xlu0 %v1280_v53, %s12825_s3  ;;  %1610 = vrot.lane.b32.xlu1 %v1280_v53, %s12840_s15 }
 0x386   :  { %1468 = vmatprep.subr.mxu1 %v1282_v56  ;;  %1539 = vmatprep.subr.mxu0 %v1353_v57 }
 0x387   :  { %1469 = vmatpush1.msra.mxu1 %v1280_v53  ;;  %1540 = vmatpush1.msra.mxu0 %v1351_v58 }
 0x388   :  { %11343 = vmatmul.mubr.msk.f32.vlgmr.msra.gmra.mrb[12].mxu1 %vm225_vm2, %v1459_v59  ;;  %11344 = vmatmul.mubr.msk.f32.vlgmr.msra.gmra.mrb[12].mxu0 %vm225_vm2, %v1459_v59 }
 0x389   :  { %2158 = vrot.lane.b32.xlu0 %v1280_v53, %s12835_s11  ;;  %1974 = vrot.lane.b32.xlu1 %v1280_v53, %s12841_s16 }
 0x38a   :  { %1692 = vmatprep.mubr.f32.mxu1 %v15782_v1  ;;  %1763 = vmatprep.mubr.f32.mxu0 %v15782_v1 }
 0x38d   :  { %2334 = vrot.lane.b32.xlu1 %v1280_v53, %s12836_s12  ;;  %2338 = vrot.lane.b32.xlu0 %v1351_v58, %s12836_s12 }
 0x391   :  { %2514 = vrot.lane.b32.xlu1 %v1351_v58, %s12842_s17  ;;  %1612 = vrot.lane.b32.xlu0 %v1282_v56, %s12840_s15 }
 0x395   :  { %1616 = vrot.lane.b32.xlu1 %v1353_v57, %s12840_s15  ;;  %1804 = vrot.lane.b32.xlu0 %v1353_v57, %s12825_s3 }
 0x399   :  { %1800 = vrot.lane.b32.xlu1 %v1282_v56, %s12825_s3  ;;  %1976 = vrot.lane.b32.xlu0 %v1282_v56, %s12841_s16 }
 0x39d   :  { %1980 = vrot.lane.b32.xlu1 %v1353_v57, %s12841_s16  ;;  %2510 = vrot.lane.b32.xlu0 %v1280_v53, %s12842_s17 }
 0x3a1   :  { %2160 = vrot.lane.b32.xlu1 %v1282_v56, %s12835_s11  ;;  %2164 = vrot.lane.b32.xlu0 %v1353_v57, %s12835_s11 }
 0x3a5   :  { %2336 = vrot.lane.b32.xlu1 %v1282_v56, %s12836_s12  ;;  %2512 = vrot.lane.b32.xlu0 %v1282_v56, %s12842_s17 }
 0x3a9   :  { %2694 = vrot.lane.b32.xlu1 %v1280_v53, %s12843_s2  ;;  %2698 = vrot.lane.b32.xlu0 %v1351_v58, %s12843_s2 }
 0x3ad   :  { %2696 = vrot.lane.b32.xlu1 %v1282_v56, %s12843_s2  ;;  %2872 = vrot.lane.b32.xlu0 %v1282_v56, %s12844_s18 }
 0x3b1   :  { %2874 = vrot.lane.b32.xlu1 %v1351_v58, %s12844_s18  ;;  %2870 = vrot.lane.b32.xlu0 %v1280_v53, %s12844_s18  ;;  %v13214_v53 = vcombine.low %v3058_v43, %v3062_v44  ;;  %v3067_v43 = vld [vmem:[#allocation11 + $0x48] sm:$0xff] }
 0x3b2   :  { %v3071_v44 = vld [vmem:[#allocation11 + $0x68] sm:$0xff] }
 0x3b5   :  { %1614 = vrot.lane.b32.xlu1 %v1351_v58, %s12840_s15  ;;  %1802 = vrot.lane.b32.xlu0 %v1351_v58, %s12825_s3  ;;  %s12845_s3 = smov 33  }
 0x3b9   :  { %1978 = vrot.lane.b32.xlu1 %v1351_v58, %s12841_s16  ;;  %2162 = vrot.lane.b32.xlu0 %v1351_v58, %s12835_s11  ;;  %v3078_v58 = vld [vmem:[#allocation11 + $0xa0] sm:$0xff] }
 0x3bd   :  { %2340 = vrot.lane.b32.xlu1 %v1353_v57, %s12836_s12  ;;  %2516 = vrot.lane.b32.xlu0 %v1353_v57, %s12842_s17 }
 0x3c1   :  { %2700 = vrot.lane.b32.xlu1 %v1353_v57, %s12843_s2  ;;  %2876 = vrot.lane.b32.xlu0 %v1353_v57, %s12844_s18  ;;  %v3074_v57 = vld [vmem:[#allocation11 + $0x80] sm:$0xff] }
 0x3c5   :  { %1462 = vperm.xlu1 %12550, %v1200_v60   ;;  %4026 = vperm.xlu0 %12549, %v4013_v61   ;;  %v13229_v61 = vcombine.low %v3066_v45, %v3070_v46  ;;  %v13330_v45 = vcombine.high %v3067_v43, %v3071_v44  ;;  %v3075_v46 = vld [vmem:[#allocation11 + $0x88] sm:$0xff] }
 0x3f7   :  { %v1799_v62 = vpop.permute.xlu0 %1798  ;;  %v1611_v63 = vpop.permute.xlu1 %1610 }
 0x3fb   :  { %v2159_v0 = vpop.permute.xlu0 %2158  ;;  %v1975_v2 = vpop.permute.xlu1 %1974 }
 0x3ff   :  { %v13087_v3 = vpop.permute.xlu1 %2334  ;;  %v13089_v4 = vpop.permute.xlu0 %2338 }
 0x403   :  { %v13092_v6 = vpop.permute.xlu1 %2514  ;;  %v13094_v7 = vpop.permute.xlu0 %1612 }
 0x404   :  { %v1621_v8 = vsel %vm1618_vm11, %v1611_v63, %v13094_v7 }
 0x405   :  { %1628 = vmatprep.subr.mxu1 %v1621_v8  ;;  %v3086_v8 = vld [vmem:[#allocation11 + $0xe0] sm:$0xff] }
 0x407   :  { %v13099_v9 = vpop.permute.xlu1 %1616  ;;  %v13101_v10 = vpop.permute.xlu0 %1804 }
 0x408   :  { %v1622_v12 = vsel %vm1618_vm11, %v13099_v9, %v1611_v63  ;;  %v1810_v17 = vsel %vm1806_vm12, %v13101_v10, %v1799_v62  ;;  %v13234_v63 = vcombine.high %v3074_v57, %v3078_v58 }
 0x409   :  { %1629 = vmatpush1.msra.mxu1 %v1622_v12  ;;  %v13246_v12 = vcombine.low %v3074_v57, %v3078_v58  ;;  %v3091_v57 = vld [vmem:[#allocation11 + $0x108] sm:$0xff] }
 0x40a   :  { %11345 = vmatmul.mubr.msk.f32.vlgmr.msra.gmra.mrb[14].mxu1 %vm225_vm2, %v13103_v11 }
 0x40b   :  { %v13111_v13 = vpop.permute.xlu1 %1800  ;;  %v13113_v14 = vpop.permute.xlu0 %1976  ;;  %1880 = vmatprep.mubr.f32.mxu1 %v15782_v1 }
 0x40c   :  { %v1809_v15 = vsel %vm1806_vm12, %v1799_v62, %v13111_v13  ;;  %v1985_v18 = vsel %vm1982_vm13, %v1975_v2, %v13113_v14 }
 0x40d   :  { %1816 = vmatprep.subr.mxu1 %v1809_v15  ;;  %v3090_v15 = vld [vmem:[#allocation11 + $0x100] sm:$0xff] }
 0x40e   :  { %1817 = vmatpush1.msra.mxu1 %v1810_v17  ;;  %v3094_v17 = vld [vmem:[#allocation11 + $0x120] sm:$0xff] }
 0x40f   :  { %v13128_v19 = vpop.permute.xlu1 %1980  ;;  %11347 = vmatmul.mubr.msk.f32.vlgmr.msra.gmra.mrb[16].mxu1 %vm225_vm2, %v13120_v16  ;;  %1992 = vmatprep.subr.mxu1 %v1985_v18  ;;  %v13132_v20 = vpop.permute.xlu0 %2510 }
 0x410   :  { %v1986_v21 = vsel %vm1982_vm13, %v13128_v19, %v1975_v2  ;;  %2056 = vmatprep.mubr.f32.mxu1 %v15782_v1 }
 0x411   :  { %1993 = vmatpush1.msra.mxu1 %v1986_v21 }
 0x413   :  { %v13141_v23 = vpop.permute.xlu1 %2160  ;;  %11349 = vmatmul.mubr.msk.f32.vlgmr.msra.gmra.mrb[18].mxu1 %vm225_vm2, %v13138_v22  ;;  %v13145_v24 = vpop.permute.xlu0 %2164 }
 0x414   :  { %v2169_v25 = vsel %vm2166_vm14, %v2159_v0, %v13141_v23  ;;  %v2170_v26 = vsel %vm2166_vm14, %v13145_v24, %v2159_v0  ;;  %2240 = vmatprep.mubr.f32.mxu1 %v15782_v1 }
 0x415   :  { %2176 = vmatprep.subr.mxu1 %v2169_v25  ;;  %v3102_v25 = vld [vmem:[#allocation11 + $0x160] sm:$0xff] }
 0x416   :  { %2177 = vmatpush1.msra.mxu1 %v2170_v26 }
 0x417   :  { %v2337_v28 = vpop.permute.xlu1 %2336  ;;  %11351 = vmatmul.mubr.msk.f32.vlgmr.msra.gmra.mrb[20].mxu1 %vm225_vm2, %v13154_v27  ;;  %v2513_v29 = vpop.permute.xlu0 %2512 }
 0x418   :  { %v2344_v30 = vsel %vm2342_vm15, %v2337_v28, %v13089_v4  ;;  %v2345_v31 = vsel %vm2342_vm15, %v13087_v3, %v2337_v28  ;;  %2416 = vmatprep.mubr.f32.mxu1 %v15782_v1  ;;  %v2520_v33 = vsel %vm2518_vm0, %v2513_v29, %v13092_v6  ;;  %v2521_v36 = vsel %vm2518_vm0, %v13132_v20, %v2513_v29 }
 0x419   :  { %2352 = vmatprep.subr.mxu1 %v2344_v30  ;;  %v13276_v29 = vcombine.low %v3090_v15, %v3094_v17  ;;  %v3110_v30 = vld [vmem:[#allocation11 + $0x1a0] sm:$0xff] }
 0x41a   :  { %2353 = vmatpush1.msra.mxu1 %v2345_v31 }
 0x41b   :  { %v13172_v34 = vpop.permute.xlu1 %2694  ;;  %11353 = vmatmul.mubr.msk.f32.vlgmr.msra.gmra.mrb[22].mxu1 %vm225_vm2, %v13167_v32  ;;  %2528 = vmatprep.subr.mxu1 %v2520_v33  ;;  %v13176_v35 = vpop.permute.xlu0 %2698 }
 0x41c   :  { %2529 = vmatpush1.msra.mxu1 %v2521_v36  ;;  %2592 = vmatprep.mubr.f32.mxu1 %v15782_v1 }
 0x41f   :  { %v2697_v38 = vpop.permute.xlu1 %2696  ;;  %11355 = vmatmul.mubr.msk.f32.vlgmr.msra.gmra.mrb[24].mxu1 %vm225_vm2, %v13182_v37  ;;  %v2873_v39 = vpop.permute.xlu0 %2872 }
 0x420   :  { %v2704_v40 = vsel %vm2702_vm1, %v2697_v38, %v13176_v35  ;;  %v2705_v41 = vsel %vm2702_vm1, %v13172_v34, %v2697_v38  ;;  %2776 = vmatprep.mubr.f32.mxu1 %v15782_v1 }
 0x421   :  { %2712 = vmatprep.subr.mxu1 %v2704_v40  ;;  %v3059_v40 = vld [vmem:[#allocation11 + $0x8] sm:$0xff] }
 0x422   :  { %2713 = vmatpush1.msra.mxu1 %v2705_v41  ;;  %v3063_v41 = vld [vmem:[#allocation11 + $0x28] sm:$0xff] }
 0x423   :  { %v13197_v47 = vpop.permute.xlu1 %2874  ;;  %11357 = vmatmul.mubr.msk.f32.vlgmr.msra.gmra.mrb[26].mxu1 %vm225_vm2, %v13194_v42  ;;  %v13201_v48 = vpop.permute.xlu0 %2870 }
 0x424   :  { %v2880_v50 = vsel %vm2878_vm3, %v2873_v39, %v13197_v47  ;;  %v2881_v51 = vsel %vm2878_vm3, %v13201_v48, %v2873_v39  ;;  %2952 = vmatprep.mubr.f32.mxu1 %v15782_v1 }
 0x425   :  { %2888 = vmatprep.subr.mxu1 %v2880_v50  ;;  %v3083_v50 = vld [vmem:[#allocation11 + $0xc8] sm:$0xff] }
 0x426   :  { %2889 = vmatpush1.msra.mxu1 %v2881_v51  ;;  %v3087_v51 = vld [vmem:[#allocation11 + $0xe8] sm:$0xff] }
 0x427   :  { %v1615_v55 = vpop.permute.xlu1 %1614  ;;  %11359 = vmatmul.mubr.msk.f32.vlgmr.msra.gmra.mrb[28].mxu1 %vm225_vm2, %v13212_v52  ;;  %v1803_v56 = vpop.permute.xlu0 %1802  ;;  %11598 = vmatprep.subr.bf16.mxu1 %v13203_v49  ;;  %v13347_v58 = vcombine.low %v3083_v50, %v3087_v51 }
 0x428   :  { %v1619_v59 = vsel %vm1618_vm11, %v1615_v55, %v13099_v9  ;;  %v1620_v60 = vsel %vm1618_vm11, %v13094_v7, %v1615_v55  ;;  %11600 = vmatpush1.bf16.msra.mxu1 %v13214_v53  ;;  %v1807_v62 = vsel %vm1806_vm12, %v1803_v56, %v13101_v10  ;;  %v1808_v2 = vsel %vm1806_vm12, %v13111_v13, %v1803_v56  ;;  %v3082_v7 = vld [vmem:[#allocation11 + $0xc0] sm:$0xff] }
 0x429   :  { %1699 = vmatprep.subr.mxu0 %v1619_v59  ;;  %11602 = vmatprep.subr.bf16.mxu1 %v13216_v54  ;;  %v13261_v21 = vcombine.low %v3082_v7, %v3086_v8  ;;  %v13344_v56 = vcombine.high %v3083_v50, %v3087_v51  ;;  %v3138_v51 = vld [vmem:[#allocation11 + $0x280] sm:$0xff] }
 0x42a   :  { %1700 = vmatpush1.msra.mxu0 %v1620_v60  ;;  %v3099_v60 = vld [vmem:[#allocation11 + $0x148] sm:$0xff] }
 0x42b   :  { %v1979_v0 = vpop.permute.xlu1 %1978  ;;  %11346 = vmatmul.mubr.msk.f32.vlgmr.msra.gmra.mrb[14].mxu0 %vm225_vm2, %v13103_v11  ;;  %1887 = vmatprep.subr.mxu0 %v1807_v62  ;;  %v2163_v10 = vpop.permute.xlu0 %2162  ;;  %v13249_v11 = vcombine.high %v3082_v7, %v3086_v8  ;;  %v3103_v62 = vld [vmem:[#allocation11 + $0x168] sm:$0xff] }
 0x42c   :  { %1888 = vmatpush1.msra.mxu0 %v1808_v2  ;;  %v1983_v9 = vsel %vm1982_vm13, %v1979_v0, %v13128_v19  ;;  %1951 = vmatprep.mubr.f32.mxu0 %v15782_v1  ;;  %v1984_v13 = vsel %vm1982_vm13, %v13113_v14, %v1979_v0  ;;  %v2167_v18 = vsel %vm2166_vm14, %v2163_v10, %v13145_v24  ;;  %v3098_v24 = vld [vmem:[#allocation11 + $0x140] sm:$0xff]  ;;  %v3107_v7 = vld [vmem:[#allocation11 + $0x188] sm:$0xff] }
 0x42d   :  { %2063 = vmatprep.subr.mxu0 %v1983_v9  ;;  %11604 = vmatpush1.bf16.msra.mxu1 %v13229_v61  ;;  %v2168_v14 = vsel %vm2166_vm14, %v13141_v23, %v2163_v10  ;;  %v13291_v36 = vcombine.low %v3098_v24, %v3102_v25  ;;  %v13356_v2 = vcombine.high %v3099_v60, %v3103_v62  ;;  %v3111_v8 = vld [vmem:[#allocation11 + $0x1a8] sm:$0xff] }
 0x42e   :  { %11606 = vmatprep.subr.bf16.mxu1 %v13234_v63  ;;  %v13359_v9 = vcombine.low %v3099_v60, %v3103_v62  ;;  %v13362_v10 = vcombine.high %v3107_v7, %v3111_v8  ;;  %v3139_v62 = vld [vmem:[#allocation11 + $0x288] sm:$0xff] }
 0x42f   :  { %11348 = vmatmul.mubr.msk.f32.vlgmr.msra.gmra.mrb[16].mxu0 %vm225_vm2, %v13120_v16  ;;  %v2341_v19 = vpop.permute.xlu1 %2340  ;;  %v13264_v16 = vcombine.high %v3090_v15, %v3094_v17  ;;  %v2517_v28 = vpop.permute.xlu0 %2516  ;;  %v3114_v17 = vld [vmem:[#allocation11 + $0x1c0] sm:$0xff] }
 0x430   :  { %2064 = vmatpush1.msra.mxu0 %v1984_v13  ;;  %2127 = vmatprep.mubr.f32.mxu0 %v15782_v1  ;;  %v2346_v26 = vsel %vm2342_vm15, %v2341_v19, %v13087_v3  ;;  %v2343_v23 = vsel %vm2342_vm15, %v13089_v4, %v2341_v19  ;;  %v3106_v3 = vld [vmem:[#allocation11 + $0x180] sm:$0xff]  ;;  %v2522_v31 = vsel %vm2518_vm0, %v2517_v28, %v13132_v20  ;;  %v3115_v19 = vld [vmem:[#allocation11 + $0x1c8] sm:$0xff] }
 0x431   :  { %2247 = vmatprep.subr.mxu0 %v2167_v18  ;;  %11608 = vmatpush1.bf16.msra.mxu1 %v13246_v12  ;;  %v2519_v4 = vsel %vm2518_vm0, %v13092_v6, %v2517_v28  ;;  %v13306_v39 = vcombine.low %v3106_v3, %v3110_v30  ;;  %v3118_v18 = vld [vmem:[#allocation11 + $0x1e0] sm:$0xff]  ;;  %v3119_v28 = vld [vmem:[#allocation11 + $0x1e8] sm:$0xff] }
 0x432   :  { %11610 = vmatprep.subr.bf16.mxu1 %v13249_v11 }
 0x433   :  { %11350 = vmatmul.mubr.msk.f32.vlgmr.msra.gmra.mrb[18].mxu0 %vm225_vm2, %v13138_v22  ;;  %v13279_v22 = vcombine.high %v3098_v24, %v3102_v25  ;;  %v2701_v33 = vpop.permute.xlu1 %2700  ;;  %v2877_v38 = vpop.permute.xlu0 %2876  ;;  %v13373_v25 = vcombine.low %v3107_v7, %v3111_v8  ;;  %v3143_v7 = vld [vmem:[#allocation11 + $0x2a8] sm:$0xff] }
 0x434   :  { %2248 = vmatpush1.msra.mxu0 %v2168_v14  ;;  %2311 = vmatprep.mubr.f32.mxu0 %v15782_v1  ;;  %v2706_v20 = vsel %vm2702_vm1, %v2701_v33, %v13172_v34  ;;  %v2703_v6 = vsel %vm2702_vm1, %v13176_v35, %v2701_v33  ;;  %v13318_v34 = vcombine.high %v3059_v40, %v3063_v41  ;;  %v3123_v33 = vld [vmem:[#allocation11 + $0x208] sm:$0xff] }
 0x435   :  { %2423 = vmatprep.subr.mxu0 %v2346_v26  ;;  %11612 = vmatpush1.bf16.msra.mxu1 %v13261_v21  ;;  %v2879_v35 = vsel %vm2878_vm3, %v13197_v47, %v2877_v38  ;;  %v13375_v26 = vcombine.high %v3114_v17, %v3118_v18 }
 0x436   :  { %11614 = vmatprep.subr.bf16.mxu1 %v13264_v16 }
 0x437   :  { %11352 = vmatmul.mubr.msk.f32.vlgmr.msra.gmra.mrb[20].mxu0 %vm225_vm2, %v13154_v27  ;;  %v13294_v27 = vcombine.high %v3106_v3, %v3110_v30  ;;  %v13381_v3 = vcombine.high %v3115_v19, %v3119_v28  ;;  %v3122_v30 = vld [vmem:[#allocation11 + $0x200] sm:$0xff] }
 0x438   :  { %2424 = vmatpush1.msra.mxu0 %v2343_v23  ;;  %2487 = vmatprep.mubr.f32.mxu0 %v15782_v1  ;;  %v13379_v23 = vcombine.low %v3114_v17, %v3118_v18  ;;  %v13416_v17 = vcombine.high %v3139_v62, %v3143_v7  ;;  %v3146_v18 = vld [vmem:[#allocation11 + $0x2c0] sm:$0xff] }
 0x439   :  { %2599 = vmatprep.subr.mxu0 %v2522_v31  ;;  %11616 = vmatpush1.bf16.msra.mxu1 %v13276_v29  ;;  %v3126_v31 = vld [vmem:[#allocation11 + $0x220] sm:$0xff] }
 0x43a   :  { %11618 = vmatprep.subr.bf16.mxu1 %v13279_v22  ;;  %15942 = vst [vmem:[#allocation32_spill] sm:$0xff] %v13416_v17 }
 0x43b   :  { %11354 = vmatmul.mubr.msk.f32.vlgmr.msra.gmra.mrb[22].mxu0 %vm225_vm2, %v13167_v32  ;;  %v2882_v32 = vsel %vm2878_vm3, %v2877_v38, %v13201_v48  ;;  %v3079_v48 = vld [vmem:[#allocation11 + $0xa8] sm:$0xff]  ;;  %v13389_v38 = vcombine.low %v3122_v30, %v3126_v31 }
 0x43c   :  { %2600 = vmatpush1.msra.mxu0 %v2519_v4  ;;  %2663 = vmatprep.mubr.f32.mxu0 %v15782_v1  ;;  %v13338_v47 = vcombine.high %v3075_v46, %v3079_v48  ;;  %v13341_v55 = vcombine.low %v3075_v46, %v3079_v48  ;;  %v13384_v4 = vcombine.low %v3115_v19, %v3119_v28  ;;  %v3135_v48 = vld [vmem:[#allocation11 + $0x268] sm:$0xff]  ;;  %v3150_v19 = vld [vmem:[#allocation11 + $0x2e0] sm:$0xff] }
 0x43d   :  { %2783 = vmatprep.subr.mxu0 %v2706_v20  ;;  %11620 = vmatpush1.bf16.msra.mxu1 %v13291_v36  ;;  %v13387_v20 = vcombine.high %v3122_v30, %v3126_v31  ;;  %15934 = vst [vmem:[#allocation24_spill] sm:$0xff] %v13389_v38  ;;  %v3147_v28 = vld [vmem:[#allocation11 + $0x2c8] sm:$0xff]  ;;  %v13420_v30 = vcombine.low %v3139_v62, %v3143_v7 }
 0x43e   :  { %11622 = vmatprep.subr.bf16.mxu1 %v13294_v27  ;;  %v13423_v31 = vcombine.high %v3146_v18, %v3150_v19  ;;  %v3159_v62 = vld [vmem:[#allocation11 + $0x328] sm:$0xff] }
 0x43f   :  { %11356 = vmatmul.mubr.msk.f32.vlgmr.msra.gmra.mrb[24].mxu0 %vm225_vm2, %v13182_v37  ;;  %v13327_v37 = vcombine.low %v3059_v40, %v3063_v41  ;;  %v3127_v40 = vld [vmem:[#allocation11 + $0x228] sm:$0xff]  ;;  %15943 = vst [vmem:[#allocation33_spill] sm:$0xff] %v13420_v30 }
 0x440   :  { %2784 = vmatpush1.msra.mxu0 %v2703_v6  ;;  %2847 = vmatprep.mubr.f32.mxu0 %v15782_v1  ;;  %v13392_v41 = vcombine.high %v3123_v33, %v3127_v40  ;;  %v3130_v6 = vld [vmem:[#allocation11 + $0x240] sm:$0xff]  ;;  %15944 = vst [vmem:[#allocation34_spill] sm:$0xff] %v13423_v31 }
 0x441   :  { %2959 = vmatprep.subr.mxu0 %v2882_v32  ;;  %11624 = vmatpush1.bf16.msra.mxu1 %v13306_v39  ;;  %v3134_v32 = vld [vmem:[#allocation11 + $0x260] sm:$0xff] }
 0x442   :  { %11626 = vmatprep.subr.bf16.mxu1 %v13375_v26  ;;  %v13401_v46 = vcombine.low %v3130_v6, %v3134_v32 }
 0x443   :  { %11358 = vmatmul.mubr.msk.f32.vlgmr.msra.gmra.mrb[26].mxu0 %vm225_vm2, %v13194_v42  ;;  %v13335_v42 = vcombine.low %v3067_v43, %v3071_v44  ;;  %v3131_v43 = vld [vmem:[#allocation11 + $0x248] sm:$0xff]  ;;  %v13396_v44 = vcombine.low %v3123_v33, %v3127_v40  ;;  %v13426_v40 = vcombine.low %v3146_v18, %v3150_v19  ;;  %v3162_v19 = vld [vmem:[#allocation11 + $0x340] sm:$0xff] }
 0x444   :  { %2960 = vmatpush1.msra.mxu0 %v2879_v35  ;;  %3023 = vmatprep.mubr.f32.mxu0 %v15782_v1  ;;  %v13399_v35 = vcombine.high %v3130_v6, %v3134_v32  ;;  %15937 = vst [vmem:[#allocation27_spill] sm:$0xff] %v13401_v46  ;;  %v13404_v50 = vcombine.high %v3131_v43, %v3135_v48  ;;  %v3151_v33 = vld [vmem:[#allocation11 + $0x2e8] sm:$0xff]  ;;  %v3154_v32 = vld [vmem:[#allocation11 + $0x300] sm:$0xff] }
 0x445   :  { %11662 = vmatprep.subr.bf16.mxu0 %v13318_v34  ;;  %11628 = vmatpush1.bf16.msra.mxu1 %v13379_v23  ;;  %15935 = vst [vmem:[#allocation25_spill] sm:$0xff] %v13396_v44  ;;  %15945 = vst [vmem:[#allocation35_spill] sm:$0xff] %v13426_v40  ;;  %v13428_v6 = vcombine.high %v3147_v28, %v3151_v33  ;;  %v3166_v1 = vld [vmem:[#allocation11 + $0x360] sm:$0xff] }
 0x446   :  { %11630 = vmatprep.subr.bf16.mxu1 %v13387_v20  ;;  %15936 = vst [vmem:[#allocation26_spill] sm:$0xff] %v13399_v35  ;;  %15938 = vst [vmem:[#allocation28_spill] sm:$0xff] %v13404_v50 }
 0x447   :  { %11360 = vmatmul.mubr.msk.f32.vlgmr.msra.gmra.mrb[28].mxu0 %vm225_vm2, %v13212_v52  ;;  %v3095_v52 = vld [vmem:[#allocation11 + $0x128] sm:$0xff]  ;;  %15946 = vst [vmem:[#allocation36_spill] sm:$0xff] %v13428_v6 }
 0x448   :  { %11664 = vmatpush1.bf16.msra.mxu0 %v13327_v37  ;;  %v13350_v59 = vcombine.high %v3091_v57, %v3095_v52  ;;  %v13353_v0 = vcombine.low %v3091_v57, %v3095_v52  ;;  %v3142_v57 = vld [vmem:[#allocation11 + $0x2a0] sm:$0xff]  ;;  %v13408_v52 = vcombine.low %v3131_v43, %v3135_v48  ;;  %v3155_v48 = vld [vmem:[#allocation11 + $0x308] sm:$0xff] }
 0x449   :  { %11666 = vmatprep.subr.bf16.mxu0 %v13330_v45  ;;  %11632 = vmatpush1.bf16.msra.mxu1 %v13389_v38  ;;  %v13411_v60 = vcombine.high %v3138_v51, %v3142_v57  ;;  %v13414_v8 = vcombine.low %v3138_v51, %v3142_v57  ;;  %v3158_v43 = vld [vmem:[#allocation11 + $0x320] sm:$0xff]  ;;  %v13432_v51 = vcombine.low %v3147_v28, %v3151_v33 }
 0x44a   :  { %11634 = vmatprep.subr.bf16.mxu1 %v13399_v35  ;;  %15939 = vst [vmem:[#allocation29_spill] sm:$0xff] %v13408_v52  ;;  %v13435_v57 = vcombine.high %v3154_v32, %v3158_v43  ;;  %v13438_v7 = vcombine.low %v3154_v32, %v3158_v43  ;;  %v13440_v18 = vcombine.high %v3155_v48, %v3159_v62 }
 0x44b   :  { %15940 = vst [vmem:[#allocation30_spill] sm:$0xff] %v13411_v60  ;;  %15941 = vst [vmem:[#allocation31_spill] sm:$0xff] %v13414_v8  ;;  %v13444_v28 = vcombine.low %v3155_v48, %v3159_v62  ;;  %v13447_v33 = vcombine.high %v3162_v19, %v3166_v1  ;;  %v13450_v32 = vcombine.low %v3162_v19, %v3166_v1 }
 0x44c   :  { %11668 = vmatpush1.bf16.msra.mxu0 %v13335_v42  ;;  %15947 = vst [vmem:[#allocation37_spill] sm:$0xff] %v13432_v51  ;;  %15948 = vst [vmem:[#allocation38_spill] sm:$0xff] %v13435_v57 }
 0x44d   :  { %11670 = vmatprep.subr.bf16.mxu0 %v13338_v47  ;;  %11636 = vmatpush1.bf16.msra.mxu1 %v13401_v46  ;;  %15949 = vst [vmem:[#allocation39_spill] sm:$0xff] %v13438_v7  ;;  %15950 = vst [vmem:[#allocation40_spill] sm:$0xff] %v13440_v18 }
 0x44e   :  { %11638 = vmatprep.subr.bf16.mxu1 %v13411_v60  ;;  %15951 = vst [vmem:[#allocation41_spill] sm:$0xff] %v13444_v28  ;;  %15952 = vst [vmem:[#allocation42_spill] sm:$0xff] %v13447_v33 }
 0x44f   :  { %15953 = vst [vmem:[#allocation43_spill] sm:$0xff] %v13450_v32 }
 0x450   :  { %11672 = vmatpush1.bf16.msra.mxu0 %v13341_v55 }
 0x451   :  { %11674 = vmatprep.subr.bf16.mxu0 %v13344_v56  ;;  %11640 = vmatpush1.bf16.msra.mxu1 %v13414_v8 }
 0x452   :  { %11642 = vmatprep.subr.bf16.mxu1 %v13423_v31  ;;  %v3163_v31 = vld [vmem:[#allocation11 + $0x348] sm:$0xff] }
 0x454   :  { %11676 = vmatpush1.bf16.msra.mxu0 %v13347_v58 }
 0x455   :  { %11678 = vmatprep.subr.bf16.mxu0 %v13350_v59  ;;  %11644 = vmatpush1.bf16.msra.mxu1 %v13426_v40  ;;  %v3167_v40 = vld [vmem:[#allocation11 + $0x368] sm:$0xff] }
 0x456   :  { %11646 = vmatprep.subr.bf16.mxu1 %v13435_v57  ;;  %v13452_v43 = vcombine.high %v3163_v31, %v3167_v40  ;;  %v3170_v57 = vld [vmem:[#allocation11 + $0x380] sm:$0xff]  ;;  %v13456_v48 = vcombine.low %v3163_v31, %v3167_v40 }
 0x458   :  { %11680 = vmatpush1.bf16.msra.mxu0 %v13353_v0  ;;  %15954 = vst [vmem:[#allocation44_spill] sm:$0xff] %v13452_v43  ;;  %15955 = vst [vmem:[#allocation45_spill] sm:$0xff] %v13456_v48 }
 0x459   :  { %11682 = vmatprep.subr.bf16.mxu0 %v13356_v2  ;;  %11648 = vmatpush1.bf16.msra.mxu1 %v13438_v7  ;;  %v3175_v7 = vld [vmem:[#allocation11 + $0x3a8] sm:$0xff] }
 0x45a   :  { %11650 = vmatprep.subr.bf16.mxu1 %v13447_v33  ;;  %v3178_v33 = vld [vmem:[#allocation11 + $0x3c0] sm:$0xff] }
 0x45b   :  { %v13364_v13 = vpop.f32.mrb[12].mxu1  ;;  %v13366_v15 = vpop.f32.mrb[12].mxu0 }
 0x45c   :  { %v13368_v14 = vpop.f32.mrb[13].mxu1  ;;  %v13370_v24 = vpop.f32.mrb[13].mxu0  ;;  %11684 = vmatpush1.bf16.msra.mxu0 %v13359_v9 }
 0x45d   :  { %11686 = vmatprep.subr.bf16.mxu0 %v13362_v10  ;;  %11652 = vmatpush1.bf16.msra.mxu1 %v13450_v32  ;;  %v3183_v32 = vld [vmem:[#allocation11 + $0x3e8] sm:$0xff] }
 0x460   :  { %11688 = vmatpush1.bf16.msra.mxu0 %v13373_v25 }
 0x461   :  { %11690 = vmatprep.subr.bf16.mxu0 %v13381_v3 }
 0x464   :  { %11692 = vmatpush1.bf16.msra.mxu0 %v13384_v4 }
 0x465   :  { %11694 = vmatprep.subr.bf16.mxu0 %v13392_v41 }
 0x468   :  { %11696 = vmatpush1.bf16.msra.mxu0 %v13396_v44 }
 0x469   :  { %11698 = vmatprep.subr.bf16.mxu0 %v13404_v50 }
 0x46c   :  { %11700 = vmatpush1.bf16.msra.mxu0 %v13408_v52 }
 0x46d   :  { %11702 = vmatprep.subr.bf16.mxu0 %v13416_v17 }
 0x470   :  { %11704 = vmatpush1.bf16.msra.mxu0 %v13420_v30  ;;  %v3171_v30 = vld [vmem:[#allocation11 + $0x388] sm:$0xff] }
 0x471   :  { %11706 = vmatprep.subr.bf16.mxu0 %v13428_v6  ;;  %v3174_v6 = vld [vmem:[#allocation11 + $0x3a0] sm:$0xff]  ;;  %v13464_v19 = vcombine.high %v3171_v30, %v3175_v7  ;;  %v13468_v31 = vcombine.low %v3171_v30, %v3175_v7  ;;  %v3061_v7 = vld [vmem:[#allocation11 + $0x18] sm:$0xff] }
 0x472   :  { %v13459_v62 = vcombine.high %v3170_v57, %v3174_v6  ;;  %v13462_v1 = vcombine.low %v3170_v57, %v3174_v6 }
 0x473   :  { %15958 = vst [vmem:[#allocation48_spill] sm:$0xff] %v13464_v19  ;;  %15959 = vst [vmem:[#allocation49_spill] sm:$0xff] %v13468_v31 }
 0x474   :  { %11708 = vmatpush1.bf16.msra.mxu0 %v13432_v51  ;;  %15956 = vst [vmem:[#allocation46_spill] sm:$0xff] %v13459_v62  ;;  %15957 = vst [vmem:[#allocation47_spill] sm:$0xff] %v13462_v1  ;;  %11654 = vmatprep.subr.bf16.mxu1 %v13459_v62  ;;  %v3179_v51 = vld [vmem:[#allocation11 + $0x3c8] sm:$0xff]  ;;  %v3060_v62 = vld [vmem:[#allocation11 + $0x10] sm:$0xff] }
 0x475   :  { %11710 = vmatprep.subr.bf16.mxu0 %v13440_v18  ;;  %v3182_v18 = vld [vmem:[#allocation11 + $0x3e0] sm:$0xff]  ;;  %11656 = vmatpush1.bf16.msra.mxu1 %v13462_v1  ;;  %v13476_v57 = vcombine.high %v3179_v51, %v3183_v32  ;;  %v3065_v1 = vld [vmem:[#allocation11 + $0x38] sm:$0xff] }
 0x476   :  { %v13471_v40 = vcombine.high %v3178_v33, %v3182_v18  ;;  %v13474_v6 = vcombine.low %v3178_v33, %v3182_v18  ;;  %v13488_v33 = vcombine.high %v3061_v7, %v3065_v1 }
 0x477   :  { %15962 = vst [vmem:[#allocation52_spill] sm:$0xff] %v13476_v57 }
 0x478   :  { %11712 = vmatpush1.bf16.msra.mxu0 %v13444_v28  ;;  %15960 = vst [vmem:[#allocation50_spill] sm:$0xff] %v13471_v40  ;;  %15961 = vst [vmem:[#allocation51_spill] sm:$0xff] %v13474_v6  ;;  %11658 = vmatprep.subr.bf16.mxu1 %v13471_v40 }
 0x479   :  { %11714 = vmatprep.subr.bf16.mxu0 %v13452_v43  ;;  %v3064_v43 = vld [vmem:[#allocation11 + $0x30] sm:$0xff]  ;;  %11660 = vmatpush1.bf16.msra.mxu1 %v13474_v6  ;;  %15966 = vst [vmem:[#allocation56_spill] sm:$0xff] %v13488_v33  ;;  %v13498_v6 = vadd.s32 128, %v13017_v5 }
 0x47a   :  { %v13483_v30 = vcombine.high %v3060_v62, %v3064_v43  ;;  %v13486_v18 = vcombine.low %v3060_v62, %v3064_v43 }
 0x47b   :  { %15968 = vst [vmem:[#allocation58_spill] sm:$0xff] %v13498_v6 }
 0x47c   :  { %11716 = vmatpush1.bf16.msra.mxu0 %v13456_v48  ;;  %v13480_v48 = vcombine.low %v3179_v51, %v3183_v32  ;;  %15964 = vst [vmem:[#allocation54_spill] sm:$0xff] %v13483_v30  ;;  %15965 = vst [vmem:[#allocation55_spill] sm:$0xff] %v13486_v18  ;;  %11726 = vmatprep.subr.bf16.mxu1 %v13483_v30  ;;  %v1366_v51 = vand.u32 15, %v13017_v5  ;;  %v1414_v32 = vand.u32 255, %v13017_v5 }
 0x47d   :  { %11718 = vmatprep.subr.bf16.mxu0 %v13464_v19  ;;  %v13490_v19 = vcombine.low %v3061_v7, %v3065_v1  ;;  %v1373_v1 = vand.u32 15, %v13498_v6  ;;  %v13513_v7 = vpop.permute.xlu1 %1462 }
 0x47e   :  { %15963 = vst [vmem:[#allocation53_spill] sm:$0xff] %v13480_v48  ;;  %vm13500_vm4 = vcmp.ge.s32.totalorder %v1366_v51, 1  ;;  %vm13504_vm5 = vcmp.ge.s32.totalorder %v1414_v32, 16  ;;  %v1535_v30 = vadd.f32 %v13364_v13, %v13513_v7  ;;  %vm13525_vm8 = vcmp.le.s32.totalorder %v1366_v51, 14 }
 0x47f   :  { %15967 = vst [vmem:[#allocation57_spill] sm:$0xff] %v13490_v19  ;;  %vm1778_vm6 = vmand %vm13500_vm4, %vm13504_vm5  ;;  %vm13515_vm7 = vcmp.ge.s32.totalorder %v1373_v1, 1  ;;  %vm13535_vm10 = vcmp.le.s32.totalorder %v1373_v1, 14 }
 0x480   :  { %11720 = vmatpush1.bf16.msra.mxu0 %v13468_v31  ;;  %vm2138_vm9 = vmand %vm13525_vm8, %vm13504_vm5 }
 0x481   :  { %11722 = vmatprep.subr.bf16.mxu0 %v13476_v57 }
 0x484   :  { %11724 = vmatpush1.bf16.msra.mxu0 %v13480_v48  ;;  %v1537_v48 = vadd.f32 %v13368_v14, %v13513_v7 }
 0x485   :  { %11790 = vmatprep.subr.bf16.mxu0 %v13488_v33 }
 0x4dd   :  { %v1694_v32 = vpop.f32.mrb[14].mxu1 }
 0x4de   :  { %v1790_v57 = vsel %vm1778_vm6, %v1694_v32, 0.0  ;;  %v1696_v40 = vpop.f32.mrb[15].mxu1 }
 0x4df   :  { %v1794_v31 = vadd.f32 %v1790_v57, %v1535_v30  ;;  %v1791_v28 = vsel %vm13515_vm7, %v1696_v40, 0.0 }
 0x4e0   :  { %v1795_v8 = vadd.f32 %v1791_v28, %v1537_v48 }
 0x4e2   :  { %v1882_v60 = vpop.f32.mrb[16].mxu1 }
 0x4e3   :  { %v1966_v52 = vsel %vm13504_vm5, %v1882_v60, 0.0  ;;  %v1884_v13 = vpop.f32.mrb[17].mxu1 }
 0x4e4   :  { %v1970_v46 = vadd.f32 %v1966_v52, %v1794_v31  ;;  %v1971_v50 = vadd.f32 %v1884_v13, %v1795_v8  ;;  %v1421_v52 = vand.u32 255, %v13498_v6 }
 0x4e6   :  { %v2058_v28 = vpop.f32.mrb[18].mxu1  ;;  %vm13546_vm11 = vcmp.lt.s32.totalorder %v1421_v52, 240 }
 0x4e7   :  { %v2150_v48 = vsel %vm2138_vm9, %v2058_v28, 0.0  ;;  %v2060_v40 = vpop.f32.mrb[19].mxu1  ;;  %vm2675_vm12 = vmand %vm13515_vm7, %vm13546_vm11 }
 0x4e8   :  { %v2154_v57 = vadd.f32 %v2150_v48, %v1970_v46  ;;  %v2151_v30 = vsel %vm13535_vm10, %v2060_v40, 0.0  ;;  %vm3031_vm13 = vmand %vm13535_vm10, %vm13546_vm11 }
 0x4e9   :  { %v2155_v60 = vadd.f32 %v2151_v30, %v1971_v50 }
 0x4ea   :  { %v2242_v51 = vpop.f32.mrb[20].mxu1 }
 0x4eb   :  { %v2326_v8 = vsel %vm13500_vm4, %v2242_v51, 0.0  ;;  %v2244_v31 = vpop.f32.mrb[21].mxu1 }
 0x4ec   :  { %v2330_v62 = vadd.f32 %v2326_v8, %v2154_v57  ;;  %v2327_v1 = vsel %vm13515_vm7, %v2244_v31, 0.0  ;;  %v13559_v57 = vadd.s32 256, %v13017_v5 }
 0x4ed   :  { %v2331_v32 = vadd.f32 %v2327_v1, %v2155_v60 }
 0x4ee   :  { %v2418_v13 = vpop.f32.mrb[22].mxu1  ;;  %15981 = vst [vmem:[#allocation59_spill] sm:$0xff] %v13559_v57  ;;  %v1380_v1 = vand.u32 15, %v13559_v57 }
 0x4ef   :  { %v2502_v46 = vsel %vm13525_vm8, %v2418_v13, 0.0  ;;  %v2420_v50 = vpop.f32.mrb[23].mxu1  ;;  %v13566_v13 = vadd.s32 384, %v13017_v5  ;;  %v3076_v5 = vld [vmem:[#allocation11 + $0x90] sm:$0xff] }
 0x4f0   :  { %v2506_v48 = vadd.f32 %v2502_v46, %v2330_v62  ;;  %v2503_v40 = vsel %vm13535_vm10, %v2420_v50, 0.0  ;;  %vm13574_vm0 = vcmp.ge.s32.totalorder %v1380_v1, 1  ;;  %vm13606_vm5 = vcmp.le.s32.totalorder %v1380_v1, 14 }
 0x4f1   :  { %v2507_v30 = vadd.f32 %v2503_v40, %v2331_v32  ;;  %v1428_v32 = vand.u32 255, %v13559_v57  ;;  %15982 = vst [vmem:[#allocation60_spill] sm:$0xff] %v13566_v13 }
 0x4f2   :  { %v2594_v60 = vpop.f32.mrb[24].mxu1 }
 0x4f3   :  { %v2686_v51 = vsel %vm13500_vm4, %v2594_v60, 0.0  ;;  %v2596_v52 = vpop.f32.mrb[25].mxu1  ;;  %vm13578_vm1 = vcmp.ge.s32.totalorder %v1428_v32, 16  ;;  %v1606_v32 = vadd.f32 %v13366_v15, %v13513_v7  ;;  %v3080_v15 = vld [vmem:[#allocation11 + $0xb0] sm:$0xff] }
 0x4f4   :  { %v2690_v8 = vadd.f32 %v2686_v51, %v2506_v48  ;;  %v2687_v31 = vsel %vm2675_vm12, %v2596_v52, 0.0  ;;  %vm1780_vm3 = vmand %vm13574_vm0, %vm13578_vm1  ;;  %vm4045_vm12 = vcmask 31744  }
 0x4f5   :  { %v2691_v62 = vadd.f32 %v2687_v31, %v2507_v30  ;;  %v1387_v30 = vand.u32 15, %v13566_v13  ;;  %vm2140_vm6 = vmand %vm13606_vm5, %vm13578_vm1 }
 0x4f6   :  { %v2778_v33 = vpop.f32.mrb[26].mxu1 }
 0x4f7   :  { %v2866_v46 = vadd.f32 %v2778_v33, %v2690_v8  ;;  %v2780_v50 = vpop.f32.mrb[27].mxu1  ;;  %vm13589_vm4 = vcmp.ge.s32.totalorder %v1387_v30, 1  ;;  %vm13630_vm7 = vcmp.le.s32.totalorder %v1387_v30, 14 }
 0x4f8   :  { %v2863_v40 = vsel %vm13546_vm11, %v2780_v50, 0.0  ;;  %v3072_v50 = vld [vmem:[#allocation11 + $0x70] sm:$0xff]  ;;  %vm4049_vm11 = vcmask 1043456  }
 0x4f9   :  { %v2867_v6 = vadd.f32 %v2863_v40, %v2691_v62  ;;  %v3068_v62 = vld [vmem:[#allocation11 + $0x50] sm:$0xff]  ;;  %v3073_v40 = vld [vmem:[#allocation11 + $0x78] sm:$0xff] }
 0x4fa   :  { %v2954_v60 = vpop.f32.mrb[28].mxu1  ;;  %v13602_v35 = vcombine.high %v3068_v62, %v3072_v50 }
 0x4fb   :  { %v3042_v51 = vsel %vm13525_vm8, %v2954_v60, 0.0  ;;  %v2956_v52 = vpop.f32.mrb[29].mxu1  ;;  %v1608_v60 = vadd.f32 %v13370_v24, %v13513_v7  ;;  %v3077_v7 = vld [vmem:[#allocation11 + $0x98] sm:$0xff] }
 0x4fc   :  { %v3046_v8 = vadd.f32 %v3042_v51, %v2866_v46  ;;  %v3043_v28 = vsel %vm3031_vm13, %v2956_v52, 0.0  ;;  %v3069_v46 = vld [vmem:[#allocation11 + $0x58] sm:$0xff]  ;;  %15989 = vst [vmem:[#allocation61_spill] sm:$0xff] %v13602_v35 }
 0x4fd   :  { %v3047_v14 = vadd.f32 %v3043_v28, %v2867_v6  ;;  %v13604_v44 = vcombine.high %v3069_v46, %v3073_v40  ;;  %v13618_v1 = vcombine.low %v3069_v46, %v3073_v40  ;;  %v3085_v46 = vld [vmem:[#allocation11 + $0xd8] sm:$0xff] }
 0x4fe   :  { %v13595_v33 = vmax.f32 %v3046_v8, 0.0  ;;  %v1765_v17 = vpop.f32.mrb[14].mxu0  ;;  %v3089_v40 = vld [vmem:[#allocation11 + $0xf8] sm:$0xff] }
 0x4ff   :  { %v3051_v51 = vmax.f32 %v3047_v14, 0.0  ;;  %v1792_v52 = vsel %vm1780_vm3, %v1765_v17, 0.0  ;;  %v1767_v6 = vpop.f32.mrb[15].mxu0  ;;  %15990 = vst [vmem:[#allocation62_spill] sm:$0xff] %v13604_v44  ;;  %v3081_v14 = vld [vmem:[#allocation11 + $0xb8] sm:$0xff]  ;;  %15994 = vst [vmem:[#allocation64_spill] sm:$0xff] %v13618_v1 }
 0x500   :  { %3054 = vst [vmem:[#allocation14] sm:$0xff] %v13595_v33  ;;  %v1796_v28 = vadd.f32 %v1792_v52, %v1606_v32  ;;  %v1793_v57 = vsel %vm13589_vm4, %v1767_v6, 0.0  ;;  %v13620_v52 = vcombine.high %v3076_v5, %v3080_v15 }
 0x501   :  { %3055 = vst [vmem:[#allocation14 + $0x8] sm:$0xff] %v3051_v51  ;;  %v1797_v8 = vadd.f32 %v1793_v57, %v1608_v60  ;;  %3506 = vmatprep.mubr.f32.mxu1 %v3051_v51  ;;  %3577 = vmatprep.mubr.f32.mxu0 %v3051_v51  ;;  %v13616_v60 = vcombine.low %v3068_v62, %v3072_v50  ;;  %v3088_v50 = vld [vmem:[#allocation11 + $0xf0] sm:$0xff] }
 0x502   :  { %v1953_v32 = vpop.f32.mrb[16].mxu0  ;;  %3507 = vmatmul.mubr.f32.vlgmr.msra.gmra.mrb[30].mxu1 %v13595_v33  ;;  %3578 = vmatmul.mubr.f32.vlgmr.msra.gmra.mrb[30].mxu0 %v13595_v33 }
 0x503   :  { %v1968_v57 = vsel %vm13578_vm1, %v1953_v32, 0.0  ;;  %11728 = vmatpush1.bf16.msra.mxu1 %v13486_v18  ;;  %11792 = vmatpush1.bf16.msra.mxu0 %v13490_v19  ;;  %v1955_v17 = vpop.f32.mrb[17].mxu0  ;;  %15993 = vst [vmem:[#allocation63_spill] sm:$0xff] %v13616_v60  ;;  %v13626_v32 = vcombine.high %v3077_v7, %v3081_v14  ;;  %v3084_v18 = vld [vmem:[#allocation11 + $0xd0] sm:$0xff]  ;;  %v3093_v19 = vld [vmem:[#allocation11 + $0x118] sm:$0xff] }
 0x504   :  { %v1972_v6 = vadd.f32 %v1968_v57, %v1796_v28  ;;  %v1973_v38 = vadd.f32 %v1955_v17, %v1797_v8  ;;  %3648 = vmatprep.mubr.f32.mxu1 %v3051_v51  ;;  %3719 = vmatprep.mubr.f32.mxu0 %v3051_v51  ;;  %v13636_v8 = vcombine.low %v3076_v5, %v3080_v15  ;;  %v3097_v5 = vld [vmem:[#allocation11 + $0x138] sm:$0xff]  ;;  %v1435_v15 = vand.u32 255, %v13566_v13  ;;  %v3100_v13 = vld [vmem:[#allocation11 + $0x150] sm:$0xff] }
 0x505   :  { %15995 = vst [vmem:[#allocation65_spill] sm:$0xff] %v13626_v32  ;;  %11730 = vmatprep.subr.bf16.mxu1 %v13602_v35  ;;  %11794 = vmatprep.subr.bf16.mxu0 %v13604_v44  ;;  %v13638_v57 = vcombine.low %v3077_v7, %v3081_v14  ;;  %v13644_v44 = vcombine.high %v3084_v18, %v3088_v50 }
 0x506   :  { %v2129_v51 = vpop.f32.mrb[18].mxu0  ;;  %15998 = vst [vmem:[#allocation66_spill] sm:$0xff] %v13636_v8  ;;  %vm13665_vm8 = vcmp.lt.s32.totalorder %v1435_v15, 240 }
 0x507   :  { %v2152_v28 = vsel %vm2140_vm6, %v2129_v51, 0.0  ;;  %11732 = vmatpush1.bf16.msra.mxu1 %v13616_v60  ;;  %11796 = vmatpush1.bf16.msra.mxu0 %v13618_v1  ;;  %v2131_v48 = vpop.f32.mrb[19].mxu0  ;;  %15999 = vst [vmem:[#allocation67_spill] sm:$0xff] %v13638_v57  ;;  %v13646_v51 = vcombine.high %v3085_v46, %v3089_v40  ;;  %v3092_v60 = vld [vmem:[#allocation11 + $0x110] sm:$0xff]  ;;  %vm2677_vm9 = vmand %vm13589_vm4, %vm13665_vm8 }
 0x508   :  { %v2156_v17 = vadd.f32 %v2152_v28, %v1972_v6  ;;  %v2153_v30 = vsel %vm13630_vm7, %v2131_v48, 0.0  ;;  %11734 = vmatprep.subr.bf16.mxu1 %v13620_v52  ;;  %11798 = vmatprep.subr.bf16.mxu0 %v13626_v32  ;;  %v3096_v1 = vld [vmem:[#allocation11 + $0x130] sm:$0xff]  ;;  %v13653_v28 = vcombine.low %v3084_v18, %v3088_v50  ;;  %v13655_v48 = vcombine.low %v3085_v46, %v3089_v40  ;;  %v3101_v50 = vld [vmem:[#allocation11 + $0x158] sm:$0xff]  ;;  %vm3033_vm10 = vmand %vm13630_vm7, %vm13665_vm8 }
 0x509   :  { %16000 = vst [vmem:[#allocation68_spill] sm:$0xff] %v13646_v51  ;;  %v2157_v35 = vadd.f32 %v2153_v30, %v1973_v38  ;;  %v13661_v30 = vcombine.high %v3092_v60, %v3096_v1  ;;  %v3104_v18 = vld [vmem:[#allocation11 + $0x170] sm:$0xff]  ;;  %v3105_v46 = vld [vmem:[#allocation11 + $0x178] sm:$0xff] }
 0x50a   :  { %v2313_v7 = vpop.f32.mrb[20].mxu0  ;;  %16001 = vst [vmem:[#allocation69_spill] sm:$0xff] %v13653_v28  ;;  %16002 = vst [vmem:[#allocation70_spill] sm:$0xff] %v13655_v48 }
 0x50b   :  { %v2328_v14 = vsel %vm13574_vm0, %v2313_v7, 0.0  ;;  %11736 = vmatpush1.bf16.msra.mxu1 %v13636_v8  ;;  %11800 = vmatpush1.bf16.msra.mxu0 %v13638_v57  ;;  %v2315_v6 = vpop.f32.mrb[21].mxu0  ;;  %16003 = vst [vmem:[#allocation71_spill] sm:$0xff] %v13661_v30  ;;  %v13663_v7 = vcombine.high %v3093_v19, %v3097_v5 }
 0x50c   :  { %v2332_v32 = vadd.f32 %v2328_v14, %v2156_v17  ;;  %v2329_v38 = vsel %vm13589_vm4, %v2315_v6, 0.0  ;;  %11738 = vmatprep.subr.bf16.mxu1 %v13644_v44  ;;  %11802 = vmatprep.subr.bf16.mxu0 %v13646_v51  ;;  %v13673_v6 = vcombine.low %v3092_v60, %v3096_v1  ;;  %v13675_v51 = vcombine.low %v3093_v19, %v3097_v5  ;;  %v3108_v60 = vld [vmem:[#allocation11 + $0x190] sm:$0xff]  ;;  %v3113_v5 = vld [vmem:[#allocation11 + $0x1b8] sm:$0xff] }
 0x50d   :  { %16004 = vst [vmem:[#allocation72_spill] sm:$0xff] %v13663_v7  ;;  %v2333_v8 = vadd.f32 %v2329_v38, %v2157_v35  ;;  %v13685_v38 = vcombine.high %v3100_v13, %v3104_v18  ;;  %v3112_v1 = vld [vmem:[#allocation11 + $0x1b0] sm:$0xff] }
 0x50e   :  { %v2489_v40 = vpop.f32.mrb[22].mxu0  ;;  %v13704_v43 = vcombine.high %v3108_v60, %v3112_v1 }
 0x50f   :  { %v2504_v17 = vsel %vm13606_vm5, %v2489_v40, 0.0  ;;  %11740 = vmatpush1.bf16.msra.mxu1 %v13653_v28  ;;  %11804 = vmatpush1.bf16.msra.mxu0 %v13655_v48  ;;  %v2491_v14 = vpop.f32.mrb[23].mxu0  ;;  %16007 = vst [vmem:[#allocation73_spill] sm:$0xff] %v13685_v38  ;;  %v13687_v40 = vcombine.high %v3101_v50, %v3105_v46  ;;  %v13695_v48 = vcombine.low %v3101_v50, %v3105_v46  ;;  %v3117_v50 = vld [vmem:[#allocation11 + $0x1d8] sm:$0xff] }
 0x510   :  { %v2508_v35 = vadd.f32 %v2504_v17, %v2332_v32  ;;  %v2505_v15 = vsel %vm13630_vm7, %v2491_v14, 0.0  ;;  %11742 = vmatprep.subr.bf16.mxu1 %v13661_v30  ;;  %11806 = vmatprep.subr.bf16.mxu0 %v13663_v7  ;;  %v3109_v32 = vld [vmem:[#allocation11 + $0x198] sm:$0xff]  ;;  %v13693_v30 = vcombine.low %v3100_v13, %v3104_v18  ;;  %16011 = vst [vmem:[#allocation77_spill] sm:$0xff] %v13704_v43  ;;  %v3120_v18 = vld [vmem:[#allocation11 + $0x1f0] sm:$0xff] }
 0x511   :  { %16008 = vst [vmem:[#allocation74_spill] sm:$0xff] %v13687_v40  ;;  %v2509_v19 = vadd.f32 %v2505_v15, %v2333_v8  ;;  %16010 = vst [vmem:[#allocation76_spill] sm:$0xff] %v13695_v48  ;;  %v13706_v15 = vcombine.high %v3109_v32, %v3113_v5  ;;  %v3121_v46 = vld [vmem:[#allocation11 + $0x1f8] sm:$0xff] }
 0x512   :  { %v2665_v17 = vpop.f32.mrb[24].mxu0  ;;  %16009 = vst [vmem:[#allocation75_spill] sm:$0xff] %v13693_v30 }
 0x513   :  { %v2688_v14 = vsel %vm13574_vm0, %v2665_v17, 0.0  ;;  %11744 = vmatpush1.bf16.msra.mxu1 %v13673_v6  ;;  %11808 = vmatpush1.bf16.msra.mxu0 %v13675_v51  ;;  %v2667_v7 = vpop.f32.mrb[25].mxu0  ;;  %16012 = vst [vmem:[#allocation78_spill] sm:$0xff] %v13706_v15  ;;  %v3116_v17 = vld [vmem:[#allocation11 + $0x1d0] sm:$0xff] }
 0x514   :  { %v2692_v28 = vadd.f32 %v2688_v14, %v2508_v35  ;;  %v2689_v8 = vsel %vm2677_vm9, %v2667_v7, 0.0  ;;  %11746 = vmatprep.subr.bf16.mxu1 %v13685_v38  ;;  %11810 = vmatprep.subr.bf16.mxu0 %v13687_v40  ;;  %v13710_v7 = vcombine.low %v3108_v60, %v3112_v1  ;;  %v13712_v38 = vcombine.low %v3109_v32, %v3113_v5  ;;  %v3124_v60 = vld [vmem:[#allocation11 + $0x210] sm:$0xff]  ;;  %v3125_v5 = vld [vmem:[#allocation11 + $0x218] sm:$0xff] }
 0x515   :  { %v2693_v13 = vadd.f32 %v2689_v8, %v2509_v19  ;;  %v13724_v19 = vcombine.high %v3117_v50, %v3121_v46  ;;  %v3128_v32 = vld [vmem:[#allocation11 + $0x230] sm:$0xff]  ;;  %v3129_v8 = vld [vmem:[#allocation11 + $0x238] sm:$0xff] }
 0x516   :  { %v2849_v35 = vpop.f32.mrb[26].mxu0  ;;  %v13741_v24 = vcombine.high %v3124_v60, %v3128_v32  ;;  %v13751_v57 = vcombine.low %v3124_v60, %v3128_v32 }
 0x517   :  { %v2868_v14 = vadd.f32 %v2849_v35, %v2692_v28  ;;  %11748 = vmatpush1.bf16.msra.mxu1 %v13693_v30  ;;  %11812 = vmatpush1.bf16.msra.mxu0 %v13695_v48  ;;  %v2851_v31 = vpop.f32.mrb[27].mxu0  ;;  %v13722_v28 = vcombine.high %v3116_v17, %v3120_v18  ;;  %16013 = vst [vmem:[#allocation79_spill] sm:$0xff] %v13724_v19 }
 0x518   :  { %v2865_v40 = vsel %vm13665_vm8, %v2851_v31, 0.0  ;;  %11750 = vmatprep.subr.bf16.mxu1 %v13704_v43  ;;  %11814 = vmatprep.subr.bf16.mxu0 %v13706_v15  ;;  %v13730_v43 = vcombine.low %v3116_v17, %v3120_v18  ;;  %v13732_v48 = vcombine.low %v3117_v50, %v3121_v46  ;;  %16016 = vst [vmem:[#allocation82_spill] sm:$0xff] %v13741_v24  ;;  %v3136_v18 = vld [vmem:[#allocation11 + $0x270] sm:$0xff]  ;;  %v3133_v50 = vld [vmem:[#allocation11 + $0x258] sm:$0xff]  ;;  %16018 = vst [vmem:[#allocation84_spill] sm:$0xff] %v13751_v57 }
 0x519   :  { %v2869_v1 = vadd.f32 %v2865_v40, %v2693_v13  ;;  %v13743_v13 = vcombine.high %v3125_v5, %v3129_v8  ;;  %v3137_v46 = vld [vmem:[#allocation11 + $0x278] sm:$0xff] }
 0x51a   :  { %v3025_v35 = vpop.f32.mrb[28].mxu0  ;;  %16014 = vst [vmem:[#allocation80_spill] sm:$0xff] %v13730_v43  ;;  %16015 = vst [vmem:[#allocation81_spill] sm:$0xff] %v13732_v48  ;;  %v13767_v32 = vcombine.low %v3133_v50, %v3137_v46 }
 0x51b   :  { %v3044_v31 = vsel %vm13606_vm5, %v3025_v35, 0.0  ;;  %11752 = vmatpush1.bf16.msra.mxu1 %v13710_v7  ;;  %11816 = vmatpush1.bf16.msra.mxu0 %v13712_v38  ;;  %v3027_v15 = vpop.f32.mrb[29].mxu0  ;;  %16017 = vst [vmem:[#allocation83_spill] sm:$0xff] %v13743_v13  ;;  %v3132_v35 = vld [vmem:[#allocation11 + $0x250] sm:$0xff] }
 0x51c   :  { %v3048_v30 = vadd.f32 %v3044_v31, %v2868_v14  ;;  %v3045_v40 = vsel %vm3033_vm10, %v3027_v15, 0.0  ;;  %11754 = vmatprep.subr.bf16.mxu1 %v13722_v28  ;;  %11818 = vmatprep.subr.bf16.mxu0 %v13724_v19  ;;  %v13753_v15 = vcombine.low %v3125_v5, %v3129_v8  ;;  %v3140_v31 = vld [vmem:[#allocation11 + $0x290] sm:$0xff]  ;;  %v13765_v60 = vcombine.low %v3132_v35, %v3136_v18  ;;  %v3153_v19 = vld [vmem:[#allocation11 + $0x2f8] sm:$0xff] }
 0x51d   :  { %v3049_v17 = vadd.f32 %v3045_v40, %v2869_v1  ;;  %v13758_v1 = vcombine.high %v3132_v35, %v3136_v18  ;;  %v3144_v40 = vld [vmem:[#allocation11 + $0x2b0] sm:$0xff]  ;;  %16023 = vst [vmem:[#allocation89_spill] sm:$0xff] %v13767_v32 }
 0x51e   :  { %v13745_v14 = vmax.f32 %v3048_v30, 0.0  ;;  %16019 = vst [vmem:[#allocation85_spill] sm:$0xff] %v13753_v15  ;;  %v13760_v30 = vcombine.high %v3133_v50, %v3137_v46  ;;  %16022 = vst [vmem:[#allocation88_spill] sm:$0xff] %v13765_v60  ;;  %v13771_v5 = vcombine.high %v3140_v31, %v3144_v40  ;;  %v13777_v35 = vcombine.low %v3140_v31, %v3144_v40 }
 0x51f   :  { %v13747_v62 = vmax.f32 %v3049_v17, 0.0  ;;  %11756 = vmatpush1.bf16.msra.mxu1 %v13730_v43  ;;  %11820 = vmatpush1.bf16.msra.mxu0 %v13732_v48  ;;  %16020 = vst [vmem:[#allocation86_spill] sm:$0xff] %v13758_v1  ;;  %v3141_v17 = vld [vmem:[#allocation11 + $0x298] sm:$0xff] }
 0x520   :  { %3056 = vst [vmem:[#allocation14 + $0x10] sm:$0xff] %v13745_v14  ;;  %11758 = vmatprep.subr.bf16.mxu1 %v13741_v24  ;;  %11822 = vmatprep.subr.bf16.mxu0 %v13743_v13  ;;  %16021 = vst [vmem:[#allocation87_spill] sm:$0xff] %v13760_v30  ;;  %v3145_v48 = vld [vmem:[#allocation11 + $0x2b8] sm:$0xff]  ;;  %v3148_v13 = vld [vmem:[#allocation11 + $0x2d0] sm:$0xff] }
 0x521   :  { %3057 = vst [vmem:[#allocation14 + $0x18] sm:$0xff] %v13747_v62  ;;  %16024 = vst [vmem:[#allocation90_spill] sm:$0xff] %v13771_v5  ;;  %v13773_v8 = vcombine.high %v3141_v17, %v3145_v48  ;;  %v3152_v24 = vld [vmem:[#allocation11 + $0x2f0] sm:$0xff]  ;;  %v3149_v43 = vld [vmem:[#allocation11 + $0x2d8] sm:$0xff]  ;;  %v13779_v18 = vcombine.low %v3141_v17, %v3145_v48 }
 0x522   :  { %16026 = vst [vmem:[#allocation92_spill] sm:$0xff] %v13777_v35  ;;  %v13783_v50 = vcombine.high %v3148_v13, %v3152_v24  ;;  %v13785_v46 = vcombine.high %v3149_v43, %v3153_v19  ;;  %v13789_v31 = vcombine.low %v3148_v13, %v3152_v24  ;;  %v13791_v48 = vcombine.low %v3149_v43, %v3153_v19 }
 0x523   :  { %11760 = vmatpush1.bf16.msra.mxu1 %v13751_v57  ;;  %11824 = vmatpush1.bf16.msra.mxu0 %v13753_v15  ;;  %16025 = vst [vmem:[#allocation91_spill] sm:$0xff] %v13773_v8  ;;  %16027 = vst [vmem:[#allocation93_spill] sm:$0xff] %v13779_v18  ;;  %v3157_v15 = vld [vmem:[#allocation11 + $0x318] sm:$0xff] }
 0x524   :  { %11762 = vmatprep.subr.bf16.mxu1 %v13758_v1  ;;  %11826 = vmatprep.subr.bf16.mxu0 %v13760_v30  ;;  %16028 = vst [vmem:[#allocation94_spill] sm:$0xff] %v13783_v50  ;;  %16029 = vst [vmem:[#allocation95_spill] sm:$0xff] %v13785_v46  ;;  %v3156_v30 = vld [vmem:[#allocation11 + $0x310] sm:$0xff]  ;;  %v3161_v57 = vld [vmem:[#allocation11 + $0x338] sm:$0xff] }
 0x525   :  { %v3160_v1 = vld [vmem:[#allocation11 + $0x330] sm:$0xff]  ;;  %16030 = vst [vmem:[#allocation96_spill] sm:$0xff] %v13789_v31  ;;  %16031 = vst [vmem:[#allocation97_spill] sm:$0xff] %v13791_v48  ;;  %v13797_v17 = vcombine.high %v3157_v15, %v3161_v57  ;;  %v13803_v43 = vcombine.low %v3157_v15, %v3161_v57 }
 0x526   :  { %v13795_v40 = vcombine.high %v3156_v30, %v3160_v1  ;;  %v13801_v24 = vcombine.low %v3156_v30, %v3160_v1 }
 0x527   :  { %11764 = vmatpush1.bf16.msra.mxu1 %v13765_v60  ;;  %11828 = vmatpush1.bf16.msra.mxu0 %v13767_v32  ;;  %16033 = vst [vmem:[#allocation99_spill] sm:$0xff] %v13797_v17  ;;  %v3165_v32 = vld [vmem:[#allocation11 + $0x358] sm:$0xff] }
 0x528   :  { %11766 = vmatprep.subr.bf16.mxu1 %v13771_v5  ;;  %11830 = vmatprep.subr.bf16.mxu0 %v13773_v8  ;;  %16032 = vst [vmem:[#allocation98_spill] sm:$0xff] %v13795_v40  ;;  %v3164_v8 = vld [vmem:[#allocation11 + $0x350] sm:$0xff]  ;;  %v3169_v60 = vld [vmem:[#allocation11 + $0x378] sm:$0xff] }
 0x529   :  { %v3168_v5 = vld [vmem:[#allocation11 + $0x370] sm:$0xff]  ;;  %v13809_v13 = vcombine.high %v3165_v32, %v3169_v60  ;;  %v13815_v57 = vcombine.low %v3165_v32, %v3169_v60 }
 0x52a   :  { %v13807_v19 = vcombine.high %v3164_v8, %v3168_v5  ;;  %v13813_v1 = vcombine.low %v3164_v8, %v3168_v5 }
 0x52b   :  { %11768 = vmatpush1.bf16.msra.mxu1 %v13777_v35  ;;  %11832 = vmatpush1.bf16.msra.mxu0 %v13779_v18  ;;  %16034 = vst [vmem:[#allocation100_spill] sm:$0xff] %v13809_v13  ;;  %v3173_v18 = vld [vmem:[#allocation11 + $0x398] sm:$0xff] }
 0x52c   :  { %11770 = vmatprep.subr.bf16.mxu1 %v13783_v50  ;;  %11834 = vmatprep.subr.bf16.mxu0 %v13785_v46  ;;  %v3172_v46 = vld [vmem:[#allocation11 + $0x390] sm:$0xff]  ;;  %v3177_v35 = vld [vmem:[#allocation11 + $0x3b8] sm:$0xff]  ;;  %16035 = vst [vmem:[#allocation101_spill] sm:$0xff] %v13813_v1 }
 0x52d   :  { %v3176_v50 = vld [vmem:[#allocation11 + $0x3b0] sm:$0xff]  ;;  %v13821_v30 = vcombine.high %v3173_v18, %v3177_v35  ;;  %v13827_v60 = vcombine.low %v3173_v18, %v3177_v35  ;;  %v16071_v35 = vld [vmem:[#allocation62_spill] sm:$0xff]  ;;  %v16072_v18 = vld [vmem:[#allocation63_spill] sm:$0xff] }
 0x52e   :  { %v13819_v15 = vcombine.high %v3172_v46, %v3176_v50  ;;  %v13825_v5 = vcombine.low %v3172_v46, %v3176_v50  ;;  %v16073_v50 = vld [vmem:[#allocation64_spill] sm:$0xff]  ;;  %v16074_v46 = vld [vmem:[#allocation65_spill] sm:$0xff] }
 0x52f   :  { %11772 = vmatpush1.bf16.msra.mxu1 %v13789_v31  ;;  %11836 = vmatpush1.bf16.msra.mxu0 %v13791_v48  ;;  %v3181_v48 = vld [vmem:[#allocation11 + $0x3d8] sm:$0xff] }
 0x530   :  { %11774 = vmatprep.subr.bf16.mxu1 %v13795_v40  ;;  %11838 = vmatprep.subr.bf16.mxu0 %v13797_v17  ;;  %v3180_v17 = vld [vmem:[#allocation11 + $0x3d0] sm:$0xff]  ;;  %v3185_v31 = vld [vmem:[#allocation11 + $0x3f8] sm:$0xff] }
 0x531   :  { %v3184_v40 = vld [vmem:[#allocation11 + $0x3f0] sm:$0xff]  ;;  %v13833_v8 = vcombine.high %v3181_v48, %v3185_v31 }
 0x532   :  { %v13831_v32 = vcombine.high %v3180_v17, %v3184_v40 }
 0x533   :  { %11776 = vmatpush1.bf16.msra.mxu1 %v13801_v24  ;;  %11840 = vmatpush1.bf16.msra.mxu0 %v13803_v43 }
 0x534   :  { %11778 = vmatprep.subr.bf16.mxu1 %v13807_v19  ;;  %11842 = vmatprep.subr.bf16.mxu0 %v13809_v13  ;;  %v13837_v13 = vcombine.low %v3180_v17, %v3184_v40  ;;  %v16077_v40 = vld [vmem:[#allocation68_spill] sm:$0xff]  ;;  %v16079_v17 = vld [vmem:[#allocation70_spill] sm:$0xff] }
 0x537   :  { %11780 = vmatpush1.bf16.msra.mxu1 %v13813_v1  ;;  %11844 = vmatpush1.bf16.msra.mxu0 %v13815_v57  ;;  %v13839_v1 = vcombine.low %v3181_v48, %v3185_v31  ;;  %v16075_v31 = vld [vmem:[#allocation66_spill] sm:$0xff]  ;;  %v16076_v48 = vld [vmem:[#allocation67_spill] sm:$0xff] }
 0x538   :  { %11782 = vmatprep.subr.bf16.mxu1 %v13819_v15  ;;  %11846 = vmatprep.subr.bf16.mxu0 %v13821_v30 }
 0x53b   :  { %11784 = vmatpush1.bf16.msra.mxu1 %v13825_v5  ;;  %11848 = vmatpush1.bf16.msra.mxu0 %v13827_v60 }
 0x53c   :  { %11786 = vmatprep.subr.bf16.mxu1 %v13831_v32  ;;  %11850 = vmatprep.subr.bf16.mxu0 %v13833_v8 }
 0x53f   :  { %11788 = vmatpush1.bf16.msra.mxu1 %v13837_v13  ;;  %11852 = vmatpush1.bf16.msra.mxu0 %v13839_v1 }
 0x540   :  { %11854 = vmatprep.subr.bf16.mxu1 %v13203_v49  ;;  %11918 = vmatprep.subr.bf16.mxu0 %v13318_v34  ;;  %v16036_v49 = vld [vmem:[#allocation24_spill] sm:$0xff]  ;;  %v16050_v34 = vld [vmem:[#allocation38_spill] sm:$0xff] }
 0x542   :  { %3649 = vmatmul.mubr.f32.vlgmr.msra.gmra.mrb[32].mxu1 %v13595_v33  ;;  %3720 = vmatmul.mubr.f32.vlgmr.msra.gmra.mrb[32].mxu0 %v13595_v33  ;;  %v16070_v33 = vld [vmem:[#allocation61_spill] sm:$0xff] }
 0x543   :  { %11856 = vmatpush1.bf16.msra.mxu1 %v13214_v53  ;;  %3790 = vmatprep.mubr.f32.mxu1 %v13747_v62  ;;  %v16037_v53 = vld [vmem:[#allocation25_spill] sm:$0xff] }
 0x544   :  { %11920 = vmatpush1.bf16.msra.mxu0 %v13327_v37  ;;  %3861 = vmatprep.mubr.f32.mxu0 %v13747_v62  ;;  %v16051_v37 = vld [vmem:[#allocation40_spill] sm:$0xff] }
 0x545   :  { %11858 = vmatprep.subr.bf16.mxu1 %v13216_v54  ;;  %11922 = vmatprep.subr.bf16.mxu0 %v13330_v45  ;;  %v16038_v54 = vld [vmem:[#allocation26_spill] sm:$0xff]  ;;  %v16052_v45 = vld [vmem:[#allocation39_spill] sm:$0xff] }
 0x547   :  { %11860 = vmatpush1.bf16.msra.mxu1 %v13229_v61  ;;  %v16039_v61 = vld [vmem:[#allocation28_spill] sm:$0xff] }
 0x548   :  { %11924 = vmatpush1.bf16.msra.mxu0 %v13335_v42  ;;  %11862 = vmatprep.subr.bf16.mxu1 %v13234_v63  ;;  %v16040_v63 = vld [vmem:[#allocation27_spill] sm:$0xff]  ;;  %v16053_v42 = vld [vmem:[#allocation41_spill] sm:$0xff] }
 0x549   :  { %11926 = vmatprep.subr.bf16.mxu0 %v13338_v47  ;;  %v16054_v47 = vld [vmem:[#allocation42_spill] sm:$0xff] }
 0x54b   :  { %11864 = vmatpush1.bf16.msra.mxu1 %v13246_v12  ;;  %v16041_v12 = vld [vmem:[#allocation29_spill] sm:$0xff] }
 0x54c   :  { %11928 = vmatpush1.bf16.msra.mxu0 %v13341_v55  ;;  %11866 = vmatprep.subr.bf16.mxu1 %v13249_v11  ;;  %v16042_v11 = vld [vmem:[#allocation30_spill] sm:$0xff]  ;;  %v16055_v55 = vld [vmem:[#allocation44_spill] sm:$0xff] }
 0x54d   :  { %11930 = vmatprep.subr.bf16.mxu0 %v13344_v56  ;;  %v16056_v56 = vld [vmem:[#allocation43_spill] sm:$0xff] }
 0x54f   :  { %11868 = vmatpush1.bf16.msra.mxu1 %v13261_v21  ;;  %v16043_v21 = vld [vmem:[#allocation32_spill] sm:$0xff] }
 0x550   :  { %11932 = vmatpush1.bf16.msra.mxu0 %v13347_v58  ;;  %11870 = vmatprep.subr.bf16.mxu1 %v13264_v16  ;;  %v16044_v16 = vld [vmem:[#allocation31_spill] sm:$0xff]  ;;  %v16057_v58 = vld [vmem:[#allocation45_spill] sm:$0xff] }
 0x551   :  { %11934 = vmatprep.subr.bf16.mxu0 %v13350_v59  ;;  %v16058_v59 = vld [vmem:[#allocation46_spill] sm:$0xff] }
 0x553   :  { %11872 = vmatpush1.bf16.msra.mxu1 %v13276_v29  ;;  %v16045_v29 = vld [vmem:[#allocation33_spill] sm:$0xff] }
 0x554   :  { %11936 = vmatpush1.bf16.msra.mxu0 %v13353_v0  ;;  %11874 = vmatprep.subr.bf16.mxu1 %v13279_v22  ;;  %v16046_v22 = vld [vmem:[#allocation34_spill] sm:$0xff]  ;;  %v16059_v0 = vld [vmem:[#allocation48_spill] sm:$0xff] }
 0x555   :  { %11938 = vmatprep.subr.bf16.mxu0 %v13356_v2  ;;  %v16060_v2 = vld [vmem:[#allocation47_spill] sm:$0xff] }
 0x557   :  { %11876 = vmatpush1.bf16.msra.mxu1 %v13291_v36  ;;  %v16047_v36 = vld [vmem:[#allocation36_spill] sm:$0xff] }
 0x558   :  { %11940 = vmatpush1.bf16.msra.mxu0 %v13359_v9  ;;  %11878 = vmatprep.subr.bf16.mxu1 %v13294_v27  ;;  %v16048_v27 = vld [vmem:[#allocation35_spill] sm:$0xff]  ;;  %v16061_v9 = vld [vmem:[#allocation49_spill] sm:$0xff] }
 0x559   :  { %11942 = vmatprep.subr.bf16.mxu0 %v13362_v10  ;;  %v16062_v10 = vld [vmem:[#allocation50_spill] sm:$0xff] }
 0x55b   :  { %11880 = vmatpush1.bf16.msra.mxu1 %v13306_v39  ;;  %v16049_v39 = vld [vmem:[#allocation37_spill] sm:$0xff] }
 0x55c   :  { %11944 = vmatpush1.bf16.msra.mxu0 %v13373_v25  ;;  %11882 = vmatprep.subr.bf16.mxu1 %v13375_v26  ;;  %v16063_v25 = vld [vmem:[#allocation52_spill] sm:$0xff]  ;;  %v16064_v26 = vld [vmem:[#allocation51_spill] sm:$0xff] }
 0x55d   :  { %11946 = vmatprep.subr.bf16.mxu0 %v13381_v3  ;;  %v16066_v3 = vld [vmem:[#allocation54_spill] sm:$0xff] }
 0x55f   :  { %11884 = vmatpush1.bf16.msra.mxu1 %v13379_v23  ;;  %v16065_v23 = vld [vmem:[#allocation53_spill] sm:$0xff] }
 0x560   :  { %11948 = vmatpush1.bf16.msra.mxu0 %v13384_v4  ;;  %11886 = vmatprep.subr.bf16.mxu1 %v13387_v20  ;;  %v16067_v4 = vld [vmem:[#allocation56_spill] sm:$0xff]  ;;  %v16068_v20 = vld [vmem:[#allocation55_spill] sm:$0xff] }
 0x561   :  { %11950 = vmatprep.subr.bf16.mxu0 %v13392_v41  ;;  %v16069_v41 = vld [vmem:[#allocation57_spill] sm:$0xff] }
 0x563   :  { %11888 = vmatpush1.bf16.msra.mxu1 %v16036_v49  ;;  %v16080_v49 = vld [vmem:[#allocation71_spill] sm:$0xff] }
 0x564   :  { %11952 = vmatpush1.bf16.msra.mxu0 %v16037_v53  ;;  %11890 = vmatprep.subr.bf16.mxu1 %v16038_v54  ;;  %v16081_v53 = vld [vmem:[#allocation72_spill] sm:$0xff]  ;;  %v16083_v54 = vld [vmem:[#allocation74_spill] sm:$0xff] }
 0x565   :  { %11954 = vmatprep.subr.bf16.mxu0 %v16039_v61  ;;  %v16084_v61 = vld [vmem:[#allocation75_spill] sm:$0xff] }
 0x567   :  { %11892 = vmatpush1.bf16.msra.mxu1 %v16040_v63  ;;  %v16086_v63 = vld [vmem:[#allocation77_spill] sm:$0xff] }
 0x568   :  { %11956 = vmatpush1.bf16.msra.mxu0 %v16041_v12  ;;  %11894 = vmatprep.subr.bf16.mxu1 %v16042_v11  ;;  %v16087_v12 = vld [vmem:[#allocation78_spill] sm:$0xff]  ;;  %v16090_v11 = vld [vmem:[#allocation81_spill] sm:$0xff] }
 0x569   :  { %11958 = vmatprep.subr.bf16.mxu0 %v16043_v21  ;;  %v16091_v21 = vld [vmem:[#allocation82_spill] sm:$0xff] }
 0x56b   :  { %11896 = vmatpush1.bf16.msra.mxu1 %v16044_v16  ;;  %v16092_v16 = vld [vmem:[#allocation83_spill] sm:$0xff] }
 0x56c   :  { %11960 = vmatpush1.bf16.msra.mxu0 %v16045_v29  ;;  %11898 = vmatprep.subr.bf16.mxu1 %v16046_v22  ;;  %v16093_v29 = vld [vmem:[#allocation84_spill] sm:$0xff]  ;;  %v16094_v22 = vld [vmem:[#allocation85_spill] sm:$0xff] }
 0x56d   :  { %11962 = vmatprep.subr.bf16.mxu0 %v16047_v36  ;;  %v16095_v36 = vld [vmem:[#allocation86_spill] sm:$0xff] }
 0x56f   :  { %11900 = vmatpush1.bf16.msra.mxu1 %v16048_v27  ;;  %v16099_v27 = vld [vmem:[#allocation90_spill] sm:$0xff] }
 0x570   :  { %11964 = vmatpush1.bf16.msra.mxu0 %v16049_v39  ;;  %11902 = vmatprep.subr.bf16.mxu1 %v16050_v34  ;;  %v16100_v39 = vld [vmem:[#allocation91_spill] sm:$0xff]  ;;  %v16101_v34 = vld [vmem:[#allocation92_spill] sm:$0xff] }
 0x571   :  { %11966 = vmatprep.subr.bf16.mxu0 %v16051_v37  ;;  %v16102_v37 = vld [vmem:[#allocation93_spill] sm:$0xff] }
 0x573   :  { %11904 = vmatpush1.bf16.msra.mxu1 %v16052_v45  ;;  %v16103_v45 = vld [vmem:[#allocation94_spill] sm:$0xff] }
 0x574   :  { %11968 = vmatpush1.bf16.msra.mxu0 %v16053_v42  ;;  %11906 = vmatprep.subr.bf16.mxu1 %v16054_v47  ;;  %v16104_v42 = vld [vmem:[#allocation95_spill] sm:$0xff]  ;;  %v16105_v47 = vld [vmem:[#allocation96_spill] sm:$0xff] }
 0x575   :  { %11970 = vmatprep.subr.bf16.mxu0 %v16055_v55  ;;  %v16106_v55 = vld [vmem:[#allocation97_spill] sm:$0xff] }
 0x577   :  { %11908 = vmatpush1.bf16.msra.mxu1 %v16056_v56  ;;  %v16107_v56 = vld [vmem:[#allocation98_spill] sm:$0xff] }
 0x578   :  { %11972 = vmatpush1.bf16.msra.mxu0 %v16057_v58  ;;  %11910 = vmatprep.subr.bf16.mxu1 %v16058_v59  ;;  %v16108_v58 = vld [vmem:[#allocation99_spill] sm:$0xff]  ;;  %v16109_v59 = vld [vmem:[#allocation100_spill] sm:$0xff] }
 0x579   :  { %11974 = vmatprep.subr.bf16.mxu0 %v16059_v0  ;;  %v16110_v0 = vld [vmem:[#allocation101_spill] sm:$0xff] }
 0x57b   :  { %11912 = vmatpush1.bf16.msra.mxu1 %v16060_v2  ;;  %v4016_v2 = vld [vmem:[#allocation7] sm:$0xff] }
 0x57c   :  { %11976 = vmatpush1.bf16.msra.mxu0 %v16061_v9  ;;  %11914 = vmatprep.subr.bf16.mxu1 %v16062_v10  ;;  %v4017_v9 = vld [vmem:[#allocation7 + $0x8] sm:$0xff]  ;;  %v4023_v10 = vld [vmem:[#allocation7 + $0x38] sm:$0xff] }
 0x57d   :  { %11978 = vmatprep.subr.bf16.mxu0 %v16063_v25 }
 0x57f   :  { %11916 = vmatpush1.bf16.msra.mxu1 %v16064_v26  ;;  %v4044_v26 = vcombine.high %v4023_v10, %v4023_v10 }
 0x580   :  { %11980 = vmatpush1.bf16.msra.mxu0 %v16065_v23  ;;  %11982 = vmatprep.subr.bf16.mxu1 %v16066_v3  ;;  %v14017_v23 = vpop.permute.xlu0 %4026 }
 0x581   :  { %12046 = vmatprep.subr.bf16.mxu0 %v16067_v4 }
 0x582   :  { %3791 = vmatmul.mubr.f32.vlgmr.msra.gmra.mrb[34].mxu1 %v13745_v14 }
 0x583   :  { %3862 = vmatmul.mubr.f32.vlgmr.msra.gmra.mrb[34].mxu0 %v13745_v14  ;;  %11984 = vmatpush1.bf16.msra.mxu1 %v16068_v20 }
 0x584   :  { %3932 = vmatprep.mubr.f32.mxu1 %v13747_v62  ;;  %12048 = vmatpush1.bf16.msra.mxu0 %v16069_v41 }
 0x585   :  { %4003 = vmatprep.mubr.f32.mxu0 %v13747_v62  ;;  %11986 = vmatprep.subr.bf16.mxu1 %v16070_v33  ;;  %v16078_v62 = vld [vmem:[#allocation69_spill] sm:$0xff] }
 0x586   :  { %12050 = vmatprep.subr.bf16.mxu0 %v16071_v35 }
 0x587   :  { %11988 = vmatpush1.bf16.msra.mxu1 %v16072_v18 }
 0x588   :  { %12052 = vmatpush1.bf16.msra.mxu0 %v16073_v50  ;;  %11990 = vmatprep.subr.bf16.mxu1 %v13620_v52  ;;  %v16082_v52 = vld [vmem:[#allocation73_spill] sm:$0xff] }
 0x589   :  { %12054 = vmatprep.subr.bf16.mxu0 %v16074_v46  ;;  %v14033_v46 = vld [vmem:[#allocation8 + $0xe8] sm:$0xff] }
 0x58b   :  { %11992 = vmatpush1.bf16.msra.mxu1 %v16075_v31 }
 0x58c   :  { %12056 = vmatpush1.bf16.msra.mxu0 %v16076_v48  ;;  %11994 = vmatprep.subr.bf16.mxu1 %v13644_v44  ;;  %v16085_v44 = vld [vmem:[#allocation76_spill] sm:$0xff] }
 0x58d   :  { %12058 = vmatprep.subr.bf16.mxu0 %v16077_v40 }
 0x58f   :  { %11996 = vmatpush1.bf16.msra.mxu1 %v16078_v62 }
 0x590   :  { %12060 = vmatpush1.bf16.msra.mxu0 %v16079_v17  ;;  %11998 = vmatprep.subr.bf16.mxu1 %v16080_v49 }
 0x591   :  { %12062 = vmatprep.subr.bf16.mxu0 %v16081_v53 }
 0x593   :  { %12000 = vmatpush1.bf16.msra.mxu1 %v13673_v6  ;;  %v16088_v6 = vld [vmem:[#allocation79_spill] sm:$0xff] }
 0x594   :  { %12064 = vmatpush1.bf16.msra.mxu0 %v13675_v51  ;;  %12002 = vmatprep.subr.bf16.mxu1 %v16082_v52  ;;  %v16089_v51 = vld [vmem:[#allocation80_spill] sm:$0xff] }
 0x595   :  { %12066 = vmatprep.subr.bf16.mxu0 %v16083_v54 }
 0x597   :  { %12004 = vmatpush1.bf16.msra.mxu1 %v16084_v61 }
 0x598   :  { %12068 = vmatpush1.bf16.msra.mxu0 %v16085_v44  ;;  %12006 = vmatprep.subr.bf16.mxu1 %v16086_v63 }
 0x599   :  { %12070 = vmatprep.subr.bf16.mxu0 %v16087_v12 }
 0x59b   :  { %12008 = vmatpush1.bf16.msra.mxu1 %v13710_v7  ;;  %v16096_v7 = vld [vmem:[#allocation87_spill] sm:$0xff] }
 0x59c   :  { %12072 = vmatpush1.bf16.msra.mxu0 %v13712_v38  ;;  %12010 = vmatprep.subr.bf16.mxu1 %v13722_v28  ;;  %v16097_v38 = vld [vmem:[#allocation88_spill] sm:$0xff]  ;;  %v16098_v28 = vld [vmem:[#allocation89_spill] sm:$0xff] }
 0x59d   :  { %12074 = vmatprep.subr.bf16.mxu0 %v16088_v6 }
 0x59f   :  { %12012 = vmatpush1.bf16.msra.mxu1 %v16089_v51 }
 0x5a0   :  { %12076 = vmatpush1.bf16.msra.mxu0 %v16090_v11  ;;  %12014 = vmatprep.subr.bf16.mxu1 %v16091_v21 }
 0x5a1   :  { %12078 = vmatprep.subr.bf16.mxu0 %v16092_v16 }
 0x5a3   :  { %12016 = vmatpush1.bf16.msra.mxu1 %v16093_v29 }
 0x5a4   :  { %12080 = vmatpush1.bf16.msra.mxu0 %v16094_v22  ;;  %12018 = vmatprep.subr.bf16.mxu1 %v16095_v36 }
 0x5a5   :  { %12082 = vmatprep.subr.bf16.mxu0 %v16096_v7 }
 0x5a7   :  { %12020 = vmatpush1.bf16.msra.mxu1 %v16097_v38 }
 0x5a8   :  { %12084 = vmatpush1.bf16.msra.mxu0 %v16098_v28  ;;  %12022 = vmatprep.subr.bf16.mxu1 %v16099_v27 }
 0x5a9   :  { %12086 = vmatprep.subr.bf16.mxu0 %v16100_v39 }
 0x5ab   :  { %12024 = vmatpush1.bf16.msra.mxu1 %v16101_v34  ;;  %v16113_v34 = vld [vmem:[#allocation23_spill] sm:$0xff] }
 0x5ac   :  { %12088 = vmatpush1.bf16.msra.mxu0 %v16102_v37  ;;  %12026 = vmatprep.subr.bf16.mxu1 %v16103_v45  ;;  %vm5672_vm13 = vcmp.lt.s32.totalorder %v16113_v34, 33  ;;  %vm7092_vm0 = vcmp.lt.s32.totalorder %v16113_v34, 31  ;;  %vm6406_vm1 = vcmp.lt.s32.totalorder %v16113_v34, 32  ;;  %vm10584_vm3 = vcmp.lt.s32.totalorder %v16113_v34, 95 }
 0x5ad   :  { %12090 = vmatprep.subr.bf16.mxu0 %v16104_v42 }
 0x5af   :  { %12028 = vmatpush1.bf16.msra.mxu1 %v16105_v47 }
 0x5b0   :  { %12092 = vmatpush1.bf16.msra.mxu0 %v16106_v55  ;;  %12030 = vmatprep.subr.bf16.mxu1 %v16107_v56 }
 0x5b1   :  { %12094 = vmatprep.subr.bf16.mxu0 %v16108_v58  ;;  %v14248_v58 = vld [vmem:[#allocation8 + $0xc8] sm:$0xff] }
 0x5b3   :  { %12032 = vmatpush1.bf16.msra.mxu1 %v13801_v24  ;;  %v4037_v24 = vcombine.high %v4016_v2, %v4016_v2 }
 0x5b4   :  { %12096 = vmatpush1.bf16.msra.mxu0 %v13803_v43  ;;  %12034 = vmatprep.subr.bf16.mxu1 %v13807_v19  ;;  %v4038_v43 = vcombine.high %v4017_v9, %v4017_v9  ;;  %v4018_v19 = vld [vmem:[#allocation7 + $0x10] sm:$0xff] }
 0x5b5   :  { %12098 = vmatprep.subr.bf16.mxu0 %v16109_v59 }
 0x5b7   :  { %12036 = vmatpush1.bf16.msra.mxu1 %v16110_v0 }
 0x5b8   :  { %12100 = vmatpush1.bf16.msra.mxu0 %v13815_v57  ;;  %12038 = vmatprep.subr.bf16.mxu1 %v13819_v15  ;;  %v4019_v57 = vld [vmem:[#allocation7 + $0x18] sm:$0xff]  ;;  %v4039_v15 = vcombine.high %v4018_v19, %v4018_v19 }
 0x5b9   :  { %12102 = vmatprep.subr.bf16.mxu0 %v13821_v30  ;;  %v4040_v30 = vcombine.high %v4019_v57, %v4019_v57 }
 0x5bb   :  { %12040 = vmatpush1.bf16.msra.mxu1 %v13825_v5  ;;  %v4020_v5 = vld [vmem:[#allocation7 + $0x20] sm:$0xff] }
 0x5bc   :  { %12104 = vmatpush1.bf16.msra.mxu0 %v13827_v60  ;;  %12042 = vmatprep.subr.bf16.mxu1 %v13831_v32  ;;  %v4011_v60 = vld [vmem:[#allocation8 + $0xc0] sm:$0xff]  ;;  %v4021_v32 = vld [vmem:[#allocation7 + $0x28] sm:$0xff] }
 0x5bd   :  { %12106 = vmatprep.subr.bf16.mxu0 %v13833_v8  ;;  %v4042_v8 = vcombine.high %v4021_v32, %v4021_v32 }
 0x5bf   :  { %12044 = vmatpush1.bf16.msra.mxu1 %v13837_v13  ;;  %v16111_v13 = vmov 0.0  }
 0x5c0   :  { %12108 = vmatpush1.bf16.msra.mxu0 %v13839_v1  ;;  %11361 = vmatprep.subr.msk.mxu1 %vm4049_vm11, %v4037_v24  ;;  %v4041_v1 = vcombine.high %v4020_v5, %v4020_v5 }
 0x5c1   :  { %11364 = vmatprep.subr.msk.mxu0 %vm4049_vm11, %v4038_v43 }
 0x5c2   :  { %3933 = vmatmul.mubr.f32.vlgmr.msra.gmra.mrb[36].mxu1 %v13745_v14 }
 0x5c3   :  { %4004 = vmatmul.mubr.f32.vlgmr.msra.gmra.mrb[36].mxu0 %v13745_v14  ;;  %11362 = vmatpush1.msk.msra.mxu1 %vm4049_vm11, %v4016_v2  ;;  %v4022_v14 = vld [vmem:[#allocation7 + $0x30] sm:$0xff] }
 0x5c4   :  { %4146 = vmatprep.mubr.f32.mxu1 %v16111_v13  ;;  %11365 = vmatpush1.msk.msra.mxu0 %vm4049_vm11, %v4017_v9  ;;  %v4043_v25 = vcombine.high %v4022_v14, %v4022_v14 }
 0x5c5   :  { %4217 = vmatprep.mubr.f32.mxu0 %v16111_v13  ;;  %11367 = vmatprep.subr.msk.mxu1 %vm4049_vm11, %v4039_v15 }
 0x5c6   :  { %11363 = vmatmul.mubr.msk.f32.vlgmr.msra.gmra.mrb[30].mxu1 %vm4045_vm12, %v4011_v60  ;;  %11370 = vmatprep.subr.msk.mxu0 %vm4049_vm11, %v4040_v30 }
 0x5c7   :  { %11366 = vmatmul.mubr.msk.f32.vlgmr.msra.gmra.mrb[30].mxu0 %vm4045_vm12, %v4011_v60  ;;  %11368 = vmatpush1.msk.msra.mxu1 %vm4049_vm11, %v4018_v19 }
 0x5c8   :  { %4288 = vmatprep.mubr.f32.mxu1 %v16111_v13  ;;  %11371 = vmatpush1.msk.msra.mxu0 %vm4049_vm11, %v4019_v57 }
 0x5c9   :  { %4359 = vmatprep.mubr.f32.mxu0 %v16111_v13  ;;  %11373 = vmatprep.subr.msk.mxu1 %vm4049_vm11, %v4041_v1 }
 0x5ca   :  { %11369 = vmatmul.mubr.msk.f32.vlgmr.msra.gmra.mrb[32].mxu1 %vm4045_vm12, %v4011_v60  ;;  %11376 = vmatprep.subr.msk.mxu0 %vm4049_vm11, %v4042_v8 }
 0x5cb   :  { %11372 = vmatmul.mubr.msk.f32.vlgmr.msra.gmra.mrb[32].mxu0 %vm4045_vm12, %v4011_v60  ;;  %11374 = vmatpush1.msk.msra.mxu1 %vm4049_vm11, %v4020_v5 }
 0x5cc   :  { %4430 = vmatprep.mubr.f32.mxu1 %v16111_v13  ;;  %11377 = vmatpush1.msk.msra.mxu0 %vm4049_vm11, %v4021_v32 }
 0x5cd   :  { %4501 = vmatprep.mubr.f32.mxu0 %v16111_v13  ;;  %11379 = vmatprep.subr.msk.mxu1 %vm4049_vm11, %v4043_v25 }
 0x5ce   :  { %11375 = vmatmul.mubr.msk.f32.vlgmr.msra.gmra.mrb[34].mxu1 %vm4045_vm12, %v4011_v60  ;;  %11382 = vmatprep.subr.msk.mxu0 %vm4049_vm11, %v4044_v26 }
 0x5cf   :  { %11378 = vmatmul.mubr.msk.f32.vlgmr.msra.gmra.mrb[34].mxu0 %vm4045_vm12, %v4011_v60  ;;  %11380 = vmatpush1.msk.msra.mxu1 %vm4049_vm11, %v4022_v14 }
 0x5d0   :  { %4572 = vmatprep.mubr.f32.mxu1 %v16111_v13  ;;  %11383 = vmatpush1.msk.msra.mxu0 %vm4049_vm11, %v4023_v10 }
 0x5d1   :  { %4643 = vmatprep.mubr.f32.mxu0 %v16111_v13 }
 0x5d2   :  { %11381 = vmatmul.mubr.msk.f32.vlgmr.msra.gmra.mrb[36].mxu1 %vm4045_vm12, %v4011_v60 }
 0x5d3   :  { %11384 = vmatmul.mubr.msk.f32.vlgmr.msra.gmra.mrb[36].mxu0 %vm4045_vm12, %v4011_v60  ;;  %5136 = vmatprep.mubr.f32.mxu1 %v16111_v13 }
 0x5d4   :  { %5207 = vmatprep.mubr.f32.mxu0 %v16111_v13 }
 0x699   :  { %v4148_v3 = vpop.f32.mrb[30].mxu1 }
 0x69a   :  { %v14020_v4 = vadd.f32 %v4148_v3, %v14017_v23  ;;  %v4219_v20 = vpop.f32.mrb[30].mxu0  ;;  %v4150_v41 = vpop.f32.mrb[31].mxu1 }
 0x69b   :  { %v14023_v33 = vadd.f32 %v4219_v20, %v14017_v23  ;;  %v14026_v35 = vadd.f32 %v4150_v41, %v14017_v23  ;;  %v4221_v18 = vpop.f32.mrb[31].mxu0 }
 0x69c   :  { %v14029_v50 = vadd.f32 %v4221_v18, %v14017_v23  ;;  %5640 = vrot.lane.b32.xlu1 %v14020_v4, %s12845_s3 }
 0x69d   :  { %8467 = vrot.lane.b32.xlu0 %v14023_v33, %s12836_s12  ;;  %v4290_v31 = vpop.f32.mrb[32].mxu1  ;;  %5072 = vmatprep.subr.mxu1 %v14026_v35 }
 0x69e   :  { %v4361_v48 = vpop.f32.mrb[32].mxu0  ;;  %5143 = vmatprep.subr.mxu0 %v14029_v50  ;;  %v4292_v40 = vpop.f32.mrb[33].mxu1  ;;  %5073 = vmatpush1.msra.mxu1 %v14020_v4  ;;  %v14047_v49 = vadd.f32 %v4290_v31, %v14017_v23 }
 0x69f   :  { %v14041_v62 = vadd.f32 %v4292_v40, %v14017_v23  ;;  %v4363_v17 = vpop.f32.mrb[33].mxu0  ;;  %5144 = vmatpush1.msra.mxu0 %v14023_v33  ;;  %11385 = vmatmul.mubr.msk.f32.vlgmr.msra.gmra.mrb[38].mxu1 %vm225_vm2, %v14033_v46  ;;  %v14057_v52 = vadd.f32 %v4361_v48, %v14017_v23 }
 0x6a0   :  { %v14050_v53 = vadd.f32 %v4363_v17, %v14017_v23  ;;  %5644 = vrot.lane.b32.xlu1 %v14023_v33, %s12845_s3  ;;  %11386 = vmatmul.mubr.msk.f32.vlgmr.msra.gmra.mrb[38].mxu0 %vm225_vm2, %v14033_v46 }
 0x6a1   :  { %5642 = vrot.lane.b32.xlu0 %v14026_v35, %s12845_s3  ;;  %v4432_v54 = vpop.f32.mrb[34].mxu1  ;;  %5214 = vmatprep.subr.mxu1 %v14041_v62 }
 0x6a2   :  { %v4503_v61 = vpop.f32.mrb[34].mxu0  ;;  %5285 = vmatprep.subr.mxu0 %v14050_v53  ;;  %v4434_v44 = vpop.f32.mrb[35].mxu1  ;;  %5215 = vmatpush1.msra.mxu1 %v14047_v49  ;;  %v14076_v51 = vadd.f32 %v4432_v54, %v14017_v23 }
 0x6a3   :  { %v14065_v63 = vadd.f32 %v4434_v44, %v14017_v23  ;;  %v4505_v12 = vpop.f32.mrb[35].mxu0  ;;  %5286 = vmatpush1.msra.mxu0 %v14057_v52  ;;  %5278 = vmatprep.mubr.f32.mxu1 %v16111_v13  ;;  %v14082_v21 = vadd.f32 %v4503_v61, %v14017_v23 }
 0x6a4   :  { %v14070_v6 = vadd.f32 %v4505_v12, %v14017_v23  ;;  %6374 = vrot.lane.b32.xlu1 %v14020_v4, %s12828_s23  ;;  %5349 = vmatprep.mubr.f32.mxu0 %v16111_v13 }
 0x6a5   :  { %5646 = vrot.lane.b32.xlu0 %v14029_v50, %s12845_s3  ;;  %v4574_v11 = vpop.f32.mrb[36].mxu1  ;;  %5356 = vmatprep.subr.mxu1 %v14065_v63 }
 0x6a6   :  { %v4645_v16 = vpop.f32.mrb[36].mxu0  ;;  %5427 = vmatprep.subr.mxu0 %v14070_v6  ;;  %v4576_v29 = vpop.f32.mrb[37].mxu1  ;;  %11387 = vmatmul.mubr.msk.f32.vlgmr.msra.gmra.mrb[40].mxu1 %vm225_vm2, %v14033_v46  ;;  %v14103_v38 = vadd.f32 %v4574_v11, %v14017_v23 }
 0x6a7   :  { %v14088_v22 = vadd.f32 %v4576_v29, %v14017_v23  ;;  %v4647_v36 = vpop.f32.mrb[37].mxu0  ;;  %11388 = vmatmul.mubr.msk.f32.vlgmr.msra.gmra.mrb[40].mxu0 %vm225_vm2, %v14033_v46  ;;  %5357 = vmatpush1.msra.mxu1 %v14076_v51  ;;  %v14108_v28 = vadd.f32 %v4645_v16, %v14017_v23 }
 0x6a8   :  { %v14094_v7 = vadd.f32 %v4647_v36, %v14017_v23  ;;  %5428 = vmatpush1.msra.mxu0 %v14082_v21  ;;  %6378 = vrot.lane.b32.xlu1 %v14023_v33, %s12828_s23 }
 0x6a9   :  { %6376 = vrot.lane.b32.xlu0 %v14026_v35, %s12828_s23  ;;  %5420 = vmatprep.mubr.f32.mxu1 %v16111_v13 }
 0x6aa   :  { %5491 = vmatprep.mubr.f32.mxu0 %v16111_v13  ;;  %5498 = vmatprep.subr.mxu1 %v14088_v22 }
 0x6ab   :  { %5569 = vmatprep.subr.mxu0 %v14094_v7  ;;  %11389 = vmatmul.mubr.msk.f32.vlgmr.msra.gmra.mrb[42].mxu1 %vm225_vm2, %v14033_v46 }
 0x6ac   :  { %11390 = vmatmul.mubr.msk.f32.vlgmr.msra.gmra.mrb[42].mxu0 %vm225_vm2, %v14033_v46  ;;  %5499 = vmatpush1.msra.mxu1 %v14103_v38 }
 0x6ad   :  { %5570 = vmatpush1.msra.mxu0 %v14108_v28  ;;  %6380 = vrot.lane.b32.xlu0 %v14029_v50, %s12828_s23 }
 0x6ae   :  { %7060 = vrot.lane.b32.xlu1 %v14020_v4, %s12846_s19  ;;  %5633 = vmatprep.mubr.f32.mxu0 %v16111_v13 }
 0x6af   :  { %5562 = vmatprep.mubr.f32.mxu1 %v16111_v13 }
 0x6b0   :  { %11392 = vmatmul.mubr.msk.f32.vlgmr.msra.gmra.mrb[44].mxu0 %vm225_vm2, %v14033_v46  ;;  %11391 = vmatmul.mubr.msk.f32.vlgmr.msra.gmra.mrb[44].mxu1 %vm225_vm2, %v14033_v46 }
 0x6b1   :  { %7062 = vrot.lane.b32.xlu0 %v14026_v35, %s12846_s19  ;;  %5829 = vmatprep.mubr.f32.mxu0 %v16111_v13 }
 0x6b2   :  { %7064 = vrot.lane.b32.xlu1 %v14023_v33, %s12846_s19  ;;  %5758 = vmatprep.mubr.f32.mxu1 %v16111_v13 }
 0x6b5   :  { %7066 = vrot.lane.b32.xlu0 %v14029_v50, %s12846_s19 }
 0x6b6   :  { %7778 = vrot.lane.b32.xlu1 %v14020_v4, %s12835_s11 }
 0x6b9   :  { %7780 = vrot.lane.b32.xlu0 %v14026_v35, %s12835_s11 }
 0x6ba   :  { %7782 = vrot.lane.b32.xlu1 %v14023_v33, %s12835_s11 }
 0x6bd   :  { %7784 = vrot.lane.b32.xlu0 %v14029_v50, %s12835_s11 }
 0x6be   :  { %8463 = vrot.lane.b32.xlu1 %v14020_v4, %s12836_s12 }
 0x6c1   :  { %5648 = vrot.lane.b32.xlu0 %v14047_v49, %s12845_s3 }
 0x6c2   :  { %8465 = vrot.lane.b32.xlu1 %v14026_v35, %s12836_s12 }
 0x6c5   :  { %5652 = vrot.lane.b32.xlu0 %v14057_v52, %s12845_s3 }
 0x6c6   :  { %8469 = vrot.lane.b32.xlu1 %v14029_v50, %s12836_s12 }
 0x6c9   :  { %6382 = vrot.lane.b32.xlu0 %v14047_v49, %s12828_s23 }
 0x6ca   :  { %8475 = vrot.lane.b32.xlu1 %v14057_v52, %s12836_s12 }
 0x6cd   :  { %6386 = vrot.lane.b32.xlu0 %v14057_v52, %s12828_s23 }
 0x6ce   :  { %5650 = vrot.lane.b32.xlu1 %v14041_v62, %s12845_s3 }
 0x6d1   :  { %7068 = vrot.lane.b32.xlu0 %v14047_v49, %s12846_s19 }
 0x6d2   :  { %5654 = vrot.lane.b32.xlu1 %v14050_v53, %s12845_s3 }
 0x6d5   :  { %7072 = vrot.lane.b32.xlu0 %v14057_v52, %s12846_s19 }
 0x6d6   :  { %6384 = vrot.lane.b32.xlu1 %v14041_v62, %s12828_s23 }
 0x6d9   :  { %7786 = vrot.lane.b32.xlu0 %v14047_v49, %s12835_s11 }
 0x6da   :  { %6388 = vrot.lane.b32.xlu1 %v14050_v53, %s12828_s23 }
 0x6dd   :  { %7790 = vrot.lane.b32.xlu0 %v14057_v52, %s12835_s11 }
 0x6de   :  { %7070 = vrot.lane.b32.xlu1 %v14041_v62, %s12846_s19 }
 0x6e1   :  { %8471 = vrot.lane.b32.xlu0 %v14047_v49, %s12836_s12 }
 0x6e2   :  { %7074 = vrot.lane.b32.xlu1 %v14050_v53, %s12846_s19 }
 0x6e5   :  { %8473 = vrot.lane.b32.xlu0 %v14041_v62, %s12836_s12 }
 0x6e6   :  { %7788 = vrot.lane.b32.xlu1 %v14041_v62, %s12835_s11 }
 0x6e9   :  { %8477 = vrot.lane.b32.xlu0 %v14050_v53, %s12836_s12 }
 0x6ea   :  { %7792 = vrot.lane.b32.xlu1 %v14050_v53, %s12835_s11 }
 0x6ed   :  { %5656 = vrot.lane.b32.xlu0 %v14076_v51, %s12845_s3 }
 0x6ee   :  { %8479 = vrot.lane.b32.xlu1 %v14076_v51, %s12836_s12 }
 0x6f1   :  { %5660 = vrot.lane.b32.xlu0 %v14082_v21, %s12845_s3 }
 0x6f2   :  { %8483 = vrot.lane.b32.xlu1 %v14082_v21, %s12836_s12 }
 0x6f5   :  { %6390 = vrot.lane.b32.xlu0 %v14076_v51, %s12828_s23 }
 0x6f6   :  { %5658 = vrot.lane.b32.xlu1 %v14065_v63, %s12845_s3 }
 0x6f9   :  { %6394 = vrot.lane.b32.xlu0 %v14082_v21, %s12828_s23 }
 0x6fa   :  { %5662 = vrot.lane.b32.xlu1 %v14070_v6, %s12845_s3 }
 0x6fd   :  { %7076 = vrot.lane.b32.xlu0 %v14076_v51, %s12846_s19 }
 0x6fe   :  { %6392 = vrot.lane.b32.xlu1 %v14065_v63, %s12828_s23 }
 0x701   :  { %7080 = vrot.lane.b32.xlu0 %v14082_v21, %s12846_s19 }
 0x702   :  { %6396 = vrot.lane.b32.xlu1 %v14070_v6, %s12828_s23 }
 0x705   :  { %7794 = vrot.lane.b32.xlu0 %v14076_v51, %s12835_s11 }
 0x706   :  { %7078 = vrot.lane.b32.xlu1 %v14065_v63, %s12846_s19 }
 0x709   :  { %7798 = vrot.lane.b32.xlu0 %v14082_v21, %s12835_s11 }
 0x70a   :  { %7082 = vrot.lane.b32.xlu1 %v14070_v6, %s12846_s19 }
 0x70d   :  { %8481 = vrot.lane.b32.xlu0 %v14065_v63, %s12836_s12 }
 0x70e   :  { %7796 = vrot.lane.b32.xlu1 %v14065_v63, %s12835_s11  ;;  %v14225_v27 = vpop.permute.xlu1 %5640 }
 0x70f   :  { %v14227_v39 = vpop.permute.xlu0 %8467 }
 0x710   :  { %16112 = vst [vmem:[#allocation24_spill] sm:$0xff] %v14227_v39 }
 0x711   :  { %8485 = vrot.lane.b32.xlu0 %v14070_v6, %s12836_s12 }
 0x712   :  { %7800 = vrot.lane.b32.xlu1 %v14070_v6, %s12835_s11  ;;  %v5645_v37 = vpop.permute.xlu1 %5644 }
 0x713   :  { %v5643_v45 = vpop.permute.xlu0 %5642 }
 0x714   :  { %v5687_v42 = vsel %vm5672_vm13, %v14225_v27, %v5643_v45  ;;  %v5686_v59 = vsel %vm5672_vm13, %v5643_v45, %v5645_v37 }
 0x715   :  { %5664 = vrot.lane.b32.xlu0 %v14103_v38, %s12845_s3  ;;  %5694 = vmatprep.subr.mxu1 %v5687_v42 }
 0x716   :  { %8487 = vrot.lane.b32.xlu1 %v14103_v38, %s12836_s12  ;;  %v14241_v47 = vpop.permute.xlu1 %6374 }
 0x717   :  { %v14243_v55 = vpop.permute.xlu0 %5646 }
 0x718   :  { %v5685_v56 = vsel %vm5672_vm13, %v5645_v37, %v14243_v55 }
 0x719   :  { %5668 = vrot.lane.b32.xlu0 %v14108_v28, %s12845_s3  ;;  %5765 = vmatprep.subr.mxu0 %v5685_v56 }
 0x71a   :  { %8491 = vrot.lane.b32.xlu1 %v14108_v28, %s12836_s12  ;;  %5766 = vmatpush1.msra.mxu0 %v5686_v59  ;;  %v14256_v0 = vpop.permute.xlu1 %6378 }
 0x71b   :  { %v14258_v2 = vpop.permute.xlu0 %6376  ;;  %11394 = vmatmul.mubr.msk.f32.vlgmr.msra.gmra.mrb[46].mxu0 %vm225_vm2, %v14248_v58 }
 0x71c   :  { %5971 = vmatprep.mubr.f32.mxu0 %v16111_v13 }
 0x71d   :  { %6398 = vrot.lane.b32.xlu0 %v14103_v38, %s12828_s23 }
 0x71e   :  { %5670 = vrot.lane.b32.xlu1 %v14094_v7, %s12845_s3 }
 0x71f   :  { %v14267_v9 = vpop.permute.xlu0 %6380 }
 0x720   :  { %v14269_v24 = vpop.permute.xlu1 %7060 }
 0x721   :  { %6402 = vrot.lane.b32.xlu0 %v14108_v28, %s12828_s23 }
 0x722   :  { %9150 = vrot.lane.b32.xlu1 %v14026_v35, %s12847_s21 }
 0x723   :  { %v14275_v43 = vpop.permute.xlu0 %7062 }
 0x724   :  { %v14277_v19 = vpop.permute.xlu1 %7064 }
 0x725   :  { %7084 = vrot.lane.b32.xlu0 %v14103_v38, %s12846_s19 }
 0x726   :  { %9154 = vrot.lane.b32.xlu1 %v14029_v50, %s12847_s21 }
 0x727   :  { %v14283_v57 = vpop.permute.xlu0 %7066 }
 0x728   :  { %v14285_v15 = vpop.permute.xlu1 %7778 }
 0x729   :  { %7088 = vrot.lane.b32.xlu0 %v14108_v28, %s12846_s19 }
 0x72a   :  { %5666 = vrot.lane.b32.xlu1 %v14088_v22, %s12845_s3 }
 0x72b   :  { %v14291_v30 = vpop.permute.xlu0 %7780 }
 0x72c   :  { %v14293_v5 = vpop.permute.xlu1 %7782 }
 0x72d   :  { %7802 = vrot.lane.b32.xlu0 %v14103_v38, %s12835_s11 }
 0x72e   :  { %6404 = vrot.lane.b32.xlu1 %v14094_v7, %s12828_s23 }
 0x72f   :  { %v14299_v60 = vpop.permute.xlu0 %7784 }
 0x730   :  { %v14301_v32 = vpop.permute.xlu1 %8463 }
 0x731   :  { %16114 = vst [vmem:[#allocation25_spill] sm:$0xff] %v14301_v32  ;;  %7806 = vrot.lane.b32.xlu0 %v14108_v28, %s12835_s11 }
 0x732   :  { %9148 = vrot.lane.b32.xlu1 %v14020_v4, %s12847_s21 }
 0x733   :  { %v14307_v1 = vpop.permute.xlu0 %5648 }
 0x734   :  { %v14309_v8 = vpop.permute.xlu1 %8465 }
 0x735   :  { %16115 = vst [vmem:[#allocation26_spill] sm:$0xff] %v14309_v8  ;;  %9152 = vrot.lane.b32.xlu0 %v14023_v33, %s12847_s21 }
 0x736   :  { %9160 = vrot.lane.b32.xlu1 %v14057_v52, %s12847_s21 }
 0x737   :  { %v5653_v14 = vpop.permute.xlu0 %5652 }
 0x738   :  { %v14315_v10 = vpop.permute.xlu1 %8469 }
 0x739   :  { %16116 = vst [vmem:[#allocation28_spill] sm:$0xff] %v14315_v10  ;;  %9156 = vrot.lane.b32.xlu0 %v14047_v49, %s12847_s21 }
 0x73a   :  { %6400 = vrot.lane.b32.xlu1 %v14088_v22, %s12828_s23 }
 0x73b   :  { %v14321_v25 = vpop.permute.xlu0 %6382 }
 0x73c   :  { %v14323_v26 = vpop.permute.xlu1 %8475 }
 0x73d   :  { %16117 = vst [vmem:[#allocation27_spill] sm:$0xff] %v14323_v26  ;;  %9158 = vrot.lane.b32.xlu0 %v14041_v62, %s12847_s21 }
 0x73e   :  { %7090 = vrot.lane.b32.xlu1 %v14094_v7, %s12846_s19 }
 0x73f   :  { %v14329_v23 = vpop.permute.xlu0 %6386 }
 0x740   :  { %v14331_v3 = vpop.permute.xlu1 %5650 }
 0x741   :  { %9162 = vrot.lane.b32.xlu0 %v14050_v53, %s12847_s21  ;;  %v5682_v46 = vsel %vm5672_vm13, %v14331_v3, %v5653_v14 }
 0x742   :  { %9164 = vrot.lane.b32.xlu1 %v14076_v51, %s12847_s21 }
 0x743   :  { %v14337_v20 = vpop.permute.xlu0 %7068 }
 0x744   :  { %v14339_v41 = vpop.permute.xlu1 %5654 }
 0x745   :  { %9166 = vrot.lane.b32.xlu0 %v14065_v63, %s12847_s21  ;;  %v5681_v18 = vsel %vm5672_vm13, %v5653_v14, %v14339_v41 }
 0x746   :  { %9168 = vrot.lane.b32.xlu1 %v14082_v21, %s12847_s21  ;;  %5907 = vmatprep.subr.mxu0 %v5681_v18 }
 0x747   :  { %5908 = vmatpush1.msra.mxu0 %v5682_v46  ;;  %v14351_v31 = vpop.permute.xlu0 %7072 }
 0x748   :  { %11396 = vmatmul.mubr.msk.f32.vlgmr.msra.gmra.mrb[48].mxu0 %vm225_vm2, %v14248_v58  ;;  %v14355_v48 = vpop.permute.xlu1 %6384 }
 0x749   :  { %9170 = vrot.lane.b32.xlu0 %v14070_v6, %s12847_s21  ;;  %6113 = vmatprep.mubr.f32.mxu0 %v16111_v13 }
 0x74a   :  { %7086 = vrot.lane.b32.xlu1 %v14088_v22, %s12846_s19 }
 0x74b   :  { %v14362_v40 = vpop.permute.xlu0 %7786 }
 0x74c   :  { %16118 = vst [vmem:[#allocation29_spill] sm:$0xff] %v14362_v40  ;;  %v14364_v17 = vpop.permute.xlu1 %6388 }
 0x74d   :  { %9870 = vrot.lane.b32.xlu0 %v14023_v33, %s12848_s22 }
 0x74e   :  { %7808 = vrot.lane.b32.xlu1 %v14094_v7, %s12835_s11 }
 0x74f   :  { %v7791_v54 = vpop.permute.xlu0 %7790 }
 0x750   :  { %v14370_v61 = vpop.permute.xlu1 %7070 }
 0x751   :  { %9874 = vrot.lane.b32.xlu0 %v14047_v49, %s12848_s22 }
 0x752   :  { %9172 = vrot.lane.b32.xlu1 %v14103_v38, %s12847_s21 }
 0x753   :  { %v14376_v44 = vpop.permute.xlu0 %8471 }
 0x754   :  { %16119 = vst [vmem:[#allocation30_spill] sm:$0xff] %v14376_v44  ;;  %v14378_v12 = vpop.permute.xlu1 %7074 }
 0x755   :  { %9876 = vrot.lane.b32.xlu0 %v14041_v62, %s12848_s22 }
 0x756   :  { %9176 = vrot.lane.b32.xlu1 %v14108_v28, %s12847_s21 }
 0x757   :  { %v14384_v11 = vpop.permute.xlu0 %8473 }
 0x758   :  { %16120 = vst [vmem:[#allocation32_spill] sm:$0xff] %v14384_v11  ;;  %v14390_v16 = vsel %vm2342_vm15, %v14376_v44, %v14384_v11  ;;  %v7789_v29 = vpop.permute.xlu1 %7788 }
 0x759   :  { %16121 = vst [vmem:[#allocation31_spill] sm:$0xff] %v14390_v16  ;;  %v14394_v36 = vsel %vm2166_vm14, %v7789_v29, %v7791_v54  ;;  %9880 = vrot.lane.b32.xlu0 %v14050_v53, %s12848_s22  ;;  %v14401_v37 = vsel %vm2166_vm14, %v14362_v40, %v7789_v29 }
 0x75a   :  { %16122 = vst [vmem:[#allocation33_spill] sm:$0xff] %v14394_v36  ;;  %16123 = vst [vmem:[#allocation34_spill] sm:$0xff] %v14401_v37  ;;  %7804 = vrot.lane.b32.xlu1 %v14088_v22, %s12835_s11 }
 0x75b   :  { %v14405_v45 = vpop.permute.xlu0 %8477 }
 0x75c   :  { %16124 = vst [vmem:[#allocation36_spill] sm:$0xff] %v14405_v45  ;;  %v7793_v42 = vpop.permute.xlu1 %7792 }
 0x75d   :  { %9884 = vrot.lane.b32.xlu0 %v14065_v63, %s12848_s22  ;;  %v14411_v56 = vsel %vm2166_vm14, %v7791_v54, %v7793_v42 }
 0x75e   :  { %16125 = vst [vmem:[#allocation35_spill] sm:$0xff] %v14411_v56  ;;  %9868 = vrot.lane.b32.xlu1 %v14026_v35, %s12848_s22 }
 0x75f   :  { %v14415_v59 = vpop.permute.xlu0 %5656 }
 0x760   :  { %v8480_v14 = vpop.permute.xlu1 %8479 }
 0x761   :  { %9888 = vrot.lane.b32.xlu0 %v14070_v6, %s12848_s22  ;;  %v14422_v18 = vsel %vm2342_vm15, %v14405_v45, %v8480_v14 }
 0x762   :  { %16126 = vst [vmem:[#allocation37_spill] sm:$0xff] %v14422_v18  ;;  %9872 = vrot.lane.b32.xlu1 %v14029_v50, %s12848_s22 }
 0x763   :  { %v5661_v46 = vpop.permute.xlu0 %5660 }
 0x764   :  { %v8484_v54 = vpop.permute.xlu1 %8483 }
 0x765   :  { %8489 = vrot.lane.b32.xlu0 %v14088_v22, %s12836_s12 }
 0x766   :  { %9866 = vrot.lane.b32.xlu1 %v14020_v4, %s12848_s22 }
 0x767   :  { %v14430_v29 = vpop.permute.xlu0 %6390 }
 0x768   :  { %v14432_v16 = vpop.permute.xlu1 %5658 }
 0x769   :  { %8493 = vrot.lane.b32.xlu0 %v14094_v7, %s12836_s12  ;;  %v5678_v18 = vsel %vm5672_vm13, %v14432_v16, %v5661_v46 }
 0x76a   :  { %9878 = vrot.lane.b32.xlu1 %v14057_v52, %s12848_s22 }
 0x76b   :  { %v14438_v45 = vpop.permute.xlu0 %6394 }
 0x76c   :  { %v14440_v11 = vpop.permute.xlu1 %5662 }
 0x76d   :  { %10556 = vrot.lane.b32.xlu0 %v14023_v33, %s12849_s24  ;;  %v5677_v26 = vsel %vm5672_vm13, %v5661_v46, %v14440_v11 }
 0x76e   :  { %9882 = vrot.lane.b32.xlu1 %v14076_v51, %s12848_s22  ;;  %6049 = vmatprep.subr.mxu0 %v5677_v26 }
 0x76f   :  { %6050 = vmatpush1.msra.mxu0 %v5678_v18  ;;  %v14453_v32 = vpop.permute.xlu0 %7076 }
 0x770   :  { %v14459_v33 = vsel %vm7092_vm0, %v14378_v12, %v14453_v32  ;;  %11398 = vmatmul.mubr.msk.f32.vlgmr.msra.gmra.mrb[50].mxu0 %vm225_vm2, %v14248_v58  ;;  %v14463_v8 = vpop.permute.xlu1 %6392 }
 0x771   :  { %10560 = vrot.lane.b32.xlu0 %v14047_v49, %s12849_s24  ;;  %6255 = vmatprep.mubr.f32.mxu0 %v16111_v13 }
 0x772   :  { %9886 = vrot.lane.b32.xlu1 %v14082_v21, %s12848_s22 }
 0x773   :  { %v14470_v26 = vpop.permute.xlu0 %7080 }
 0x774   :  { %v14472_v18 = vpop.permute.xlu1 %6396 }
 0x775   :  { %9174 = vrot.lane.b32.xlu0 %v14088_v22, %s12847_s21 }
 0x776   :  { %9890 = vrot.lane.b32.xlu1 %v14103_v38, %s12848_s22 }
 0x777   :  { %v7795_v46 = vpop.permute.xlu0 %7794 }
 0x778   :  { %v14480_v39 = vsel %vm2166_vm14, %v7793_v42, %v7795_v46  ;;  %v14482_v49 = vpop.permute.xlu1 %7078 }
 0x779   :  { %16127 = vst [vmem:[#allocation38_spill] sm:$0xff] %v14480_v39  ;;  %v14488_v10 = vsel %vm7092_vm0, %v14482_v49, %v14470_v26  ;;  %9178 = vrot.lane.b32.xlu0 %v14094_v7, %s12847_s21 }
 0x77a   :  { %9894 = vrot.lane.b32.xlu1 %v14108_v28, %s12848_s22 }
 0x77b   :  { %v7799_v44 = vpop.permute.xlu0 %7798 }
 0x77c   :  { %v14494_v36 = vpop.permute.xlu1 %7082 }
 0x77d   :  { %10562 = vrot.lane.b32.xlu0 %v14041_v62, %s12849_s24 }
 0x77e   :  { %10554 = vrot.lane.b32.xlu1 %v14026_v35, %s12849_s24 }
 0x77f   :  { %v8482_v42 = vpop.permute.xlu0 %8481 }
 0x780   :  { %v14502_v39 = vsel %vm2342_vm15, %v8480_v14, %v8482_v42  ;;  %v7797_v40 = vpop.permute.xlu1 %7796  ;;  %v14506_v37 = vsel %vm2342_vm15, %v8482_v42, %v8484_v54 }
 0x781   :  { %16128 = vst [vmem:[#allocation40_spill] sm:$0xff] %v14502_v39  ;;  %v14510_v56 = vsel %vm2166_vm14, %v7797_v40, %v7799_v44  ;;  %10566 = vrot.lane.b32.xlu0 %v14050_v53, %s12849_s24  ;;  %v14516_v35 = vsel %vm2166_vm14, %v7795_v46, %v7797_v40 }
 0x782   :  { %10558 = vrot.lane.b32.xlu1 %v14029_v50, %s12849_s24 }
 0x783   :  { %v14520_v62 = vpop.permute.xlu0 %8485 }
 0x784   :  { %v14525_v14 = vsel %vm2342_vm15, %v8484_v54, %v14520_v62  ;;  %v14527_v42 = vpop.permute.xlu1 %7800 }
 0x785   :  { %9892 = vrot.lane.b32.xlu0 %v14088_v22, %s12848_s22  ;;  %v14534_v53 = vsel %vm2166_vm14, %v7799_v44, %v14527_v42 }
 0x786   :  { %10552 = vrot.lane.b32.xlu1 %v14020_v4, %s12849_s24 }
 0x787   :  { %v5665_v50 = vpop.permute.xlu0 %5664 }
 0x788   :  { %v14538_v40 = vpop.permute.xlu1 %8487 }
 0x789   :  { %9896 = vrot.lane.b32.xlu0 %v14094_v7, %s12848_s22 }
 0x78a   :  { %10564 = vrot.lane.b32.xlu1 %v14057_v52, %s12849_s24 }
 0x78b   :  { %v5669_v54 = vpop.permute.xlu0 %5668 }
 0x78c   :  { %v14544_v46 = vpop.permute.xlu1 %8491 }
 0x78d   :  { %10570 = vrot.lane.b32.xlu0 %v14065_v63, %s12849_s24  ;;  %v5683_v63 = vsel %vm5672_vm13, %v14307_v1, %v14331_v3  ;;  %v5679_v3 = vsel %vm5672_vm13, %v14415_v59, %v14432_v16 }
 0x78e   :  { %10568 = vrot.lane.b32.xlu1 %v14076_v51, %s12849_s24 }
 0x78f   :  { %v14550_v44 = vpop.permute.xlu0 %6398 }
 0x790   :  { %v5671_v4 = vpop.permute.xlu1 %5670 }
 0x791   :  { %v5688_v39 = vsel %vm5672_vm13, %v5671_v4, %v14225_v27  ;;  %10574 = vrot.lane.b32.xlu0 %v14070_v6, %s12849_s24  ;;  %v5673_v52 = vsel %vm5672_vm13, %v5669_v54, %v5671_v4  ;;  %v14569_v27 = vpop.f32.mrb[38].mxu1 }
 0x792   :  { %10572 = vrot.lane.b32.xlu1 %v14082_v21, %s12849_s24  ;;  %5695 = vmatpush1.msra.mxu1 %v5688_v39  ;;  %v5684_v21 = vsel %vm5672_vm13, %v14243_v55, %v14307_v1  ;;  %v14578_v39 = vpop.f32.mrb[39].mxu1  ;;  %v5680_v55 = vsel %vm5672_vm13, %v14339_v41, %v14415_v59 }
 0x793   :  { %6191 = vmatprep.subr.mxu0 %v5673_v52  ;;  %11393 = vmatmul.mubr.msk.f32.vlgmr.msra.gmra.mrb[46].mxu1 %vm225_vm2, %v14248_v58  ;;  %v14567_v51 = vpop.permute.xlu0 %6402  ;;  %v14608_v16 = vpop.f32.mrb[42].mxu1  ;;  %v5676_v52 = vsel %vm5672_vm13, %v14440_v11, %v5665_v50  ;;  %v6420_v11 = vsel %vm6406_vm1, %v14258_v2, %v14256_v0 }
 0x794   :  { %5836 = vmatprep.subr.mxu1 %v5683_v63  ;;  %v14571_v6 = vpop.permute.xlu1 %9150  ;;  %5900 = vmatprep.mubr.f32.mxu1 %v16111_v13  ;;  %v6419_v63 = vsel %vm6406_vm1, %v14256_v0, %v14267_v9  ;;  %v6424_v0 = vld [vmem:[#allocation8 + $0xd0] sm:$0xff] }
 0x795   :  { %5837 = vmatpush1.msra.mxu1 %v5684_v21  ;;  %10578 = vrot.lane.b32.xlu0 %v14088_v22, %s12849_s24 }
 0x796   :  { %5978 = vmatprep.subr.mxu1 %v5679_v3  ;;  %10576 = vrot.lane.b32.xlu1 %v14103_v38, %s12849_s24  ;;  %v4015_v38 = vld [vmem:[#allocation8 + $0x118] sm:$0xff]  ;;  %v6421_v3 = vsel %vm6406_vm1, %v14241_v47, %v14258_v2 }
 0x797   :  { %11395 = vmatmul.mubr.msk.f32.vlgmr.msra.gmra.mrb[48].mxu1 %vm225_vm2, %v14248_v58  ;;  %v14594_v1 = vpop.permute.xlu0 %7084 }
 0x798   :  { %5979 = vmatpush1.msra.mxu1 %v5680_v55  ;;  %v14596_v4 = vpop.permute.xlu1 %9154  ;;  %6042 = vmatprep.mubr.f32.mxu1 %v16111_v13  ;;  %v6415_v55 = vsel %vm6406_vm1, %v14329_v23, %v14364_v17 }
 0x799   :  { %10582 = vrot.lane.b32.xlu0 %v14094_v7, %s12849_s24 }
 0x79a   :  { %10580 = vrot.lane.b32.xlu1 %v14108_v28, %s12849_s24  ;;  %v14615_v28 = vpop.f32.mrb[43].mxu1 }
 0x79b   :  { %11397 = vmatmul.mubr.msk.f32.vlgmr.msra.gmra.mrb[50].mxu1 %vm225_vm2, %v14248_v58  ;;  %v14605_v22 = vpop.permute.xlu0 %7088 }
 0x79c   :  { %v5667_v41 = vpop.permute.xlu1 %5666  ;;  %6184 = vmatprep.mubr.f32.mxu1 %v16111_v13 }
 0x79d   :  { %v5674_v59 = vsel %vm5672_vm13, %v5667_v41, %v5669_v54  ;;  %v5675_v7 = vsel %vm5672_vm13, %v5665_v50, %v5667_v41  ;;  %v6411_v41 = vsel %vm6406_vm1, %v14438_v45, %v14472_v18 }
 0x79e   :  { %5066 = vperm.xlu1 %12550, %v4015_v38   ;;  %6120 = vmatprep.subr.mxu1 %v5675_v7 }
 0x79f   :  { %6192 = vmatpush1.msra.mxu0 %v5674_v59  ;;  %6121 = vmatpush1.msra.mxu1 %v5676_v52  ;;  %v14624_v21 = vpop.permute.xlu0 %7802  ;;  %v6418_v59 = vsel %vm6406_vm1, %v14267_v9, %v14321_v25  ;;  %v6412_v9 = vsel %vm6406_vm1, %v14463_v8, %v14438_v45 }
 0x7a0   :  { %11400 = vmatmul.mubr.msk.f32.vlgmr.msra.gmra.mrb[52].mxu0 %vm225_vm2, %v14248_v58  ;;  %6499 = vmatprep.subr.mxu0 %v6419_v63  ;;  %v6405_v50 = vpop.permute.xlu1 %6404 }
 0x7a1   :  { %6500 = vmatpush1.msra.mxu0 %v6420_v11  ;;  %v6422_v54 = vsel %vm6406_vm1, %v6405_v50, %v14241_v47  ;;  %11399 = vmatmul.mubr.msk.f32.vlgmr.msra.gmra.mrb[52].mxu1 %vm225_vm2, %v14248_v58  ;;  %v6417_v47 = vsel %vm6406_vm1, %v14321_v25, %v14355_v48  ;;  %v6416_v58 = vsel %vm6406_vm1, %v14355_v48, %v14329_v23 }
 0x7a2   :  { %6428 = vmatprep.subr.mxu1 %v6421_v3  ;;  %6641 = vmatprep.subr.mxu0 %v6415_v55  ;;  %v6413_v23 = vsel %vm6406_vm1, %v14430_v29, %v14463_v8  ;;  %v6414_v25 = vsel %vm6406_vm1, %v14364_v17, %v14430_v29  ;;  %v6407_v52 = vsel %vm6406_vm1, %v14567_v51, %v6405_v50  ;;  %v7110_v55 = vld [vmem:[#allocation8 + $0xd8] sm:$0xff] }
 0x7a3   :  { %6429 = vmatpush1.msra.mxu1 %v6422_v54  ;;  %6563 = vmatprep.mubr.f32.mxu0 %v16111_v13  ;;  %v14646_v38 = vpop.permute.xlu0 %7806  ;;  %v6410_v29 = vsel %vm6406_vm1, %v14472_v18, %v14550_v44  ;;  %v7106_v18 = vsel %vm7092_vm0, %v14275_v43, %v14277_v19  ;;  %v7107_v54 = vsel %vm7092_vm0, %v14269_v24, %v14275_v43 }
 0x7a4   :  { %6492 = vmatprep.mubr.f32.mxu1 %v16111_v13  ;;  %11402 = vmatmul.mubr.msk.f32.vlgmr.msra.gmra.mrb[38].mxu0 %vm225_vm2, %v6424_v0  ;;  %v14658_v2 = vpop.permute.xlu1 %9148  ;;  %v7101_v3 = vsel %vm7092_vm0, %v14351_v31, %v14378_v12  ;;  %v7103_v43 = vsel %vm7092_vm0, %v14337_v20, %v14370_v61  ;;  %v7097_v12 = vsel %vm7092_vm0, %v14470_v26, %v14494_v36 }
 0x7a5   :  { %6570 = vmatprep.subr.mxu1 %v6417_v47  ;;  %6642 = vmatpush1.msra.mxu0 %v6416_v58 }
 0x7a6   :  { %6783 = vmatprep.subr.mxu0 %v6411_v41  ;;  %11401 = vmatmul.mubr.msk.f32.vlgmr.msra.gmra.mrb[54].mxu1 %vm225_vm2, %v6424_v0 }
 0x7a7   :  { %6571 = vmatpush1.msra.mxu1 %v6418_v59  ;;  %6705 = vmatprep.mubr.f32.mxu0 %v16111_v13  ;;  %v14674_v48 = vpop.permute.xlu0 %9152  ;;  %v7823_v59 = vsel %vm2166_vm14, %v14291_v30, %v14293_v5 }
 0x7a8   :  { %6712 = vmatprep.subr.mxu1 %v6413_v23  ;;  %6634 = vmatprep.mubr.f32.mxu1 %v16111_v13  ;;  %v14677_v7 = vpop.permute.xlu1 %9160  ;;  %v7827_v23 = vld [vmem:[#allocation8 + $0xe0] sm:$0xff] }
 0x7a9   :  { %11404 = vmatmul.mubr.msk.f32.vlgmr.msra.gmra.mrb[40].mxu0 %vm225_vm2, %v6424_v0 }
 0x7aa   :  { %6784 = vmatpush1.msra.mxu0 %v6412_v9  ;;  %11403 = vmatmul.mubr.msk.f32.vlgmr.msra.gmra.mrb[40].mxu1 %vm225_vm2, %v6424_v0 }
 0x7ab   :  { %6925 = vmatprep.subr.mxu0 %v6407_v52  ;;  %6713 = vmatpush1.msra.mxu1 %v6414_v25  ;;  %v14692_v63 = vpop.permute.xlu0 %9156  ;;  %v16129_v25 = vld [vmem:[#allocation35_spill] sm:$0xff] }
 0x7ac   :  { %6847 = vmatprep.mubr.f32.mxu0 %v16111_v13  ;;  %6776 = vmatprep.mubr.f32.mxu1 %v16111_v13  ;;  %v6401_v8 = vpop.permute.xlu1 %6400 }
 0x7ad   :  { %11406 = vmatmul.mubr.msk.f32.vlgmr.msra.gmra.mrb[42].mxu0 %vm225_vm2, %v6424_v0  ;;  %v6408_v17 = vsel %vm6406_vm1, %v6401_v8, %v14567_v51  ;;  %v6409_v45 = vsel %vm6406_vm1, %v14550_v44, %v6401_v8  ;;  %v7105_v51 = vsel %vm7092_vm0, %v14277_v19, %v14283_v57  ;;  %v16132_v8 = vld [vmem:[#allocation33_spill] sm:$0xff] }
 0x7ae   :  { %11405 = vmatmul.mubr.msk.f32.vlgmr.msra.gmra.mrb[56].mxu1 %vm225_vm2, %v6424_v0  ;;  %6854 = vmatprep.subr.mxu1 %v6409_v45 }
 0x7af   :  { %6926 = vmatpush1.msra.mxu0 %v6408_v17  ;;  %6989 = vmatprep.mubr.f32.mxu0 %v16111_v13  ;;  %v14709_v11 = vpop.permute.xlu0 %9158 }
 0x7b0   :  { %6855 = vmatpush1.msra.mxu1 %v6410_v29  ;;  %6918 = vmatprep.mubr.f32.mxu1 %v16111_v13  ;;  %v7091_v50 = vpop.permute.xlu1 %7090  ;;  %v16133_v29 = vld [vmem:[#allocation38_spill] sm:$0xff] }
 0x7b1   :  { %11408 = vmatmul.mubr.msk.f32.vlgmr.msra.gmra.mrb[44].mxu0 %vm225_vm2, %v6424_v0  ;;  %7185 = vmatprep.subr.mxu0 %v7105_v51  ;;  %v7108_v44 = vsel %vm7092_vm0, %v7091_v50, %v14269_v24  ;;  %v7102_v24 = vsel %vm7092_vm0, %v14370_v61, %v14351_v31  ;;  %v7104_v31 = vsel %vm7092_vm0, %v14283_v57, %v14337_v20 }
 0x7b2   :  { %7186 = vmatpush1.msra.mxu0 %v7106_v18  ;;  %11407 = vmatmul.mubr.msk.f32.vlgmr.msra.gmra.mrb[44].mxu1 %vm225_vm2, %v6424_v0  ;;  %v7099_v61 = vsel %vm7092_vm0, %v14453_v32, %v14482_v49  ;;  %v7093_v57 = vsel %vm7092_vm0, %v14605_v22, %v7091_v50  ;;  %v7813_v50 = vsel %vm2166_vm14, %v14527_v42, %v14624_v21  ;;  %v16137_v42 = vld [vmem:[#allocation26_spill] sm:$0xff] }
 0x7b3   :  { %7114 = vmatprep.subr.mxu1 %v7107_v54  ;;  %7327 = vmatprep.subr.mxu0 %v7101_v3  ;;  %v14733_v19 = vpop.permute.xlu0 %9162 }
 0x7b4   :  { %7115 = vmatpush1.msra.mxu1 %v7108_v44  ;;  %7249 = vmatprep.mubr.f32.mxu0 %v16111_v13  ;;  %v14736_v47 = vpop.permute.xlu1 %9164  ;;  %v16135_v44 = vld [vmem:[#allocation28_spill] sm:$0xff] }
 0x7b5   :  { %7178 = vmatprep.mubr.f32.mxu1 %v16111_v13  ;;  %11410 = vmatmul.mubr.msk.f32.vlgmr.msra.gmra.mrb[54].mxu0 %vm225_vm2, %v7110_v55 }
 0x7b6   :  { %7256 = vmatprep.subr.mxu1 %v7103_v43  ;;  %7328 = vmatpush1.msra.mxu0 %v7102_v24  ;;  %v16138_v43 = vld [vmem:[#allocation25_spill] sm:$0xff] }
 0x7b7   :  { %7469 = vmatprep.subr.mxu0 %v7097_v12  ;;  %11409 = vmatmul.mubr.msk.f32.vlgmr.msra.gmra.mrb[58].mxu1 %vm225_vm2, %v7110_v55  ;;  %v14757_v0 = vpop.permute.xlu0 %9166  ;;  %v8509_v12 = vsel %vm2342_vm15, %v16138_v43, %v16137_v42 }
 0x7b8   :  { %7257 = vmatpush1.msra.mxu1 %v7104_v31  ;;  %7391 = vmatprep.mubr.f32.mxu0 %v16111_v13  ;;  %v14764_v58 = vpop.permute.xlu1 %9168  ;;  %v8512_v31 = vld [vmem:[#allocation8 + $0xf0] sm:$0xff] }
 0x7b9   :  { %7398 = vmatprep.subr.mxu1 %v7099_v61  ;;  %7320 = vmatprep.mubr.f32.mxu1 %v16111_v13 }
 0x7ba   :  { %11412 = vmatmul.mubr.msk.f32.vlgmr.msra.gmra.mrb[56].mxu0 %vm225_vm2, %v7110_v55 }
 0x7bb   :  { %7470 = vmatpush1.msra.mxu0 %v14488_v10  ;;  %11411 = vmatmul.mubr.msk.f32.vlgmr.msra.gmra.mrb[60].mxu1 %vm225_vm2, %v7110_v55  ;;  %v14773_v20 = vpop.permute.xlu0 %9170 }
 0x7bc   :  { %7611 = vmatprep.subr.mxu0 %v7093_v57  ;;  %7399 = vmatpush1.msra.mxu1 %v14459_v33  ;;  %v7087_v32 = vpop.permute.xlu1 %7086  ;;  %v7096_v33 = vsel %vm7092_vm0, %v14494_v36, %v14594_v1  ;;  %v16139_v57 = vld [vmem:[#allocation37_spill] sm:$0xff] }
 0x7bd   :  { %7533 = vmatprep.mubr.f32.mxu0 %v16111_v13  ;;  %7462 = vmatprep.mubr.f32.mxu1 %v16111_v13  ;;  %v7094_v10 = vsel %vm7092_vm0, %v7087_v32, %v14605_v22  ;;  %v7095_v26 = vsel %vm7092_vm0, %v14594_v1, %v7087_v32  ;;  %v7822_v22 = vsel %vm2166_vm14, %v14293_v5, %v14299_v60  ;;  %v16140_v32 = vld [vmem:[#allocation27_spill] sm:$0xff] }
 0x7be   :  { %11414 = vmatmul.mubr.msk.f32.vlgmr.msra.gmra.mrb[58].mxu0 %vm225_vm2, %v7110_v55  ;;  %7540 = vmatprep.subr.mxu1 %v7095_v26  ;;  %v7824_v1 = vsel %vm2166_vm14, %v14285_v15, %v14291_v30  ;;  %v16131_v30 = vld [vmem:[#allocation29_spill] sm:$0xff] }
 0x7bf   :  { %11413 = vmatmul.mubr.msk.f32.vlgmr.msra.gmra.mrb[62].mxu1 %vm225_vm2, %v7110_v55  ;;  %7612 = vmatpush1.msra.mxu0 %v7094_v10  ;;  %v14790_v49 = vpop.permute.xlu0 %9870  ;;  %v7821_v5 = vsel %vm2166_vm14, %v14299_v60, %v16131_v30  ;;  %v16141_v10 = vld [vmem:[#allocation32_spill] sm:$0xff] }
 0x7c0   :  { %7675 = vmatprep.mubr.f32.mxu0 %v16111_v13  ;;  %7541 = vmatpush1.msra.mxu1 %v7096_v33  ;;  %v7809_v41 = vpop.permute.xlu1 %7808  ;;  %v8504_v26 = vsel %vm2342_vm15, %v16141_v10, %v16140_v32  ;;  %v9916_v10 = vld [vmem:[#allocation8 + $0x100] sm:$0xff] }
 0x7c1   :  { %7604 = vmatprep.mubr.f32.mxu1 %v16111_v13  ;;  %7902 = vmatprep.subr.mxu0 %v7822_v22  ;;  %v7825_v36 = vsel %vm2166_vm14, %v7809_v41, %v14285_v15  ;;  %v16130_v15 = vld [vmem:[#allocation34_spill] sm:$0xff]  ;;  %v7810_v60 = vsel %vm2166_vm14, %v14646_v38, %v7809_v41  ;;  %v16142_v22 = vld [vmem:[#allocation36_spill] sm:$0xff] }
 0x7c2   :  { %11416 = vmatmul.mubr.msk.f32.vlgmr.msra.gmra.mrb[60].mxu0 %vm225_vm2, %v7110_v55  ;;  %7831 = vmatprep.subr.mxu1 %v7824_v1  ;;  %v8503_v41 = vsel %vm2342_vm15, %v16140_v32, %v16142_v22 }
 0x7c3   :  { %7903 = vmatpush1.msra.mxu0 %v7823_v59  ;;  %11415 = vmatmul.mubr.msk.f32.vlgmr.msra.gmra.mrb[64].mxu1 %vm225_vm2, %v7110_v55  ;;  %v14811_v9 = vpop.permute.xlu0 %9874  ;;  %v16136_v55 = vld [vmem:[#allocation24_spill] sm:$0xff]  ;;  %v16143_v59 = vld [vmem:[#allocation31_spill] sm:$0xff] }
 0x7c4   :  { %8044 = vmatprep.subr.mxu0 %v16129_v25  ;;  %7832 = vmatpush1.msra.mxu1 %v7825_v36  ;;  %v14814_v52 = vpop.permute.xlu1 %9172  ;;  %v8507_v24 = vsel %vm2342_vm15, %v16136_v55, %v16135_v44  ;;  %v8498_v36 = vsel %vm2342_vm15, %v14520_v62, %v14538_v40 }
 0x7c5   :  { %7966 = vmatprep.mubr.f32.mxu0 %v16111_v13  ;;  %7895 = vmatprep.mubr.f32.mxu1 %v16111_v13 }
 0x7c6   :  { %11418 = vmatmul.mubr.msk.f32.vlgmr.msra.gmra.mrb[62].mxu0 %vm225_vm2, %v7827_v23  ;;  %7973 = vmatprep.subr.mxu1 %v16130_v15  ;;  %v16144_v15 = vld [vmem:[#allocation40_spill] sm:$0xff] }
 0x7c7   :  { %8045 = vmatpush1.msra.mxu0 %v16132_v8  ;;  %11417 = vmatmul.mubr.msk.f32.vlgmr.msra.gmra.mrb[66].mxu1 %vm225_vm2, %v7827_v23  ;;  %v14826_v17 = vpop.permute.xlu0 %9876 }
 0x7c8   :  { %8186 = vmatprep.subr.mxu0 %v14534_v53  ;;  %7974 = vmatpush1.msra.mxu1 %v7821_v5  ;;  %v14829_v45 = vpop.permute.xlu1 %9176 }
 0x7c9   :  { %8115 = vmatprep.subr.mxu1 %v14516_v35  ;;  %8108 = vmatprep.mubr.f32.mxu0 %v16111_v13 }
 0x7ca   :  { %8037 = vmatprep.mubr.f32.mxu1 %v16111_v13  ;;  %11420 = vmatmul.mubr.msk.f32.vlgmr.msra.gmra.mrb[64].mxu0 %vm225_vm2, %v7827_v23 }
 0x7cb   :  { %8187 = vmatpush1.msra.mxu0 %v14510_v56  ;;  %11419 = vmatmul.mubr.msk.f32.vlgmr.msra.gmra.mrb[68].mxu1 %vm225_vm2, %v7827_v23  ;;  %v14840_v53 = vpop.permute.xlu0 %9880 }
 0x7cc   :  { %8328 = vmatprep.subr.mxu0 %v7810_v60  ;;  %8116 = vmatpush1.msra.mxu1 %v16133_v29  ;;  %v7805_v35 = vpop.permute.xlu1 %7804 }
 0x7cd   :  { %8250 = vmatprep.mubr.f32.mxu0 %v16111_v13  ;;  %8179 = vmatprep.mubr.f32.mxu1 %v16111_v13  ;;  %v7811_v56 = vsel %vm2166_vm14, %v7805_v35, %v14646_v38  ;;  %v7812_v51 = vsel %vm2166_vm14, %v14624_v21, %v7805_v35  ;;  %v16134_v38 = vld [vmem:[#allocation30_spill] sm:$0xff]  ;;  %v8508_v21 = vsel %vm2342_vm15, %v16137_v42, %v16136_v55  ;;  %vm9180_vm14 = vcmp.lt.s32.totalorder %v16113_v34, 97 }
 0x7ce   :  { %11422 = vmatmul.mubr.msk.f32.vlgmr.msra.gmra.mrb[66].mxu0 %vm225_vm2, %v7827_v23  ;;  %8257 = vmatprep.subr.mxu1 %v7812_v51  ;;  %v8506_v54 = vsel %vm2342_vm15, %v16135_v44, %v16134_v38  ;;  %v9194_v8 = vsel %vm9180_vm14, %v14571_v6, %v14674_v48  ;;  %v9193_v29 = vsel %vm9180_vm14, %v14674_v48, %v14596_v4  ;;  %v9198_v48 = vld [vmem:[#allocation8 + $0xf8] sm:$0xff] }
 0x7cf   :  { %11421 = vmatmul.mubr.msk.f32.vlgmr.msra.gmra.mrb[70].mxu1 %vm225_vm2, %v7827_v23  ;;  %8329 = vmatpush1.msra.mxu0 %v7811_v56  ;;  %v14857_v18 = vpop.permute.xlu0 %9884  ;;  %v9195_v35 = vsel %vm9180_vm14, %v14658_v2, %v14571_v6  ;;  %v9188_v56 = vsel %vm9180_vm14, %v14733_v19, %v14736_v47  ;;  %v9191_v6 = vsel %vm9180_vm14, %v14692_v63, %v14709_v11 }
 0x7d0   :  { %8392 = vmatprep.mubr.f32.mxu0 %v16111_v13  ;;  %8258 = vmatpush1.msra.mxu1 %v7813_v50  ;;  %v14864_v3 = vpop.permute.xlu1 %9868  ;;  %v9189_v38 = vsel %vm9180_vm14, %v14677_v7, %v14733_v19  ;;  %v9187_v19 = vsel %vm9180_vm14, %v14736_v47, %v14757_v0  ;;  %v9185_v55 = vsel %vm9180_vm14, %v14764_v58, %v14773_v20 }
 0x7d1   :  { %8321 = vmatprep.mubr.f32.mxu1 %v16111_v13  ;;  %8587 = vmatprep.subr.mxu0 %v8506_v54  ;;  %v9186_v54 = vsel %vm9180_vm14, %v14757_v0, %v14764_v58 }
 0x7d2   :  { %11424 = vmatmul.mubr.msk.f32.vlgmr.msra.gmra.mrb[68].mxu0 %vm225_vm2, %v7827_v23  ;;  %8516 = vmatprep.subr.mxu1 %v8508_v21 }
 0x7d3   :  { %8588 = vmatpush1.msra.mxu0 %v8507_v24  ;;  %11423 = vmatmul.mubr.msk.f32.vlgmr.msra.gmra.mrb[72].mxu1 %vm225_vm2, %v7827_v23  ;;  %v14881_v61 = vpop.permute.xlu0 %9888 }
 0x7d4   :  { %8517 = vmatpush1.msra.mxu1 %v8509_v12  ;;  %8729 = vmatprep.subr.mxu0 %v16139_v57  ;;  %v14888_v33 = vpop.permute.xlu1 %9872 }
 0x7d5   :  { %8651 = vmatprep.mubr.f32.mxu0 %v16111_v13  ;;  %8658 = vmatprep.subr.mxu1 %v8504_v26 }
 0x7d6   :  { %8580 = vmatprep.mubr.f32.mxu1 %v16111_v13  ;;  %11426 = vmatmul.mubr.msk.f32.vlgmr.msra.gmra.mrb[70].mxu0 %vm225_vm2, %v8512_v31 }
 0x7d7   :  { %8730 = vmatpush1.msra.mxu0 %v8503_v41  ;;  %11425 = vmatmul.mubr.msk.f32.vlgmr.msra.gmra.mrb[74].mxu1 %vm225_vm2, %v8512_v31  ;;  %v8490_v1 = vpop.permute.xlu0 %8489 }
 0x7d8   :  { %8871 = vmatprep.subr.mxu0 %v8498_v36  ;;  %8659 = vmatpush1.msra.mxu1 %v16143_v59  ;;  %v14903_v23 = vpop.permute.xlu1 %9866  ;;  %v8496_v62 = vsel %vm2342_vm15, %v8490_v1, %v14544_v46 }
 0x7d9   :  { %8800 = vmatprep.subr.mxu1 %v14506_v37  ;;  %8793 = vmatprep.mubr.f32.mxu0 %v16111_v13 }
 0x7da   :  { %8722 = vmatprep.mubr.f32.mxu1 %v16111_v13  ;;  %11428 = vmatmul.mubr.msk.f32.vlgmr.msra.gmra.mrb[72].mxu0 %vm225_vm2, %v8512_v31 }
 0x7db   :  { %8872 = vmatpush1.msra.mxu0 %v14525_v14  ;;  %11427 = vmatmul.mubr.msk.f32.vlgmr.msra.gmra.mrb[76].mxu1 %vm225_vm2, %v8512_v31  ;;  %v8494_v25 = vpop.permute.xlu0 %8493  ;;  %v8497_v14 = vsel %vm2342_vm15, %v14538_v40, %v8490_v1  ;;  %v9192_v40 = vsel %vm9180_vm14, %v14596_v4, %v14692_v63  ;;  %v9190_v4 = vsel %vm9180_vm14, %v14709_v11, %v14677_v7 }
 0x7dc   :  { %8801 = vmatpush1.msra.mxu1 %v16144_v15  ;;  %8935 = vmatprep.mubr.f32.mxu0 %v16111_v13  ;;  %v8495_v37 = vsel %vm2342_vm15, %v14544_v46, %v8494_v25  ;;  %v14919_v30 = vpop.permute.xlu1 %9878  ;;  %v8510_v5 = vsel %vm2342_vm15, %v8494_v25, %v16138_v43  ;;  %v9184_v63 = vsel %vm9180_vm14, %v14773_v20, %v14814_v52  ;;  %vm9898_vm15 = vcmp.lt.s32.totalorder %v16113_v34, 96 }
 0x7dd   :  { %8942 = vmatprep.subr.mxu1 %v8496_v62  ;;  %8864 = vmatprep.mubr.f32.mxu1 %v16111_v13  ;;  %v9911_v12 = vsel %vm9898_vm15, %v14790_v49, %v14888_v33  ;;  %v9908_v32 = vsel %vm9898_vm15, %v14826_v17, %v14919_v30  ;;  %v9909_v26 = vsel %vm9898_vm15, %v14811_v9, %v14826_v17 }
 0x7de   :  { %11430 = vmatmul.mubr.msk.f32.vlgmr.msra.gmra.mrb[74].mxu0 %vm225_vm2, %v8512_v31  ;;  %9013 = vmatprep.subr.mxu0 %v8510_v5 }
 0x7df   :  { %11429 = vmatmul.mubr.msk.f32.vlgmr.msra.gmra.mrb[78].mxu1 %vm225_vm2, %v8512_v31  ;;  %9014 = vmatpush1.msra.mxu0 %v8495_v37  ;;  %v14931_v46 = vpop.permute.xlu0 %10556 }
 0x7e0   :  { %8943 = vmatpush1.msra.mxu1 %v8497_v14  ;;  %9006 = vmatprep.mubr.f32.mxu1 %v16111_v13  ;;  %v14938_v60 = vpop.permute.xlu1 %9882 }
 0x7e1   :  { %9202 = vmatprep.subr.mxu1 %v9194_v8  ;;  %9077 = vmatprep.mubr.f32.mxu0 %v16111_v13  ;;  %v9905_v36 = vsel %vm9898_vm15, %v14938_v60, %v14857_v18 }
 0x7e2   :  { %11432 = vmatmul.mubr.msk.f32.vlgmr.msra.gmra.mrb[76].mxu0 %vm225_vm2, %v8512_v31  ;;  %9273 = vmatprep.subr.mxu0 %v9192_v40 }
 0x7e3   :  { %11431 = vmatmul.mubr.msk.f32.vlgmr.msra.gmra.mrb[80].mxu1 %vm225_vm2, %v8512_v31  ;;  %9274 = vmatpush1.msra.mxu0 %v9193_v29  ;;  %v14959_v51 = vpop.permute.xlu0 %10560  ;;  %v9913_v31 = vsel %vm9898_vm15, %v14903_v23, %v14864_v3  ;;  %v10602_v29 = vld [vmem:[#allocation8 + $0x108] sm:$0xff] }
 0x7e4   :  { %9203 = vmatpush1.msra.mxu1 %v9195_v35  ;;  %9415 = vmatprep.subr.mxu0 %v9188_v56  ;;  %v14965_v50 = vpop.permute.xlu1 %9886 }
 0x7e5   :  { %9344 = vmatprep.subr.mxu1 %v9190_v4  ;;  %9266 = vmatprep.mubr.f32.mxu1 %v16111_v13  ;;  %v9904_v41 = vsel %vm9898_vm15, %v14857_v18, %v14965_v50  ;;  %v9903_v1 = vsel %vm9898_vm15, %v14965_v50, %v14881_v61 }
 0x7e6   :  { %9337 = vmatprep.mubr.f32.mxu0 %v16111_v13 }
 0x7e7   :  { %11434 = vmatmul.mubr.msk.f32.vlgmr.msra.gmra.mrb[78].mxu0 %vm225_vm2, %v9198_v48  ;;  %11433 = vmatmul.mubr.msk.f32.vlgmr.msra.gmra.mrb[82].mxu1 %vm225_vm2, %v9198_v48  ;;  %v9175_v44 = vpop.permute.xlu0 %9174 }
 0x7e8   :  { %9416 = vmatpush1.msra.mxu0 %v9189_v38  ;;  %9345 = vmatpush1.msra.mxu1 %v9191_v6  ;;  %v14987_v11 = vpop.permute.xlu1 %9890  ;;  %v9182_v7 = vsel %vm9180_vm14, %v9175_v44, %v14829_v45  ;;  %v9183_v58 = vsel %vm9180_vm14, %v14814_v52, %v9175_v44  ;;  %v9910_v52 = vsel %vm9898_vm15, %v14888_v33, %v14811_v9 }
 0x7e9   :  { %9486 = vmatprep.subr.mxu1 %v9186_v54  ;;  %9557 = vmatprep.subr.mxu0 %v9184_v63  ;;  %v9907_v33 = vsel %vm9898_vm15, %v14919_v30, %v14840_v53  ;;  %v9902_v9 = vsel %vm9898_vm15, %v14881_v61, %v14987_v11 }
 0x7ea   :  { %9408 = vmatprep.mubr.f32.mxu1 %v16111_v13  ;;  %9479 = vmatprep.mubr.f32.mxu0 %v16111_v13 }
 0x7eb   :  { %11436 = vmatmul.mubr.msk.f32.vlgmr.msra.gmra.mrb[80].mxu0 %vm225_vm2, %v9198_v48  ;;  %11435 = vmatmul.mubr.msk.f32.vlgmr.msra.gmra.mrb[84].mxu1 %vm225_vm2, %v9198_v48  ;;  %v9179_v42 = vpop.permute.xlu0 %9178 }
 0x7ec   :  { %9558 = vmatpush1.msra.mxu0 %v9185_v55  ;;  %9487 = vmatpush1.msra.mxu1 %v9187_v19  ;;  %v15004_v21 = vpop.permute.xlu1 %9894  ;;  %v9196_v24 = vsel %vm9180_vm14, %v9179_v42, %v14658_v2  ;;  %v9181_v47 = vsel %vm9180_vm14, %v14829_v45, %v9179_v42  ;;  %v9912_v45 = vsel %vm9898_vm15, %v14864_v3, %v14790_v49 }
 0x7ed   :  { %9628 = vmatprep.subr.mxu1 %v9182_v7  ;;  %9550 = vmatprep.mubr.f32.mxu1 %v16111_v13  ;;  %v9906_v49 = vsel %vm9898_vm15, %v14840_v53, %v14938_v60 }
 0x7ee   :  { %9621 = vmatprep.mubr.f32.mxu0 %v16111_v13  ;;  %9699 = vmatprep.subr.mxu0 %v9196_v24  ;;  %v15014_v0 = vpop.f32.mrb[46].mxu0 }
 0x7ef   :  { %11438 = vmatmul.mubr.msk.f32.vlgmr.msra.gmra.mrb[82].mxu0 %vm225_vm2, %v9198_v48  ;;  %11437 = vmatmul.mubr.msk.f32.vlgmr.msra.gmra.mrb[86].mxu1 %vm225_vm2, %v9198_v48  ;;  %v15022_v2 = vpop.permute.xlu0 %10562  ;;  %v15024_v20 = vpop.f32.mrb[47].mxu0 }
 0x7f0   :  { %9629 = vmatpush1.msra.mxu1 %v9183_v58  ;;  %9692 = vmatprep.mubr.f32.mxu1 %v16111_v13  ;;  %v15031_v43 = vpop.permute.xlu1 %10554  ;;  %v10595_v56 = vsel %vm10584_vm3, %v14959_v51, %v15022_v2  ;;  %v4874_v58 = vand.u32 1023, %v16113_v34 }
 0x7f1   :  { %9920 = vmatprep.subr.mxu1 %v9912_v45  ;;  %9700 = vmatpush1.msra.mxu0 %v9181_v47  ;;  %v10598_v15 = vsel %vm10584_vm3, %v15031_v43, %v14931_v46  ;;  %v4682_v47 = vand.u32 31, %v16113_v34  ;;  %v16149_v45 = vld [vmem:[#allocation58_spill] sm:$0xff] }
 0x7f2   :  { %9763 = vmatprep.mubr.f32.mxu0 %v16111_v13  ;;  %9991 = vmatprep.subr.mxu0 %v9910_v52  ;;  %vm15189_vm5 = vcmp.ge.s32.totalorder %v4874_v58, 32  ;;  %v15195_v52 = vadd.s32 1024, %v16113_v34 }
 0x7f3   :  { %11440 = vmatmul.mubr.msk.f32.vlgmr.msra.gmra.mrb[84].mxu0 %vm225_vm2, %v9198_v48  ;;  %11439 = vmatmul.mubr.msk.f32.vlgmr.msra.gmra.mrb[88].mxu1 %vm225_vm2, %v9198_v48  ;;  %v15048_v57 = vpop.permute.xlu0 %10566  ;;  %vm15185_vm4 = vcmp.ge.s32.totalorder %v4682_v47, 1 }
 0x7f4   :  { %9921 = vmatpush1.msra.mxu1 %v9913_v31  ;;  %9992 = vmatpush1.msra.mxu0 %v9911_v12  ;;  %v10559_v3 = vpop.permute.xlu1 %10558  ;;  %v16150_v31 = vmov 0 }
 0x7f5   :  { %10062 = vmatprep.subr.mxu1 %v9908_v32  ;;  %10133 = vmatprep.subr.mxu0 %v9906_v49  ;;  %v10596_v30 = vsel %vm10584_vm3, %v10559_v3, %v14959_v51  ;;  %v10597_v14 = vsel %vm10584_vm3, %v14931_v46, %v10559_v3  ;;  %v4930_v32 = vand.u32 1023, %v15195_v52  ;;  %v15212_v49 = vadd.s32 1152, %v16113_v34 }
 0x7f6   :  { %9984 = vmatprep.mubr.f32.mxu1 %v16111_v13  ;;  %10055 = vmatprep.mubr.f32.mxu0 %v16111_v13 }
 0x7f7   :  { %11442 = vmatmul.mubr.msk.f32.vlgmr.msra.gmra.mrb[38].mxu0 %vm225_vm2, %v9916_v10  ;;  %11441 = vmatmul.mubr.msk.f32.vlgmr.msra.gmra.mrb[90].mxu1 %vm225_vm2, %v9916_v10  ;;  %v9893_v22 = vpop.permute.xlu0 %9892  ;;  %vm15230_vm8 = vcmp.ge.s32.totalorder %v4930_v32, 32 }
 0x7f8   :  { %10134 = vmatpush1.msra.mxu0 %v9907_v33  ;;  %10063 = vmatpush1.msra.mxu1 %v9909_v26  ;;  %v15078_v17 = vpop.permute.xlu1 %10552  ;;  %v9900_v53 = vsel %vm9898_vm15, %v9893_v22, %v15004_v21  ;;  %v9901_v61 = vsel %vm9898_vm15, %v14987_v11, %v9893_v22 }
 0x7f9   :  { %10204 = vmatprep.subr.mxu1 %v9904_v41  ;;  %10275 = vmatprep.subr.mxu0 %v9902_v9  ;;  %v10599_v8 = vsel %vm10584_vm3, %v15078_v17, %v15031_v43  ;;  %v4689_v43 = vand.u32 31, %v16149_v45 }
 0x7fa   :  { %10126 = vmatprep.mubr.f32.mxu1 %v16111_v13  ;;  %10197 = vmatprep.mubr.f32.mxu0 %v16111_v13 }
 0x7fb   :  { %11444 = vmatmul.mubr.msk.f32.vlgmr.msra.gmra.mrb[86].mxu0 %vm225_vm2, %v9916_v10  ;;  %11443 = vmatmul.mubr.msk.f32.vlgmr.msra.gmra.mrb[40].mxu1 %vm225_vm2, %v9916_v10  ;;  %v9897_v59 = vpop.permute.xlu0 %9896  ;;  %vm15205_vm6 = vcmp.ge.s32.totalorder %v4689_v43, 1 }
 0x7fc   :  { %10276 = vmatpush1.msra.mxu0 %v9903_v1  ;;  %10205 = vmatpush1.msra.mxu1 %v9905_v36  ;;  %v10565_v62 = vpop.permute.xlu1 %10564  ;;  %v9914_v25 = vsel %vm9898_vm15, %v9897_v59, %v14903_v23  ;;  %v9899_v18 = vsel %vm9898_vm15, %v15004_v21, %v9897_v59  ;;  %v16151_v31 = vsel %vm15205_vm6, 4294967295, %v16150_v31  ;;  %v15244_v59 = vadd.s32 768, %v16113_v34 }
 0x7fd   :  { %10346 = vmatprep.subr.mxu1 %v9900_v53  ;;  %10268 = vmatprep.mubr.f32.mxu1 %v16111_v13  ;;  %v10594_v40 = vsel %vm10584_vm3, %v15022_v2, %v10565_v62  ;;  %v10593_v4 = vsel %vm10584_vm3, %v10565_v62, %v15048_v57  ;;  %v16152_v53 = vmov 0  ;;  %v16156_v62 = vmov 0 }
 0x7fe   :  { %10339 = vmatprep.mubr.f32.mxu0 %v16111_v13  ;;  %10417 = vmatprep.subr.mxu0 %v9914_v25  ;;  %v15253_v25 = vadd.s32 896, %v16113_v34 }
 0x7ff   :  { %11446 = vmatmul.mubr.msk.f32.vlgmr.msra.gmra.mrb[42].mxu0 %vm225_vm2, %v9916_v10  ;;  %11445 = vmatmul.mubr.msk.f32.vlgmr.msra.gmra.mrb[92].mxu1 %vm225_vm2, %v9916_v10  ;;  %v10571_v23 = vpop.permute.xlu0 %10570 }
 0x800   :  { %10347 = vmatpush1.msra.mxu1 %v9901_v61  ;;  %10410 = vmatprep.mubr.f32.mxu1 %v16111_v13  ;;  %v10569_v37 = vpop.permute.xlu1 %10568 }
 0x801   :  { %10606 = vmatprep.subr.mxu1 %v10598_v15  ;;  %10418 = vmatpush1.msra.mxu0 %v9899_v18  ;;  %v10592_v5 = vsel %vm10584_vm3, %v15048_v57, %v10569_v37  ;;  %v10591_v51 = vsel %vm10584_vm3, %v10569_v37, %v10571_v23  ;;  %v4738_v57 = vand.u32 31, %v15195_v52 }
 0x802   :  { %10481 = vmatprep.mubr.f32.mxu0 %v16111_v13  ;;  %10677 = vmatprep.subr.mxu0 %v10596_v30 }
 0x803   :  { %11448 = vmatmul.mubr.msk.f32.vlgmr.msra.gmra.mrb[88].mxu0 %vm225_vm2, %v9916_v10  ;;  %11447 = vmatmul.mubr.msk.f32.vlgmr.msra.gmra.mrb[44].mxu1 %vm225_vm2, %v9916_v10  ;;  %v10575_v60 = vpop.permute.xlu0 %10574  ;;  %vm15226_vm7 = vcmp.ge.s32.totalorder %v4738_v57, 1 }
 0x804   :  { %10607 = vmatpush1.msra.mxu1 %v10599_v8  ;;  %10678 = vmatpush1.msra.mxu0 %v10597_v14  ;;  %v10573_v35 = vpop.permute.xlu1 %10572  ;;  %v16153_v53 = vsel %vm15226_vm7, 4294967295, %v16152_v53  ;;  %vm6302_vm9 = vmand %vm15226_vm7, %vm15230_vm8 }
 0x805   :  { %10748 = vmatprep.subr.mxu1 %v10594_v40  ;;  %10819 = vmatprep.subr.mxu0 %v10592_v5  ;;  %v10590_v46 = vsel %vm10584_vm3, %v10571_v23, %v10573_v35  ;;  %v10589_v44 = vsel %vm10584_vm3, %v10573_v35, %v10575_v60 }
 0x806   :  { %10670 = vmatprep.mubr.f32.mxu1 %v16111_v13  ;;  %10741 = vmatprep.mubr.f32.mxu0 %v16111_v13 }
 0x807   :  { %11450 = vmatmul.mubr.msk.f32.vlgmr.msra.gmra.mrb[90].mxu0 %vm225_vm2, %v10602_v29  ;;  %11449 = vmatmul.mubr.msk.f32.vlgmr.msra.gmra.mrb[94].mxu1 %vm225_vm2, %v10602_v29  ;;  %v10579_v48 = vpop.permute.xlu0 %10578 }
 0x808   :  { %10820 = vmatpush1.msra.mxu0 %v10593_v4  ;;  %10749 = vmatpush1.msra.mxu1 %v10595_v56  ;;  %v10577_v50 = vpop.permute.xlu1 %10576 }
 0x809   :  { %10890 = vmatprep.subr.mxu1 %v10590_v46  ;;  %10812 = vmatprep.mubr.f32.mxu1 %v16111_v13  ;;  %v10588_v6 = vsel %vm10584_vm3, %v10575_v60, %v10577_v50  ;;  %v10587_v19 = vsel %vm10584_vm3, %v10577_v50, %v10579_v48 }
 0x80a   :  { %10883 = vmatprep.mubr.f32.mxu0 %v16111_v13  ;;  %10961 = vmatprep.subr.mxu0 %v10588_v6 }
 0x80b   :  { %11452 = vmatmul.mubr.msk.f32.vlgmr.msra.gmra.mrb[92].mxu0 %vm225_vm2, %v10602_v29  ;;  %11451 = vmatmul.mubr.msk.f32.vlgmr.msra.gmra.mrb[96].mxu1 %vm225_vm2, %v10602_v29  ;;  %v10583_v38 = vpop.permute.xlu0 %10582 }
 0x80c   :  { %10891 = vmatpush1.msra.mxu1 %v10591_v51  ;;  %10954 = vmatprep.mubr.f32.mxu1 %v16111_v13  ;;  %v10581_v54 = vpop.permute.xlu1 %10580  ;;  %v10600_v63 = vsel %vm10584_vm3, %v10583_v38, %v15078_v17 }
 0x80d   :  { %10962 = vmatpush1.msra.mxu0 %v10589_v44  ;;  %11025 = vmatprep.mubr.f32.mxu0 %v16111_v13  ;;  %v10586_v11 = vsel %vm10584_vm3, %v10579_v48, %v10581_v54  ;;  %v10585_v7 = vsel %vm10584_vm3, %v10581_v54, %v10583_v38 }
 0x80e   :  { %11032 = vmatprep.subr.mxu1 %v10586_v11  ;;  %11103 = vmatprep.subr.mxu0 %v10600_v63 }
 0x80f   :  { %11454 = vmatmul.mubr.msk.f32.vlgmr.msra.gmra.mrb[94].mxu0 %vm225_vm2, %v10602_v29  ;;  %11453 = vmatmul.mubr.msk.f32.vlgmr.msra.gmra.mrb[98].mxu1 %vm225_vm2, %v10602_v29 }
 0x810   :  { %11033 = vmatpush1.msra.mxu1 %v10587_v19  ;;  %11096 = vmatprep.mubr.f32.mxu1 %v16111_v13 }
 0x811   :  { %11104 = vmatpush1.msra.mxu0 %v10585_v7  ;;  %11167 = vmatprep.mubr.f32.mxu0 %v16111_v13 }
 0x813   :  { %11455 = vmatmul.mubr.msk.f32.vlgmr.msra.gmra.mrb[100].mxu1 %vm225_vm2, %v10602_v29  ;;  %11456 = vmatmul.mubr.msk.f32.vlgmr.msra.gmra.mrb[96].mxu0 %vm225_vm2, %v10602_v29  ;;  %vm6294_vm2 = vmand %vm15185_vm4, %vm15189_vm5 }
 0x81b   :  { %v15173_v55 = vpop.f32.mrb[48].mxu0 }
 0x81c   :  { %v15175_v42 = vpop.f32.mrb[49].mxu0 }
 0x81d   :  { %v15197_v12 = vpop.permute.xlu1 %5066 }
 0x81e   :  { %v5139_v10 = vadd.f32 %v14569_v27, %v15197_v12  ;;  %v5141_v33 = vadd.f32 %v14578_v39, %v15197_v12  ;;  %v4745_v39 = vand.u32 31, %v15212_v49  ;;  %v5423_v18 = vadd.f32 %v14608_v16, %v15197_v12 }
 0x820   :  { %vm15248_vm10 = vcmp.ge.s32.totalorder %v4745_v39, 1 }
 0x821   :  { %v16157_v62 = vsel %vm15248_vm10, 4294967295, %v16156_v62 }
 0x843   :  { %v15177_v21 = vpop.f32.mrb[50].mxu0 }
 0x844   :  { %v15179_v24 = vpop.f32.mrb[51].mxu0 }
 0x866   :  { %v5760_v3 = vpop.f32.mrb[46].mxu1 }
 0x867   :  { %v6342_v26 = vsel %vm6294_vm2, %v5760_v3, 0.0  ;;  %v5762_v22 = vpop.f32.mrb[47].mxu1 }
 0x868   :  { %v15218_v41 = vadd.f32 %v6342_v26, %v5139_v10  ;;  %v6343_v9 = vsel %vm15205_vm6, %v5762_v22, 0.0 }
 0x869   :  { %v15222_v17 = vadd.f32 %v6343_v9, %v5141_v33 }
 0x86a   :  { %v15235_v36 = vpop.f32.mrb[48].mxu1 }
 0x86b   :  { %v15237_v1 = vpop.f32.mrb[49].mxu1 }
 0x86e   :  { %v6044_v61 = vpop.f32.mrb[50].mxu1 }
 0x86f   :  { %12750 = shalt.err (!%p12747_p10)
}
 0x870   :  { %s12751_s4 = scalar_lea.hbm %s15780_s7, 512 }
 0x871   :  { %p12752_p11 = scmp.ne.s32.totalorder %s15780_s7, %s12751_s4  ;;  %p12755_p12 = scmp.lt.u32.totalorder %s12751_s4, %s15780_s7 }
 0x873   :  { %p12757_p13 = pnand %p12755_p12, %p12752_p11 }
 0x875   :  { %12760 = shalt.err (!%p12757_p13)
}
 0x876   :  { %11305 = dma.vmem_to_hbm [thread:$0]  %s11303_s26, 512, %s15780_s7, [#allocation15]   ;;  %v5425_v16 = vadd.f32 %v14615_v28, %v15197_v12  ;;  %v6350_v23 = vsel %vm6302_vm9, %v6044_v61, 0.0  ;;  %v6046_v15 = vpop.f32.mrb[51].mxu1 }
 0x877   :  { %v6366_v37 = vadd.f32 %v6350_v23, %v5423_v18  ;;  %v6351_v30 = vsel %vm15248_vm10, %v6046_v15, 0.0  ;;  %s12761_s12 = scalar_lea.vmem %s11293_s1, 128  ;;  %p12766_p1 = scmp.lt.s32.totalorder %s11293_s1, %s11293_s1 }
 0x878   :  { %p12762_p0 = scmp.ne.s32.totalorder %s11293_s1, %s12761_s12  ;;  %p12767_p2 = scmp.lt.s32.totalorder %s12761_s12, %s12761_s12 }
 0x87a   :  { %p12768_p3 = por %p12767_p2, %p12766_p1 }
 0x87c   :  { %p12769_p4 = pnand %p12768_p3, %p12762_p0 }
 0x87e   :  { %12772 = shalt.err (!%p12769_p4)
}
 0x87f   :  { %s12773_s29 = scalar_lea.hbm %s15779_s6, 128 }
 0x880   :  { %p12774_p5 = scmp.ne.s32.totalorder %s15779_s6, %s12773_s29  ;;  %p12777_p6 = scmp.lt.u32.totalorder %s12773_s29, %s15779_s6 }
 0x882   :  { %p12779_p7 = pnand %p12777_p6, %p12774_p5 }
 0x884   :  { %12782 = shalt.err (!%p12779_p7)
}
 0x885   :  { %11295 = dma.vmem_to_hbm [thread:$0]  %s11293_s1, 128, %s15779_s6, [#allocation4]   ;;  %v4724_v28 = vand.u32 31, %v15244_v59  ;;  %v6367_v5 = vadd.f32 %v6351_v30, %v5425_v16  ;;  %v4731_v14 = vand.u32 31, %v15253_v25  ;;  %v6257_v8 = vpop.f32.mrb[52].mxu0  ;;  %v15292_v60 = vpop.f32.mrb[52].mxu1 }
 0x886   :  { %v6259_v40 = vpop.f32.mrb[53].mxu0  ;;  %v16158_v29 = vmov 0  ;;  %v15301_v35 = vadd.s32 1792, %v16113_v34  ;;  %v15303_v46 = vpop.f32.mrb[53].mxu1  ;;  %v16160_v56 = vmov 0  ;;  %v15312_v4 = vadd.s32 1920, %v16113_v34 }
 0x887   :  { %vm15296_vm11 = vcmp.ge.s32.totalorder %v4724_v28, 1  ;;  %vm15307_vm12 = vcmp.ge.s32.totalorder %v4731_v14, 1  ;;  %v6494_v51 = vpop.f32.mrb[54].mxu1  ;;  %v6707_v19 = vpop.f32.mrb[40].mxu0  ;;  %v16165_v10 = vld [vmem:[#allocation59_spill] sm:$0xff]  ;;  %v16166_v26 = vld [vmem:[#allocation60_spill] sm:$0xff] }
 0x888   :  { %v16159_v29 = vsel %vm15296_vm11, 4294967295, %v16158_v29  ;;  %v16161_v56 = vsel %vm15307_vm12, 4294967295, %v16160_v56  ;;  %16162 = vst [vmem:[#allocation39_spill] sm:$0xff] %v15312_v4  ;;  %v6348_v48 = vsel %vm15296_vm11, %v15173_v55, 0.0  ;;  %v6349_v50 = vsel %vm15307_vm12, %v15175_v42, 0.0  ;;  %v6496_v54 = vpop.f32.mrb[55].mxu1 }
 0x889   :  { %v15875_v6 = vand.u32 31, %v15301_v35  ;;  %v15874_v38 = vand.u32 31, %v15312_v4  ;;  %v7028_v44 = vsel %vm15189_vm5, %v6494_v51, 0.0  ;;  %v15328_v11 = vadd.f32 %v6496_v54, %v15222_v17  ;;  %v6709_v32 = vpop.f32.mrb[41].mxu0  ;;  %v6778_v30 = vpop.f32.mrb[56].mxu1  ;;  %s12852_s6 = smov [#allocation16]  }
 0x88a   :  { %v15325_v63 = vadd.f32 %v7028_v44, %v15218_v41  ;;  %v12153_v7 = vadd.f32 %v6348_v48, %v15197_v12  ;;  %v12155_v55 = vadd.f32 %v6349_v50, %v15197_v12  ;;  %v16163_v42 = vmov 0  ;;  %v6780_v44 = vpop.f32.mrb[57].mxu1  ;;  %s11312_s3 = sshll.u32 %s12852_s6, 4  ;;  %s11313_s3 = int_to_ptr.vmem [resolvable:$true] %s11312_s3 }
 0x88b   :  { %vm15334_vm13 = vcmp.ge.s32.totalorder %v15875_v6, 1  ;;  %v4696_v3 = vand.u32 31, %v16165_v10  ;;  %v4703_v33 = vand.u32 31, %v16166_v26  ;;  %vm15344_vm0 = vcmp.ge.s32.totalorder %v15874_v38, 1  ;;  %v6991_v38 = vpop.f32.mrb[44].mxu0  ;;  %s12783_s19 = scalar_lea.vmem %s11313_s3, 2048  ;;  %p12788_p9 = scmp.lt.s32.totalorder %s11313_s3, %s11313_s3 }
 0x88c   :  { %v16164_v42 = vsel %vm15334_vm13, 4294967295, %v16163_v42  ;;  %v15338_v58 = vadd.f32 %v12153_v7, %v6707_v19  ;;  %v16167_v22 = vmov 0  ;;  %v15348_v41 = vadd.f32 %v12155_v55, %v6709_v32  ;;  %p12784_p8 = scmp.ne.s32.totalorder %s11313_s3, %s12783_s19  ;;  %p12789_p10 = scmp.lt.s32.totalorder %s12783_s19, %s12783_s19 }
 0x88d   :  { %v16168_v22 = vsel %vm15344_vm0, 4294967295, %v16167_v22  ;;  %v4672_v9 = vadd.s32 1280, %v16113_v34  ;;  %v15352_v17 = vadd.s32 1408, %v16113_v34  ;;  %v4666_v18 = vadd.s32 512, %v16113_v34 }
 0x88e   :  { %v4667_v61 = vadd.s32 640, %v16113_v34  ;;  %v6356_v16 = vsel %vm15334_vm13, %v6257_v8, 0.0  ;;  %v15359_v23 = vadd.s32 1536, %v16113_v34  ;;  %v6357_v15 = vsel %vm15344_vm0, %v6259_v40, 0.0  ;;  %p12790_p11 = por %p12789_p10, %p12788_p9 }
 0x88f   :  { %vm15363_vm1 = vcmp.ge.s32.totalorder %v4696_v3, 1  ;;  %v16169_v48 = vmov 0  ;;  %vm15367_vm14 = vcmp.ge.s32.totalorder %v4703_v33, 1  ;;  %v16171_v50 = vmov 0 }
 0x890   :  { %v16170_v48 = vsel %vm15363_vm1, 4294967295, %v16169_v48  ;;  %v16172_v50 = vsel %vm15367_vm14, 4294967295, %v16171_v50  ;;  %v15372_v51 = vadd.s32 1664, %v16113_v34  ;;  %v7036_v8 = vsel %vm15230_vm8, %v6778_v30, 0.0  ;;  %p12791_p12 = pnand %p12790_p11, %p12784_p8 }
 0x891   :  { %v4752_v54 = vand.u32 31, %v4672_v9  ;;  %v12181_v7 = vadd.f32 %v6356_v16, %v15197_v12  ;;  %v15377_v40 = vadd.f32 %v7036_v8, %v6366_v37  ;;  %v15379_v19 = vadd.f32 %v6780_v44, %v6367_v5  ;;  %v6993_v16 = vpop.f32.mrb[45].mxu0 }
 0x892   :  { %v4759_v55 = vand.u32 31, %v15352_v17  ;;  %v4710_v32 = vand.u32 31, %v4666_v18  ;;  %v4717_v10 = vand.u32 31, %v4667_v61  ;;  %v12183_v26 = vadd.f32 %v6357_v15, %v15197_v12  ;;  %v7251_v61 = vpop.f32.mrb[54].mxu0 }
 0x893   :  { %v6344_v6 = vsel %vm15363_vm1, %v15014_v0, 0.0  ;;  %v15891_v30 = vand.u32 31, %v15359_v23  ;;  %v15387_v9 = vadd.f32 %v12181_v7, %v6991_v38  ;;  %vm15391_vm15 = vcmp.le.s32.totalorder %v4682_v47, 30  ;;  %v7253_v44 = vpop.f32.mrb[55].mxu0 }
 0x894   :  { %v16173_v37 = vmov 0  ;;  %v6345_v5 = vsel %vm15367_vm14, %v15024_v20, 0.0  ;;  %v15890_v17 = vand.u32 31, %v15372_v51  ;;  %v15399_v18 = vadd.f32 %v12183_v26, %v6993_v16  ;;  %vm7698_vm7 = vmand %vm15391_vm15, %vm15189_vm5  ;;  %v7180_v16 = vpop.f32.mrb[58].mxu1 }
 0x895   :  { %v16174_v37 = vsel %vm15391_vm15, 4294967295, %v16173_v37  ;;  %vm15401_vm3 = vcmp.le.s32.totalorder %v4696_v3, 30  ;;  %v16175_v0 = vmov 0  ;;  %vm15405_vm2 = vcmp.ge.s32.totalorder %v4752_v54, 1 }
 0x896   :  { %v16176_v0 = vsel %vm15401_vm3, 4294967295, %v16175_v0  ;;  %v16177_v38 = vmov 0  ;;  %vm15409_vm9 = vcmp.le.s32.totalorder %v4703_v33, 30  ;;  %v16179_v34 = vmov 0 }
 0x897   :  { %v16178_v38 = vsel %vm15405_vm2, 4294967295, %v16177_v38  ;;  %v16180_v34 = vsel %vm15409_vm9, 4294967295, %v16179_v34  ;;  %vm15413_vm0 = vcmp.ge.s32.totalorder %v4759_v55, 1  ;;  %v16181_v47 = vmov 0 }
 0x898   :  { %v16182_v47 = vsel %vm15413_vm0, 4294967295, %v16181_v47  ;;  %vm15417_vm13 = vcmp.ge.s32.totalorder %v4710_v32, 1  ;;  %v16183_v20 = vmov 0  ;;  %vm15421_vm10 = vcmp.ge.s32.totalorder %v4717_v10, 1 }
 0x899   :  { %v16184_v20 = vsel %vm15417_vm13, 4294967295, %v16183_v20  ;;  %v16185_v3 = vmov 0  ;;  %v12129_v15 = vadd.f32 %v6344_v6, %v15197_v12  ;;  %vm15432_vm12 = vcmp.ge.s32.totalorder %v15891_v30, 1  ;;  %v7182_v30 = vpop.f32.mrb[59].mxu1 }
 0x89a   :  { %v16186_v3 = vsel %vm15421_vm10, 4294967295, %v16185_v3  ;;  %v16187_v33 = vmov 0  ;;  %v7748_v8 = vsel %vm15401_vm3, %v7251_v61, 0.0  ;;  %v12135_v7 = vadd.f32 %v6345_v5, %v15197_v12 }
 0x89b   :  { %v16188_v33 = vsel %vm15432_vm12, 4294967295, %v16187_v33  ;;  %vm15441_vm11 = vcmp.le.s32.totalorder %v4689_v43, 30  ;;  %v16189_v6 = vmov 0  ;;  %vm15447_vm5 = vcmp.ge.s32.totalorder %v15890_v17, 1 }
 0x89c   :  { %v16190_v6 = vsel %vm15441_vm11, 4294967295, %v16189_v6  ;;  %v16191_v2 = vmov 0  ;;  %v15451_v26 = vadd.f32 %v12129_v15, %v7748_v8  ;;  %v7749_v61 = vsel %vm15409_vm9, %v7253_v44, 0.0  ;;  %v7393_v44 = vpop.f32.mrb[56].mxu0 }
 0x89d   :  { %v16192_v2 = vsel %vm15447_vm5, 4294967295, %v16191_v2  ;;  %vm15457_vm15 = vcmp.le.s32.totalorder %v4724_v28, 30  ;;  %v16193_v45 = vmov 0  ;;  %v6346_v43 = vsel %vm15417_vm13, %v15235_v36, 0.0 }
 0x89e   :  { %v16194_v45 = vsel %vm15457_vm15, 4294967295, %v16193_v45  ;;  %v7746_v5 = vsel %vm7698_vm7, %v7180_v16, 0.0  ;;  %v15464_v17 = vadd.f32 %v12135_v7, %v7749_v61  ;;  %vm15466_vm3 = vcmp.le.s32.totalorder %v4710_v32, 30  ;;  %v7395_v16 = vpop.f32.mrb[57].mxu0 }
 0x89f   :  { %v6347_v59 = vsel %vm15421_vm10, %v15237_v1, 0.0  ;;  %v15474_v28 = vadd.f32 %v7746_v5, %v15325_v63  ;;  %v7747_v8 = vsel %vm15441_vm11, %v7182_v30, 0.0  ;;  %vm15480_vm7 = vcmp.le.s32.totalorder %v4731_v14, 30  ;;  %v7322_v30 = vpop.f32.mrb[60].mxu1 }
 0x8a0   :  { %v16197_v36 = vmov 0  ;;  %v15485_v32 = vadd.f32 %v7747_v8, %v15328_v11  ;;  %vm15487_vm9 = vcmp.le.s32.totalorder %v4717_v10, 30  ;;  %v16199_v7 = vmov 0  ;;  %v7324_v5 = vpop.f32.mrb[61].mxu1 }
 0x8a1   :  { %v16198_v36 = vsel %vm15480_vm7, 4294967295, %v16197_v36  ;;  %v16200_v7 = vsel %vm15487_vm9, 4294967295, %v16199_v7  ;;  %vm15491_vm10 = vcmp.le.s32.totalorder %v4752_v54, 30  ;;  %vm15497_vm11 = vcmp.le.s32.totalorder %v4738_v57, 30 }
 0x8a2   :  { %v16203_v63 = vmov 0  ;;  %v6352_v14 = vsel %vm15405_vm2, %v15177_v21, 0.0  ;;  %v6353_v11 = vsel %vm15413_vm0, %v15179_v24, 0.0  ;;  %v12141_v10 = vadd.f32 %v6346_v43, %v15197_v12 }
 0x8a3   :  { %v16204_v63 = vsel %vm15497_vm11, 4294967295, %v16203_v63  ;;  %v7752_v54 = vsel %vm15457_vm15, %v7393_v44, 0.0  ;;  %v12147_v52 = vadd.f32 %v6347_v59, %v15197_v12  ;;  %v7750_v61 = vsel %vm15466_vm3, %v7322_v30, 0.0  ;;  %vm7706_vm15 = vmand %vm15497_vm11, %vm15230_vm8 }
 0x8a4   :  { %v7768_v57 = vadd.f32 %v15338_v58, %v7752_v54  ;;  %v7753_v21 = vsel %vm15480_vm7, %v7395_v16, 0.0  ;;  %v12142_v8 = vadd.f32 %v12141_v10, %v7750_v61  ;;  %v7751_v43 = vsel %vm15487_vm9, %v7324_v5, 0.0  ;;  %v7535_v54 = vpop.f32.mrb[58].mxu0 }
 0x8a5   :  { %v7769_v24 = vadd.f32 %v15348_v41, %v7753_v21  ;;  %vm15523_vm0 = vcmp.le.s32.totalorder %v4759_v55, 30  ;;  %v16205_v58 = vmov 0  ;;  %v12157_v59 = vadd.f32 %v6352_v14, %v15197_v12  ;;  %v7464_v14 = vpop.f32.mrb[62].mxu1  ;;  %v7537_v16 = vpop.f32.mrb[59].mxu0 }
 0x8a6   :  { %v16206_v58 = vsel %vm15523_vm0, 4294967295, %v16205_v58  ;;  %v12148_v44 = vadd.f32 %v12147_v52, %v7751_v43  ;;  %vm15530_vm7 = vcmp.le.s32.totalorder %v4745_v39, 30  ;;  %v16207_v41 = vmov 0 }
 0x8a7   :  { %v16208_v41 = vsel %vm15530_vm7, 4294967295, %v16207_v41  ;;  %v16209_v10 = vand.u32 31, %v15301_v35  ;;  %v16210_v27 = vmov 0  ;;  %v12163_v55 = vadd.f32 %v6353_v11, %v15197_v12 }
 0x8a8   :  { %v7756_v30 = vsel %vm15491_vm10, %v7535_v54, 0.0  ;;  %v16212_v52 = vand.u32 31, %v15359_v23  ;;  %v16213_v49 = vmov 0  ;;  %v16215_v39 = vand.u32 31, %v15312_v4  ;;  %v7466_v23 = vpop.f32.mrb[63].mxu1  ;;  %v7677_v4 = vpop.f32.mrb[60].mxu0 }
 0x8a9   :  { %vm15536_vm9 = vcmp.le.s32.totalorder %v16209_v10, 30  ;;  %v16216_v35 = vmov 0  ;;  %v6354_v11 = vsel %vm15432_vm12, %v15292_v60, 0.0  ;;  %v12158_v61 = vadd.f32 %v12157_v59, %v7756_v30 }
 0x8aa   :  { %v16211_v27 = vsel %vm15536_vm9, 4294967295, %v16210_v27  ;;  %vm15545_vm8 = vcmp.le.s32.totalorder %v16212_v52, 30  ;;  %vm15551_vm11 = vcmp.le.s32.totalorder %v16215_v39, 30  ;;  %v7754_v21 = vsel %vm7706_vm15, %v7464_v14, 0.0  ;;  %v7606_v14 = vpop.f32.mrb[64].mxu1 }
 0x8ab   :  { %v16214_v49 = vsel %vm15545_vm8, 4294967295, %v16213_v49  ;;  %v16217_v35 = vsel %vm15551_vm11, 4294967295, %v16216_v35  ;;  %v7757_v5 = vsel %vm15523_vm0, %v7537_v16, 0.0  ;;  %v6355_v43 = vsel %vm15447_vm5, %v15303_v46, 0.0 }
 0x8ac   :  { %v7770_v54 = vadd.f32 %v7754_v21, %v15377_v40  ;;  %v12164_v10 = vadd.f32 %v12163_v55, %v7757_v5  ;;  %v7755_v52 = vsel %vm15530_vm7, %v7466_v23, 0.0  ;;  %v16218_v60 = vand.u32 31, %v15372_v51  ;;  %v7679_v40 = vpop.f32.mrb[61].mxu0  ;;  %v7608_v21 = vpop.f32.mrb[65].mxu1 }
 0x8ad   :  { %v7771_v39 = vadd.f32 %v7755_v52, %v15379_v19  ;;  %v16219_v59 = vmov 0  ;;  %v12169_v30 = vadd.f32 %v6354_v11, %v15197_v12  ;;  %v7760_v46 = vsel %vm15536_vm9, %v7677_v4, 0.0  ;;  %v7968_v52 = vpop.f32.mrb[62].mxu0 }
 0x8ae   :  { %vm15569_vm15 = vcmp.le.s32.totalorder %v16218_v60, 30  ;;  %v12175_v55 = vadd.f32 %v6355_v43, %v15197_v12  ;;  %v7776_v16 = vadd.f32 %v15387_v9, %v7760_v46  ;;  %v7758_v19 = vsel %vm15545_vm8, %v7606_v14, 0.0  ;;  %v7897_v43 = vpop.f32.mrb[66].mxu1  ;;  %v7970_v9 = vpop.f32.mrb[63].mxu0 }
 0x8af   :  { %v16220_v59 = vsel %vm15569_vm15, 4294967295, %v16219_v59  ;;  %v7761_v51 = vsel %vm15551_vm11, %v7679_v40, 0.0  ;;  %v12170_v5 = vadd.f32 %v12169_v30, %v7758_v19  ;;  %v7759_v11 = vsel %vm15569_vm15, %v7608_v21, 0.0  ;;  %v7899_v14 = vpop.f32.mrb[67].mxu1 }
 0x8b0   :  { %v7777_v23 = vadd.f32 %v15399_v18, %v7761_v51  ;;  %v12176_v4 = vadd.f32 %v12175_v55, %v7759_v11  ;;  %v8433_v12 = vsel %vm15363_vm1, %v7968_v52, 0.0  ;;  %v8431_v46 = vsel %vm15185_vm4, %v7897_v43, 0.0  ;;  %v8110_v51 = vpop.f32.mrb[64].mxu0  ;;  %v8039_v21 = vpop.f32.mrb[68].mxu1 }
 0x8b1   :  { %v12131_v60 = vadd.f32 %v15451_v26, %v8433_v12  ;;  %v8434_v30 = vsel %vm15367_vm14, %v7970_v9, 0.0  ;;  %v8447_v18 = vadd.f32 %v8431_v46, %v15474_v28  ;;  %v8432_v55 = vsel %vm15205_vm6, %v7899_v14, 0.0  ;;  %v8112_v11 = vpop.f32.mrb[65].mxu0  ;;  %v8041_v43 = vpop.f32.mrb[69].mxu1 }
 0x8b2   :  { %v12137_v40 = vadd.f32 %v15464_v17, %v8434_v30  ;;  %v8448_v19 = vadd.f32 %v8432_v55, %v15485_v32  ;;  %vm16221_vm1 = vnez %v16159_v29  ;;  %v8435_v12 = vsel %vm15417_vm13, %v8039_v21, 0.0  ;;  %v8252_v30 = vpop.f32.mrb[66].mxu0  ;;  %v8181_v55 = vpop.f32.mrb[70].mxu1 }
 0x8b3   :  { %v8437_v26 = vsel %vm16221_vm1, %v8110_v51, 0.0  ;;  %vm16222_vm14 = vnez %v16161_v56  ;;  %v12143_v17 = vadd.f32 %v12142_v8, %v8435_v12  ;;  %vm16223_vm6 = vnez %v16186_v3  ;;  %v8254_v51 = vpop.f32.mrb[67].mxu0 }
 0x8b4   :  { %v8453_v52 = vadd.f32 %v8437_v26, %v7768_v57  ;;  %v8438_v28 = vsel %vm16222_vm14, %v8112_v11, 0.0  ;;  %v8436_v46 = vsel %vm16223_vm6, %v8041_v43, 0.0  ;;  %v8441_v14 = vsel %vm15405_vm2, %v8252_v30, 0.0  ;;  %v8183_v11 = vpop.f32.mrb[71].mxu1 }
 0x8b5   :  { %v8454_v9 = vadd.f32 %v8438_v28, %v7769_v24  ;;  %v12149_v32 = vadd.f32 %v12148_v44, %v8436_v46  ;;  %v12159_v57 = vadd.f32 %v12158_v61, %v8441_v14  ;;  %vm16224_vm1 = vnez %v16153_v53  ;;  %v8394_v28 = vpop.f32.mrb[68].mxu0  ;;  %v8323_v46 = vpop.f32.mrb[72].mxu1 }
 0x8b6   :  { %v8439_v26 = vsel %vm16224_vm1, %v8181_v55, 0.0  ;;  %vm16225_vm13 = vnez %v16182_v47  ;;  %vm16226_vm14 = vnez %v16157_v62  ;;  %vm16227_vm6 = vnez %v16164_v42  ;;  %v8396_v30 = vpop.f32.mrb[69].mxu0 }
 0x8b7   :  { %v8442_v21 = vsel %vm16225_vm13, %v8254_v51, 0.0  ;;  %v8455_v8 = vadd.f32 %v8439_v26, %v7770_v54  ;;  %v8440_v12 = vsel %vm16226_vm14, %v8183_v11, 0.0  ;;  %v8445_v43 = vsel %vm16227_vm6, %v8394_v28, 0.0  ;;  %v8325_v51 = vpop.f32.mrb[73].mxu1 }
 0x8b8   :  { %v12165_v24 = vadd.f32 %v12164_v10, %v8442_v21  ;;  %v8456_v44 = vadd.f32 %v8440_v12, %v7771_v39  ;;  %v8461_v61 = vadd.f32 %v8445_v43, %v7776_v16  ;;  %v8443_v14 = vsel %vm15432_vm12, %v8323_v46, 0.0  ;;  %v8653_v21 = vpop.f32.mrb[70].mxu0  ;;  %v8582_v12 = vpop.f32.mrb[74].mxu1 }
 0x8b9   :  { %vm16228_vm2 = vnez %v16168_v22  ;;  %v12171_v54 = vadd.f32 %v12170_v5, %v8443_v14  ;;  %v8444_v26 = vsel %vm15447_vm5, %v8325_v51, 0.0  ;;  %vm16229_vm13 = vnez %v16176_v0  ;;  %v8655_v28 = vpop.f32.mrb[71].mxu0 }
 0x8ba   :  { %v8446_v55 = vsel %vm16228_vm2, %v8396_v30, 0.0  ;;  %v12177_v39 = vadd.f32 %v12176_v4, %v8444_v26  ;;  %v9118_v11 = vsel %vm16229_vm13, %v8653_v21, 0.0  ;;  %vm16230_vm6 = vnez %v16174_v37  ;;  %v8584_v30 = vpop.f32.mrb[75].mxu1 }
 0x8bb   :  { %v8462_v10 = vadd.f32 %v8446_v55, %v7777_v23  ;;  %v12132_v16 = vadd.f32 %v12131_v60, %v9118_v11  ;;  %v9116_v43 = vsel %vm16230_vm6, %v8582_v12, 0.0  ;;  %vm16231_vm12 = vnez %v16180_v34  ;;  %v8795_v55 = vpop.f32.mrb[72].mxu0  ;;  %v8724_v26 = vpop.f32.mrb[76].mxu1 }
 0x8bc   :  { %v9119_v46 = vsel %vm16231_vm12, %v8655_v28, 0.0  ;;  %v9132_v5 = vadd.f32 %v9116_v43, %v8447_v18  ;;  %vm16232_vm2 = vnez %v16190_v6  ;;  %vm16233_vm5 = vnez %v16194_v45  ;;  %v8797_v21 = vpop.f32.mrb[73].mxu0  ;;  %v8726_v28 = vpop.f32.mrb[77].mxu1 }
 0x8bd   :  { %v12138_v23 = vadd.f32 %v12137_v40, %v9119_v46  ;;  %v9117_v14 = vsel %vm16232_vm2, %v8584_v30, 0.0  ;;  %v9122_v51 = vsel %vm16233_vm5, %v8795_v55, 0.0  ;;  %v9120_v11 = vsel %vm15466_vm3, %v8724_v26, 0.0  ;;  %v8937_v46 = vpop.f32.mrb[74].mxu0 }
 0x8be   :  { %v9133_v4 = vadd.f32 %v9117_v14, %v8448_v19  ;;  %v9138_v60 = vadd.f32 %v9122_v51, %v8453_v52  ;;  %vm16234_vm13 = vnez %v16198_v36  ;;  %v12144_v18 = vadd.f32 %v12143_v17, %v9120_v11  ;;  %v8866_v14 = vpop.f32.mrb[78].mxu1  ;;  %v8939_v55 = vpop.f32.mrb[75].mxu0 }
 0x8bf   :  { %v9123_v12 = vsel %vm16234_vm13, %v8797_v21, 0.0  ;;  %vm16235_vm12 = vnez %v16200_v7  ;;  %v9126_v30 = vsel %vm15491_vm10, %v8937_v46, 0.0  ;;  %vm16236_vm5 = vnez %v16204_v63  ;;  %v8868_v21 = vpop.f32.mrb[79].mxu1 }
 0x8c0   :  { %v9139_v40 = vadd.f32 %v9123_v12, %v8454_v9  ;;  %v9121_v43 = vsel %vm16235_vm12, %v8726_v28, 0.0  ;;  %v12160_v52 = vadd.f32 %v12159_v57, %v9126_v30  ;;  %v9124_v51 = vsel %vm16236_vm5, %v8866_v14, 0.0  ;;  %v9079_v12 = vpop.f32.mrb[76].mxu0  ;;  %v9008_v28 = vpop.f32.mrb[80].mxu1 }
 0x8c1   :  { %v12150_v19 = vadd.f32 %v12149_v32, %v9121_v43  ;;  %v9127_v26 = vsel %vm15523_vm0, %v8939_v55, 0.0  ;;  %v9140_v17 = vadd.f32 %v9124_v51, %v8455_v8  ;;  %v9125_v11 = vsel %vm15530_vm7, %v8868_v21, 0.0  ;;  %v9081_v46 = vpop.f32.mrb[77].mxu0  ;;  %v9010_v55 = vpop.f32.mrb[81].mxu1 }
 0x8c2   :  { %v12166_v9 = vadd.f32 %v12165_v24, %v9127_v26  ;;  %v9141_v32 = vadd.f32 %v9125_v11, %v8456_v44  ;;  %v9130_v43 = vsel %vm15536_vm9, %v9079_v12, 0.0  ;;  %v4923_v57 = vand.u32 1023, %v15253_v25  ;;  %v9268_v21 = vpop.f32.mrb[82].mxu1  ;;  %v9339_v11 = vpop.f32.mrb[78].mxu0 }
 0x8c3   :  { %v9128_v30 = vsel %vm15545_vm8, %v9008_v28, 0.0  ;;  %v9146_v14 = vadd.f32 %v9130_v43, %v8461_v61  ;;  %v9131_v8 = vsel %vm15551_vm11, %v9081_v46, 0.0  ;;  %v9129_v44 = vsel %vm15569_vm15, %v9010_v55, 0.0  ;;  %v9270_v28 = vpop.f32.mrb[83].mxu1  ;;  %v9341_v43 = vpop.f32.mrb[79].mxu0  ;;  %v16243_v55 = vld [vmem:[#allocation39_spill] sm:$0xff] }
 0x8c4   :  { %v12172_v24 = vadd.f32 %v12171_v54, %v9128_v30  ;;  %v9147_v51 = vadd.f32 %v9131_v8, %v8462_v10  ;;  %v12178_v26 = vadd.f32 %v12177_v39, %v9129_v44  ;;  %vm15654_vm9 = vcmp.lt.s32.totalorder %v4923_v57, 992  ;;  %v9410_v13 = vpop.f32.mrb[84].mxu1 }
 0x8c5   :  { %v9834_v25 = vsel %vm15185_vm4, %v9268_v21, 0.0  ;;  %vm16239_vm8 = vnez %v16170_v48  ;;  %vm16240_vm15 = vnez %v16151_v31  ;;  %vm16241_vm11 = vnez %v16172_v50  ;;  %v9481_v48 = vpop.f32.mrb[80].mxu0 }
 0x8c6   :  { %v9836_v61 = vsel %vm16239_vm8, %v9339_v11, 0.0  ;;  %v9850_v54 = vadd.f32 %v9834_v25, %v9132_v5  ;;  %v9835_v10 = vsel %vm16240_vm15, %v9270_v28, 0.0  ;;  %v9837_v39 = vsel %vm16241_vm11, %v9341_v43, 0.0  ;;  %v9412_v5 = vpop.f32.mrb[85].mxu1  ;;  %v9483_v50 = vpop.f32.mrb[81].mxu0 }
 0x8c7   :  { %v12133_v46 = vadd.f32 %v12132_v16, %v9836_v61  ;;  %v9851_v57 = vadd.f32 %v9835_v10, %v9133_v4  ;;  %v12139_v30 = vadd.f32 %v12138_v23, %v9837_v39  ;;  %vm16242_vm0 = vnez %v16161_v56  ;;  %v9552_v25 = vpop.f32.mrb[86].mxu1  ;;  %v9623_v61 = vpop.f32.mrb[82].mxu0 }
 0x8c8   :  { %vm9793_vm4 = vmand %vm16242_vm0, %vm15654_vm9  ;;  %v4979_v8 = vand.u32 1023, %v16243_v55  ;;  %vm16244_vm8 = vnez %v16184_v20  ;;  %vm16245_vm7 = vnez %v16159_v29  ;;  %vm16246_vm11 = vnez %v16186_v3 }
 0x8c9   :  { %v9838_v16 = vsel %vm16244_vm8, %v9410_v13, 0.0  ;;  %v9840_v31 = vsel %vm16245_vm7, %v9481_v48, 0.0  ;;  %v9839_v23 = vsel %vm16246_vm11, %v9412_v5, 0.0  ;;  %v9841_v21 = vsel %vm9793_vm4, %v9483_v50, 0.0 }
 0x8ca   :  { %v12145_v44 = vadd.f32 %v12144_v18, %v9838_v16  ;;  %v9856_v4 = vadd.f32 %v9840_v31, %v9138_v60  ;;  %v12151_v56 = vadd.f32 %v12150_v19, %v9839_v23  ;;  %v9857_v11 = vadd.f32 %v9841_v21, %v9139_v40  ;;  %v9554_v18 = vpop.f32.mrb[87].mxu1  ;;  %v9625_v60 = vpop.f32.mrb[83].mxu0 }
 0x8cb   :  { %vm15677_vm0 = vcmp.lt.s32.totalorder %v4979_v8, 992  ;;  %v9842_v29 = vsel %vm16224_vm1, %v9552_v25, 0.0  ;;  %vm16249_vm7 = vnez %v16178_v38  ;;  %v9843_v19 = vsel %vm16226_vm14, %v9554_v18, 0.0  ;;  %v9694_v53 = vpop.f32.mrb[88].mxu1  ;;  %v9765_v38 = vpop.f32.mrb[84].mxu0 }
 0x8cc   :  { %v9844_v20 = vsel %vm16249_vm7, %v9623_v61, 0.0  ;;  %v9858_v43 = vadd.f32 %v9842_v29, %v9140_v17  ;;  %vm16250_vm15 = vnez %v16182_v47  ;;  %v9859_v10 = vadd.f32 %v9843_v19, %v9141_v32  ;;  %v9696_v62 = vpop.f32.mrb[89].mxu1  ;;  %v9767_v17 = vpop.f32.mrb[85].mxu0 }
 0x8cd   :  { %v12161_v3 = vadd.f32 %v12160_v52, %v9844_v20  ;;  %v9845_v40 = vsel %vm16250_vm15, %v9625_v60, 0.0  ;;  %vm16251_vm4 = vnez %v16168_v22  ;;  %vm16252_vm8 = vnez %v16188_v33  ;;  %v9986_v22 = vpop.f32.mrb[90].mxu1  ;;  %v10057_v16 = vpop.f32.mrb[38].mxu0 }
 0x8ce   :  { %v12167_v39 = vadd.f32 %v12166_v9, %v9845_v40  ;;  %vm9801_vm1 = vmand %vm16251_vm4, %vm15677_vm0  ;;  %v9846_v13 = vsel %vm16252_vm8, %v9694_v53, 0.0  ;;  %vm16253_vm11 = vnez %v16164_v42  ;;  %vm16254_vm14 = vnez %v16192_v2  ;;  %v9988_v50 = vpop.f32.mrb[91].mxu1  ;;  %v10059_v33 = vpop.f32.mrb[39].mxu0 }
 0x8cf   :  { %v9848_v52 = vsel %vm16253_vm11, %v9765_v38, 0.0  ;;  %v12173_v48 = vadd.f32 %v12172_v24, %v9846_v13  ;;  %v9847_v9 = vsel %vm16254_vm14, %v9696_v62, 0.0  ;;  %v9849_v32 = vsel %vm9801_vm1, %v9767_v17, 0.0  ;;  %v10128_v42 = vpop.f32.mrb[40].mxu1  ;;  %v10199_v25 = vpop.f32.mrb[86].mxu0 }
 0x8d0   :  { %v9864_v47 = vadd.f32 %v9848_v52, %v9146_v14  ;;  %v12179_v55 = vadd.f32 %v12178_v26, %v9847_v9  ;;  %v9865_v8 = vadd.f32 %v9849_v32, %v9147_v51  ;;  %v10536_v31 = vadd.f32 %v9986_v22, %v9850_v54  ;;  %v10130_v24 = vpop.f32.mrb[41].mxu1  ;;  %v10201_v14 = vpop.f32.mrb[87].mxu0 }
 0x8d1   :  { %v12134_v5 = vadd.f32 %v12133_v46, %v10057_v16  ;;  %v10537_v23 = vadd.f32 %v9988_v50, %v9851_v57  ;;  %v12140_v21 = vadd.f32 %v12139_v30, %v10059_v33  ;;  %v12146_v61 = vadd.f32 %v12145_v44, %v10128_v42 }
 0x8d2   :  { %v10542_v29 = vadd.f32 %v10199_v25, %v9856_v4  ;;  %v12152_v20 = vadd.f32 %v12151_v56, %v10130_v24  ;;  %v10527_v2 = vsel %vm15654_vm9, %v10201_v14, 0.0  ;;  %v10270_v51 = vpop.f32.mrb[92].mxu1  ;;  %v10341_v18 = vpop.f32.mrb[42].mxu0  ;;  %vm16255_vm7 = vnez %v16176_v0 }
 0x8d3   :  { %v10543_v26 = vadd.f32 %v10527_v2, %v9857_v11  ;;  %v10544_v60 = vadd.f32 %v10270_v51, %v9858_v43  ;;  %v12162_v54 = vadd.f32 %v12161_v3, %v10341_v18  ;;  %v10272_v46 = vpop.f32.mrb[93].mxu1  ;;  %v10343_v19 = vpop.f32.mrb[43].mxu0  ;;  %vm16256_vm15 = vnez %v16180_v34 }
 0x8d4   :  { %v10545_v40 = vadd.f32 %v10272_v46, %v9859_v10  ;;  %v12168_v57 = vadd.f32 %v12167_v39, %v10343_v19  ;;  %vm16263_vm4 = vnez %v16220_v59 }
 0x8d6   :  { %v10412_v30 = vpop.f32.mrb[44].mxu1  ;;  %v10483_v53 = vpop.f32.mrb[88].mxu0 }
 0x8d7   :  { %v15701_v38 = vadd.f32 %v12173_v48, %v10412_v30  ;;  %v15703_v44 = vadd.f32 %v10483_v53, %v9864_v47  ;;  %v10414_v4 = vpop.f32.mrb[45].mxu1  ;;  %v10485_v56 = vpop.f32.mrb[89].mxu0 }
 0x8d8   :  { %v15705_v13 = vadd.f32 %v12179_v55, %v10414_v4  ;;  %v10535_v11 = vsel %vm15677_vm0, %v10485_v56, 0.0 }
 0x8d9   :  { %v15709_v52 = vadd.f32 %v10535_v11, %v9865_v8 }
 0x8da   :  { %v10672_v43 = vpop.f32.mrb[94].mxu1  ;;  %v10743_v3 = vpop.f32.mrb[90].mxu0 }
 0x8db   :  { %v11222_v10 = vsel %vm16230_vm6, %v10672_v43, 0.0  ;;  %v11224_v39 = vsel %vm16255_vm7, %v10743_v3, 0.0  ;;  %v10674_v62 = vpop.f32.mrb[95].mxu1  ;;  %v10745_v17 = vpop.f32.mrb[91].mxu0  ;;  %vm11181_vm6 = vmand %vm16234_vm13, %vm15654_vm9  ;;  %vm16259_vm13 = vnez %v16206_v58  ;;  %vm16261_vm9 = vnez %v16214_v49 }
 0x8dc   :  { %v11238_v48 = vadd.f32 %v11222_v10, %v10536_v31  ;;  %v11240_v47 = vadd.f32 %v12134_v5, %v11224_v39  ;;  %v11223_v9 = vsel %vm16232_vm2, %v10674_v62, 0.0  ;;  %v11225_v32 = vsel %vm16256_vm15, %v10745_v17, 0.0 }
 0x8dd   :  { %v11239_v55 = vadd.f32 %v11223_v9, %v10537_v23  ;;  %v11241_v8 = vadd.f32 %v12140_v21, %v11225_v32  ;;  %vm16257_vm2 = vnez %v16194_v45 }
 0x8de   :  { %v11254_v37 = vmax.f32 %v11238_v48, 0.0  ;;  %v11256_v0 = vmax.f32 %v11240_v47, 0.0  ;;  %v10814_v22 = vpop.f32.mrb[96].mxu1  ;;  %v10885_v16 = vpop.f32.mrb[92].mxu0 }
 0x8df   :  { %v11255_v50 = vmax.f32 %v11239_v55, 0.0  ;;  %v11257_v31 = vmax.f32 %v11241_v8, 0.0  ;;  %v11226_v6 = vsel %vm15466_vm3, %v10814_v22, 0.0  ;;  %v11228_v34 = vsel %vm16257_vm2, %v10885_v16, 0.0  ;;  %v10816_v5 = vpop.f32.mrb[97].mxu1  ;;  %v10887_v33 = vpop.f32.mrb[93].mxu0 }
 0x8e0   :  { %11270 = vst [vmem:[#allocation16] sm:$0xff] %v11254_v37  ;;  %11272 = vst [vmem:[#allocation16 + $0x10] sm:$0xff] %v11256_v0  ;;  %v11242_v23 = vadd.f32 %v12146_v61, %v11226_v6  ;;  %v11244_v21 = vadd.f32 %v11228_v34, %v10542_v29  ;;  %v11227_v42 = vsel %vm16235_vm12, %v10816_v5, 0.0  ;;  %v11229_v25 = vsel %vm11181_vm6, %v10887_v33, 0.0 }
 0x8e1   :  { %11271 = vst [vmem:[#allocation16 + $0x8] sm:$0xff] %v11255_v50  ;;  %11273 = vst [vmem:[#allocation16 + $0x18] sm:$0xff] %v11257_v31  ;;  %v11243_v15 = vadd.f32 %v12152_v20, %v11227_v42  ;;  %v11245_v45 = vadd.f32 %v11229_v25, %v10543_v26  ;;  %vm16258_vm12 = vnez %v16208_v41 }
 0x8e2   :  { %v11258_v24 = vmax.f32 %v11242_v23, 0.0  ;;  %v11260_v14 = vmax.f32 %v11244_v21, 0.0  ;;  %v10956_v2 = vpop.f32.mrb[98].mxu1  ;;  %v11027_v51 = vpop.f32.mrb[94].mxu0 }
 0x8e3   :  { %v11259_v18 = vmax.f32 %v11243_v15, 0.0  ;;  %v11261_v61 = vmax.f32 %v11245_v45, 0.0  ;;  %v11230_v7 = vsel %vm16236_vm5, %v10956_v2, 0.0  ;;  %v11232_v36 = vsel %vm15491_vm10, %v11027_v51, 0.0  ;;  %v10958_v29 = vpop.f32.mrb[99].mxu1  ;;  %v11029_v12 = vpop.f32.mrb[95].mxu0 }
 0x8e4   :  { %11274 = vst [vmem:[#allocation16 + $0x20] sm:$0xff] %v11258_v24  ;;  %11276 = vst [vmem:[#allocation16 + $0x30] sm:$0xff] %v11260_v14  ;;  %v11246_v46 = vadd.f32 %v11230_v7, %v10544_v60  ;;  %v11248_v19 = vadd.f32 %v12162_v54, %v11232_v36  ;;  %v11231_v20 = vsel %vm16258_vm12, %v10958_v29, 0.0  ;;  %v11233_v26 = vsel %vm16259_vm13, %v11029_v12, 0.0 }
 0x8e5   :  { %11275 = vst [vmem:[#allocation16 + $0x28] sm:$0xff] %v11259_v18  ;;  %11277 = vst [vmem:[#allocation16 + $0x38] sm:$0xff] %v11261_v61  ;;  %v11247_v30 = vadd.f32 %v11231_v20, %v10545_v40  ;;  %v11249_v63 = vadd.f32 %v12168_v57, %v11233_v26  ;;  %vm16260_vm10 = vnez %v16217_v35  ;;  %vm16262_vm5 = vnez %v16211_v27 }
 0x8e6   :  { %vm11189_vm3 = vmand %vm16260_vm10, %vm15677_vm0  ;;  %v11262_v1 = vmax.f32 %v11246_v46, 0.0  ;;  %v11264_v53 = vmax.f32 %v11248_v19, 0.0  ;;  %v11098_v4 = vpop.f32.mrb[100].mxu1  ;;  %v11169_v60 = vpop.f32.mrb[96].mxu0 }
 0x8e7   :  { %v11263_v54 = vmax.f32 %v11247_v30, 0.0  ;;  %v11265_v56 = vmax.f32 %v11249_v63, 0.0  ;;  %v11234_v41 = vsel %vm16261_vm9, %v11098_v4, 0.0  ;;  %v11236_v58 = vsel %vm16262_vm5, %v11169_v60, 0.0  ;;  %v11100_v11 = vpop.f32.mrb[101].mxu1  ;;  %v11171_v40 = vpop.f32.mrb[97].mxu0 }
 0x8e8   :  { %11278 = vst [vmem:[#allocation16 + $0x40] sm:$0xff] %v11262_v1  ;;  %11280 = vst [vmem:[#allocation16 + $0x50] sm:$0xff] %v11264_v53  ;;  %v11250_v57 = vadd.f32 %v15701_v38, %v11234_v41  ;;  %v11252_v43 = vadd.f32 %v11236_v58, %v15703_v44  ;;  %v11235_v3 = vsel %vm16263_vm4, %v11100_v11, 0.0  ;;  %v11237_v49 = vsel %vm11189_vm3, %v11171_v40, 0.0 }
 0x8e9   :  { %11279 = vst [vmem:[#allocation16 + $0x48] sm:$0xff] %v11263_v54  ;;  %11281 = vst [vmem:[#allocation16 + $0x58] sm:$0xff] %v11265_v56  ;;  %v11251_v27 = vadd.f32 %v15705_v13, %v11235_v3  ;;  %v11253_v10 = vadd.f32 %v11237_v49, %v15709_v52 }
 0x8ea   :  { %v11266_v38 = vmax.f32 %v11250_v57, 0.0  ;;  %v11268_v39 = vmax.f32 %v11252_v43, 0.0 }
 0x8eb   :  { %v11267_v44 = vmax.f32 %v11251_v27, 0.0  ;;  %v11269_v62 = vmax.f32 %v11253_v10, 0.0 }
 0x8ec   :  { %11282 = vst [vmem:[#allocation16 + $0x60] sm:$0xff] %v11266_v38  ;;  %11284 = vst [vmem:[#allocation16 + $0x70] sm:$0xff] %v11268_v39 }
 0x8ed   :  { %11283 = vst [vmem:[#allocation16 + $0x68] sm:$0xff] %v11267_v44  ;;  %11285 = vst [vmem:[#allocation16 + $0x78] sm:$0xff] %v11269_v62 }
 0x8ee   :  { %12794 = shalt.err (!%p12791_p12)
}
 0x8ef   :  { %s12795_s24 = scalar_lea.hbm %s15781_s8, 2048 }
 0x8f0   :  { %p12796_p13 = scmp.ne.s32.totalorder %s15781_s8, %s12795_s24  ;;  %p12799_p0 = scmp.lt.u32.totalorder %s12795_s24, %s15781_s8 }
 0x8f2   :  { %p12801_p1 = pnand %p12799_p0, %p12796_p13 }
 0x8f4   :  { %12804 = shalt.err (!%p12801_p1)
}
 0x8f5   :  { %11315 = dma.vmem_to_hbm [thread:$0]  %s11313_s3, 2048, %s15781_s8, [#allocation15]  }
 0x8f6   :  { %12813 = dma.done.wait [#allocation4], 128  }
 0x8f7   :  { %12814 = vsyncadd [#allocation4], 4294967168 }
 0x8f8   :  { %12815 = dma.done.wait [#allocation15], 2560  }
 0x8f9   :  { %12816 = vsyncadd [#allocation15], 4294964736 }
 0x8fa   :  { %11325 = vsyncpa [#allocation3], 1 }
 0x8fb   :  { %11326 = vsyncpa [#allocation6], 1 }
 0x8fc   :  { %11327 = vsyncpa [#allocation9], 1 }
 0x8fd   :  { %11328 = vsyncpa [#allocation12], 1 }
 0x8fe   :  { %11329 = vsyncpa [#allocation4], 1 }
 0x8ff   :  { %11330 = vsyncpa [#allocation15], 1 }

</bundles_post_ra>
